<compile_context>
chip_gen: v7x
topology: tpu7x:2x2x1
jax: 0.10.0
libtpu: 0.0.40
codegen_flags: <defaults>
</compile_context>

<pallas_src>
import jax
import jax.numpy as jnp
import numpy as np
from jax.experimental import pallas as pl
from jax.experimental.pallas import tpu as pltpu

_SELU_ALPHA = 1.6732632423543772848170429916717
_SELU_SCALE = 1.0507009873554804934193349852946
_MXU_DTYPE = jnp.bfloat16          # MXU inputs; accumulation & VPU math in f32


def _selu(x):
    return _SELU_SCALE * jnp.where(x > 0, x, _SELU_ALPHA * (jnp.exp(x) - 1.0))


# ----------------------------- Pallas kernel --------------------------------

def _make_attention_kernel(bt, h, w, oh, ow, num, f, fh):
    hw = h * w
    rows = bt * hw
    cg = 3 * num
    ohw = oh * ow

    def kernel(x_ref, w1_ref, b1_ref, w2_ref, b2_ref, w3_ref, b3_ref,
               w4_ref, b4_ref, up_ref, o_ref, zp_ref):
        # ---- 1x1 conv + SELU (whole batch tile: M = bt*HW rows) -------------
        x = x_ref[...].reshape(rows, 4 * f)                            # bf16
        h1 = _selu(jnp.dot(x, w1_ref[...],
                           preferred_element_type=jnp.float32) + b1_ref[...])

        # ---- zero only the halo border of the shared bf16 scratch -----------
        # Re-zeroed every grid step (cheap, pair-aligned small stores) rather
        # than once under program_id==0, which would be unsafe when the
        # "parallel" batch axis is split across TensorCores (per-core scratch).
        # The interior is fully overwritten below, so it is never zeroed.
        zp_ref[:, 0:1, :, :] = jnp.zeros((bt, 1, w + 4, f), _MXU_DTYPE)
        zp_ref[:, h + 1:h + 2, :, :] = jnp.zeros((bt, 1, w + 4, f), _MXU_DTYPE)
        zp_ref[:, :, 0:2, :] = jnp.zeros((bt, h + 2, 2, f), _MXU_DTYPE)
        zp_ref[:, :, w + 2:w + 4, :] = jnp.zeros((bt, h + 2, 2, f), _MXU_DTYPE)

        # ---- 3x3 'same' convs: bf16 halo scratch + 9 shifted reads, fused
        # ---- into a single (rows, 9*Cin) x (9*Cin, Cout) matmul --------------
        def conv3x3(act_f32, w_ref, b_ref):
            cin = act_f32.shape[-1]
            # Image lives at rows 1..h, cols 2..w+1 (col offset 2 keeps all
            # bf16 packed-sublane stores pair-aligned).
            zp_ref[:, 1:h + 1, 2:w + 2, :cin] = (
                act_f32.astype(_MXU_DTYPE).reshape(bt, h, w, cin))
            taps = [zp_ref[:, dh:dh + h, dw + 1:dw + 1 + w, :cin].reshape(rows, cin)
                    for dh in range(3) for dw in range(3)]
            patch = jnp.concatenate(taps, axis=-1)                     # (rows, 9*cin) bf16
            return jnp.dot(patch, w_ref[...],
                           preferred_element_type=jnp.float32) + b_ref[...]

        h2 = _selu(conv3x3(h1, w2_ref, b2_ref))                        # (rows, fh)
        h3 = _selu(conv3x3(h2, w3_ref, b3_ref))                        # (rows, fh)

        # ---- final 1x1 conv: all 3 attention groups fused into one matmul ----
        h4 = jnp.dot(h3.astype(_MXU_DTYPE), w4_ref[...],
                     preferred_element_type=jnp.float32) + b4_ref[...]  # (rows, 3*num)

        # ---- channels-first, then ONE kron(A_h, A_w) upsample matmul ---------
        # (bt*cg, hw) @ (hw, OH*OW): lane-dense 256-wide result, which is
        # already the layout the softmax and the output store want.
        h4t = jnp.transpose(h4.reshape(bt, hw, cg), (0, 2, 1)).reshape(bt * cg, hw)
        t2 = jnp.dot(h4t.astype(_MXU_DTYPE), up_ref[...],
                     preferred_element_type=jnp.float32)               # (bt*cg, OH*OW)

        # ---- per-group softmax over `num` (a leading axis), lane-dense -------
        logits = t2.reshape(bt, 3, num, ohw)
        mx = jnp.max(logits, axis=2, keepdims=True)
        e = jnp.exp(logits - mx)
        den = jnp.sum(e, axis=2, keepdims=True)
        # approx reciprocal (EUP): normalization exact to ~1e-3/1e-4.
        o_ref[...] = e * pl.reciprocal(den, approx=True)

    return kernel


# ------------------------------ glue helpers --------------------------------

def _bilinear_matrix(out_size, in_size):
    """Row-interpolation matrix matching F.interpolate(mode='bilinear',
    align_corners=False)."""
    scale = in_size / out_size
    i = np.arange(out_size, dtype=np.float64)
    src = np.maximum((i + 0.5) * scale - 0.5, 0.0)
    i0 = np.minimum(np.floor(src), in_size - 1).astype(np.int64)
    i1 = np.minimum(i0 + 1, in_size - 1)
    l1 = src - i0
    l0 = 1.0 - l1
    a = np.zeros((out_size, in_size), dtype=np.float64)
    a[np.arange(out_size), i0] += l0
    a[np.arange(out_size), i1] += l1
    return jnp.asarray(a, dtype=jnp.float32)


def _pick_batch_tile(n, hw, target_rows=512):
    """Batch tile per grid step.  Priority 1: keep >= 2 grid steps (v7x
    megacore + BlockSpec pipelining).  Priority 2: grow bt*hw toward
    `target_rows` MXU rows (v6e/v7x 256-wide MXU)."""
    divisors = [d for d in range(1, n + 1) if n % d == 0]
    multi = [d for d in divisors if n // d >= 2]
    pool = multi if multi else divisors
    for d in pool:
        if d * hw >= target_rows:
            return d
    return pool[-1]


def init_params(key, num_features, num):
    """Deterministic canonical (PyTorch-shaped, OIHW) conv parameters."""
    f = num_features
    fh = f // 2
    cout = 3 * num
    ks = jax.random.split(key, 8)

    def wconv(k, o, i, kh, kw):
        return (jax.random.normal(k, (o, i, kh, kw), jnp.float32)
                / np.sqrt(i * kh * kw)).astype(jnp.float32)

    w1 = wconv(ks[0], f, 4 * f, 1, 1)
    b1 = 0.05 * jax.random.normal(ks[1], (f,), jnp.float32)
    w2 = wconv(ks[2], fh, f, 3, 3)
    b2 = 0.05 * jax.random.normal(ks[3], (fh,), jnp.float32)
    w3 = wconv(ks[4], fh, fh, 3, 3)
    b3 = 0.05 * jax.random.normal(ks[5], (fh,), jnp.float32)
    w4 = wconv(ks[6], cout, fh, 1, 1)
    b4 = 0.05 * jax.random.normal(ks[7], (cout,), jnp.float32)
    return ((w1, b1), (w2, b2), (w3, b3), (w4, b4))


def kernel_params_from_canonical(canon):
    """OIHW params -> matmul-shaped, bf16 MXU weights (biases stay f32)."""
    (w1c, b1), (w2c, b2), (w3c, b3), (w4c, b4) = canon

    def pack3x3(wc):   # (O, I, 3, 3) -> (9*I, O), tap index k = dh*3 + dw major
        t = jnp.stack([wc[:, :, dh, dw].T
                       for dh in range(3) for dw in range(3)])   # (9, I, O)
        return t.reshape(-1, t.shape[-1])

    w1 = w1c[:, :, 0, 0].T.astype(_MXU_DTYPE)                    # (4F, F)
    w2 = pack3x3(w2c).astype(_MXU_DTYPE)                         # (9F, F//2)
    w3 = pack3x3(w3c).astype(_MXU_DTYPE)                         # (9*F//2, F//2)
    w4 = w4c[:, :, 0, 0].T.astype(_MXU_DTYPE)                    # (F//2, 3*num)
    return (w1, b1[None, :], w2, b2[None, :], w3, b3[None, :], w4, b4[None, :])


def attention_forward(mlf, params, ori_h, ori_w, num):
    """mlf: (n, 4, F, h, w) float32 -> (n, 3, num, ori_h, ori_w) float32."""
    n, s, f, h, w = mlf.shape
    assert s == 4
    fh = f // 2
    hw = h * w
    ohw = ori_h * ori_w
    w1, b1, w2p, b2, w3p, b3, w4a, b4a = params
    assert w4a.shape[-1] == 3 * num

    # NCHW-style concat -> NHWC -> flatten spatial (pure layout glue)
    x = mlf.reshape(n, s * f, h, w).transpose(0, 2, 3, 1).reshape(n, hw, s * f)
    x = x.astype(_MXU_DTYPE)

    # Single bilinear-upsample operator: kron(A_h, A_w)^T, (h*w, OH*OW).
    # For these shapes it is only 64x256 bf16 = 32 KB; for very large feature
    # maps switch back to a separable two-matmul form.
    a_h = _bilinear_matrix(ori_h, h)
    a_w = _bilinear_matrix(ori_w, w)
    up_op = jnp.kron(a_h, a_w).T.astype(_MXU_DTYPE)              # (hw, OH*OW)

    bt = _pick_batch_tile(n, hw)
    kernel = _make_attention_kernel(bt, h, w, ori_h, ori_w, num, f, fh)

    out = pl.pallas_call(
        kernel,
        out_shape=jax.ShapeDtypeStruct((n, 3, num, ohw), jnp.float32),
        grid=(n // bt,),
        in_specs=[
            pl.BlockSpec((bt, hw, s * f), lambda b: (b, 0, 0)),
            pl.BlockSpec(w1.shape, lambda b: (0, 0)),
            pl.BlockSpec(b1.shape, lambda b: (0, 0)),
            pl.BlockSpec(w2p.shape, lambda b: (0, 0)),
            pl.BlockSpec(b2.shape, lambda b: (0, 0)),
            pl.BlockSpec(w3p.shape, lambda b: (0, 0)),
            pl.BlockSpec(b3.shape, lambda b: (0, 0)),
            pl.BlockSpec(w4a.shape, lambda b: (0, 0)),
            pl.BlockSpec(b4a.shape, lambda b: (0, 0)),
            pl.BlockSpec(up_op.shape, lambda b: (0, 0)),
        ],
        out_specs=pl.BlockSpec((bt, 3, num, ohw), lambda b: (b, 0, 0, 0)),
        scratch_shapes=[
            # One SHARED bf16 halo buffer for both 3x3 convs (fh <= f); image
            # at col offset 2 keeps all packed-sublane stores pair-aligned.
            pltpu.VMEM((bt, h + 2, w + 4, f), jnp.bfloat16),
        ],
        compiler_params=pltpu.CompilerParams(
            dimension_semantics=("parallel",)),
        # NOTE: at production shapes additionally set vmem_limit_bytes here
        # (v7x physical VMEM is 64 MiB; default scoped limit is 32 MiB).
    )(x, w1, b1, w2p, b2, w3p, b3, w4a, b4a, up_op)

    # Lane-dense kernel output -> PyTorch (n, 3, num, OH, OW) layout.
    return out.reshape(n, 3, num, ori_h, ori_w)


# --------------------------- pure-JAX reference ------------------------------

def _conv_nchw(x, wc, b, pad):
    y = jax.lax.conv_general_dilated(
        x, wc, window_strides=(1, 1),
        padding=((pad, pad), (pad, pad)),
        dimension_numbers=("NCHW", "OIHW", "NCHW"),
        precision=jax.lax.Precision.HIGHEST)
    return y + b[None, :, None, None]


def reference_forward(mlf, canon, a_h, a_w, num):
    n, s, f, h, w = mlf.shape
    x = mlf.reshape(n, s * f, h, w)
    (w1, b1), (w2, b2), (w3, b3), (w4, b4) = canon
    y = jax.nn.selu(_conv_nchw(x, w1, b1, 0))
    y = jax.nn.selu(_conv_nchw(y, w2, b2, 1))
    y = jax.nn.selu(_conv_nchw(y, w3, b3, 1))
    y = _conv_nchw(y, w4, b4, 0)
    up = jnp.einsum("nchw,ph,qw->ncpq", y, a_h, a_w,
                    precision=jax.lax.Precision.HIGHEST)
    oh, ow = a_h.shape[0], a_w.shape[0]
    up = up.reshape(n, 3, num, oh, ow)
    return jax.nn.softmax(up, axis=2)


# --------------------------------- main --------------------------------------

if __name__ == "__main__":
    n, num_features, num = 2, 32, 5
    h = w = 8
    ori_h = ori_w = 16

    root = jax.random.PRNGKey(0)
    k_in, k_p = jax.random.split(root)
    mlf = jax.random.normal(k_in, (n, 4, num_features, h, w), jnp.float32)

    canon = init_params(k_p, num_features, num)
    params = kernel_params_from_canonical(canon)

    out = attention_forward(mlf, params, ori_h, ori_w, num)
    out = jax.block_until_ready(out)
    assert out.shape == (n, 3, num, ori_h, ori_w), out.shape

    ref = reference_forward(mlf, canon, _bilinear_matrix(ori_h, h),
                            _bilinear_matrix(ori_w, w), num)
    # Kernel uses bf16 MXU operands with f32 accumulation, compared against an
    # f32 HIGHEST-precision reference -> bf16-level tolerance.
    np.testing.assert_allclose(np.asarray(out), np.asarray(ref),
                               rtol=2e-2, atol=2e-2)
    print("KERNEL_OK")
</pallas_src>

<mosaic_0001>
module attributes {stable_mosaic.version = 11 : i64} {
  func.func @kernel(%arg0: i32, %arg1: memref<1x64x128xbf16, #tpu.memory_space<vmem>>, %arg2: memref<128x32xbf16, #tpu.memory_space<vmem>>, %arg3: memref<1x32xf32, #tpu.memory_space<vmem>>, %arg4: memref<288x16xbf16, #tpu.memory_space<vmem>>, %arg5: memref<1x16xf32, #tpu.memory_space<vmem>>, %arg6: memref<144x16xbf16, #tpu.memory_space<vmem>>, %arg7: memref<1x16xf32, #tpu.memory_space<vmem>>, %arg8: memref<16x15xbf16, #tpu.memory_space<vmem>>, %arg9: memref<1x15xf32, #tpu.memory_space<vmem>>, %arg10: memref<64x256xbf16, #tpu.memory_space<vmem>>, %arg11: memref<1x3x5x256xf32, #tpu.memory_space<vmem>>, %arg12: memref<1x10x12x32xbf16, #tpu.memory_space<vmem>>) attributes {dimension_semantics = [#tpu.dimension_semantics<parallel>], iteration_bounds = array<i64: 2>, scalar_prefetch = 0 : i64, scratch_operands = 1 : i64, tpu.core_type = #tpu.core_type<tc>, window_params = [{transform_indices = @transform_0, window_bounds = array<i64: 1, 64, 128>}, {pipeline_mode = #tpu.pipeline_mode<synchronous>, transform_indices = @transform_1, window_bounds = array<i64: 128, 32>}, {pipeline_mode = #tpu.pipeline_mode<synchronous>, transform_indices = @transform_2, window_bounds = array<i64: 1, 32>}, {pipeline_mode = #tpu.pipeline_mode<synchronous>, transform_indices = @transform_3, window_bounds = array<i64: 288, 16>}, {pipeline_mode = #tpu.pipeline_mode<synchronous>, transform_indices = @transform_4, window_bounds = array<i64: 1, 16>}, {pipeline_mode = #tpu.pipeline_mode<synchronous>, transform_indices = @transform_5, window_bounds = array<i64: 144, 16>}, {pipeline_mode = #tpu.pipeline_mode<synchronous>, transform_indices = @transform_6, window_bounds = array<i64: 1, 16>}, {pipeline_mode = #tpu.pipeline_mode<synchronous>, transform_indices = @transform_7, window_bounds = array<i64: 16, 15>}, {pipeline_mode = #tpu.pipeline_mode<synchronous>, transform_indices = @transform_8, window_bounds = array<i64: 1, 15>}, {pipeline_mode = #tpu.pipeline_mode<synchronous>, transform_indices = @transform_9, window_bounds = array<i64: 64, 256>}, {transform_indices = @transform_10, window_bounds = array<i64: 1, 3, 5, 256>}]} {
    %c0 = arith.constant 0 : index
    %c0_0 = arith.constant 0 : index
    %c0_1 = arith.constant 0 : index
    %0 = vector.load %arg1[%c0, %c0_0, %c0_1] : memref<1x64x128xbf16, #tpu.memory_space<vmem>>, vector<1x64x128xbf16>
    %1 = vector.shape_cast %0 : vector<1x64x128xbf16> to vector<64x128xbf16>
    %c0_2 = arith.constant 0 : index
    %c0_3 = arith.constant 0 : index
    %2 = vector.load %arg2[%c0_2, %c0_3] : memref<128x32xbf16, #tpu.memory_space<vmem>>, vector<128x32xbf16>
    %cst = arith.constant dense<0.000000e+00> : vector<64x32xf32>
    %3 = tpu.matmul %1, %2, %cst {dimension_numbers = #tpu.dot_dimension_numbers<[1], [0], [0], [1], [0, 0, 1, 1], [], []>} : vector<64x128xbf16>, vector<128x32xbf16>, vector<64x32xf32> -> vector<64x32xf32>
    %c0_4 = arith.constant 0 : index
    %c0_5 = arith.constant 0 : index
    %4 = vector.load %arg3[%c0_4, %c0_5] : memref<1x32xf32, #tpu.memory_space<vmem>>, vector<1x32xf32>
    %5 = vector.broadcast %4 : vector<1x32xf32> to vector<64x32xf32>
    %6 = arith.addf %3, %5 : vector<64x32xf32>
    %cst_6 = arith.constant 0.000000e+00 : f32
    %7 = vector.broadcast %cst_6 : f32 to vector<64x32xf32>
    %8 = arith.cmpf ogt, %6, %7 : vector<64x32xf32>
    %9 = math.exp %6 : vector<64x32xf32>
    %cst_7 = arith.constant 1.000000e+00 : f32
    %10 = vector.broadcast %cst_7 : f32 to vector<64x32xf32>
    %11 = arith.subf %9, %10 : vector<64x32xf32>
    %cst_8 = arith.constant 1.67326319 : f32
    %12 = vector.broadcast %cst_8 : f32 to vector<64x32xf32>
    %13 = arith.mulf %12, %11 : vector<64x32xf32>
    %14 = arith.select %8, %6, %13 : vector<64x32xi1>, vector<64x32xf32>
    %cst_9 = arith.constant 1.05070102 : f32
    %15 = vector.broadcast %cst_9 : f32 to vector<64x32xf32>
    %16 = arith.mulf %15, %14 : vector<64x32xf32>
    %cst_10 = arith.constant 0.000000e+00 : bf16
    %17 = vector.broadcast %cst_10 : bf16 to vector<1x1x12x32xbf16>
    %c0_11 = arith.constant 0 : index
    %c0_12 = arith.constant 0 : index
    %c0_13 = arith.constant 0 : index
    %c0_14 = arith.constant 0 : index
    %18 = vector.load %arg12[%c0_11, %c0_12, %c0_13, %c0_14] : memref<1x10x12x32xbf16, #tpu.memory_space<vmem>>, vector<1x1x12x32xbf16>
    tpu.vector_store %arg12[%c0_11, %c0_12, %c0_13, %c0_14], %17 {strides = array<i32>} : memref<1x10x12x32xbf16, #tpu.memory_space<vmem>>, vector<1x1x12x32xbf16>,
    %cst_15 = arith.constant 0.000000e+00 : bf16
    %19 = vector.broadcast %cst_15 : bf16 to vector<1x1x12x32xbf16>
    %c0_16 = arith.constant 0 : index
    %c9 = arith.constant 9 : index
    %c0_17 = arith.constant 0 : index
    %c0_18 = arith.constant 0 : index
    %20 = vector.load %arg12[%c0_16, %c9, %c0_17, %c0_18] : memref<1x10x12x32xbf16, #tpu.memory_space<vmem>>, vector<1x1x12x32xbf16>
    tpu.vector_store %arg12[%c0_16, %c9, %c0_17, %c0_18], %19 {strides = array<i32>} : memref<1x10x12x32xbf16, #tpu.memory_space<vmem>>, vector<1x1x12x32xbf16>,
    %cst_19 = arith.constant 0.000000e+00 : bf16
    %21 = vector.broadcast %cst_19 : bf16 to vector<1x10x2x32xbf16>
    %c0_20 = arith.constant 0 : index
    %c0_21 = arith.constant 0 : index
    %c0_22 = arith.constant 0 : index
    %c0_23 = arith.constant 0 : index
    %22 = vector.load %arg12[%c0_20, %c0_21, %c0_22, %c0_23] : memref<1x10x12x32xbf16, #tpu.memory_space<vmem>>, vector<1x10x2x32xbf16>
    tpu.vector_store %arg12[%c0_20, %c0_21, %c0_22, %c0_23], %21 {strides = array<i32>} : memref<1x10x12x32xbf16, #tpu.memory_space<vmem>>, vector<1x10x2x32xbf16>,
    %cst_24 = arith.constant 0.000000e+00 : bf16
    %23 = vector.broadcast %cst_24 : bf16 to vector<1x10x2x32xbf16>
    %c0_25 = arith.constant 0 : index
    %c0_26 = arith.constant 0 : index
    %c10 = arith.constant 10 : index
    %c0_27 = arith.constant 0 : index
    %24 = vector.load %arg12[%c0_25, %c0_26, %c10, %c0_27] : memref<1x10x12x32xbf16, #tpu.memory_space<vmem>>, vector<1x10x2x32xbf16>
    tpu.vector_store %arg12[%c0_25, %c0_26, %c10, %c0_27], %23 {strides = array<i32>} : memref<1x10x12x32xbf16, #tpu.memory_space<vmem>>, vector<1x10x2x32xbf16>,
    %25 = arith.truncf %16 : vector<64x32xf32> to vector<64x32xbf16>
    %26 = vector.shape_cast %25 : vector<64x32xbf16> to vector<1x8x8x32xbf16>
    %c0_28 = arith.constant 0 : index
    %c1 = arith.constant 1 : index
    %c2 = arith.constant 2 : index
    %c0_29 = arith.constant 0 : index
    %27 = vector.load %arg12[%c0_28, %c1, %c2, %c0_29] : memref<1x10x12x32xbf16, #tpu.memory_space<vmem>>, vector<1x8x8x32xbf16>
    tpu.vector_store %arg12[%c0_28, %c1, %c2, %c0_29], %26 {strides = array<i32>} : memref<1x10x12x32xbf16, #tpu.memory_space<vmem>>, vector<1x8x8x32xbf16>,
    %c0_30 = arith.constant 0 : index
    %c0_31 = arith.constant 0 : index
    %c1_32 = arith.constant 1 : index
    %c0_33 = arith.constant 0 : index
    %28 = vector.load %arg12[%c0_30, %c0_31, %c1_32, %c0_33] : memref<1x10x12x32xbf16, #tpu.memory_space<vmem>>, vector<1x8x8x32xbf16>
    %29 = vector.shape_cast %28 : vector<1x8x8x32xbf16> to vector<64x32xbf16>
    %c0_34 = arith.constant 0 : index
    %c0_35 = arith.constant 0 : index
    %c2_36 = arith.constant 2 : index
    %c0_37 = arith.constant 0 : index
    %30 = vector.load %arg12[%c0_34, %c0_35, %c2_36, %c0_37] : memref<1x10x12x32xbf16, #tpu.memory_space<vmem>>, vector<1x8x8x32xbf16>
    %31 = vector.shape_cast %30 : vector<1x8x8x32xbf16> to vector<64x32xbf16>
    %c0_38 = arith.constant 0 : index
    %c0_39 = arith.constant 0 : index
    %c3 = arith.constant 3 : index
    %c0_40 = arith.constant 0 : index
    %32 = vector.load %arg12[%c0_38, %c0_39, %c3, %c0_40] : memref<1x10x12x32xbf16, #tpu.memory_space<vmem>>, vector<1x8x8x32xbf16>
    %33 = vector.shape_cast %32 : vector<1x8x8x32xbf16> to vector<64x32xbf16>
    %c0_41 = arith.constant 0 : index
    %c1_42 = arith.constant 1 : index
    %c1_43 = arith.constant 1 : index
    %c0_44 = arith.constant 0 : index
    %34 = vector.load %arg12[%c0_41, %c1_42, %c1_43, %c0_44] : memref<1x10x12x32xbf16, #tpu.memory_space<vmem>>, vector<1x8x8x32xbf16>
    %35 = vector.shape_cast %34 : vector<1x8x8x32xbf16> to vector<64x32xbf16>
    %c0_45 = arith.constant 0 : index
    %c1_46 = arith.constant 1 : index
    %c2_47 = arith.constant 2 : index
    %c0_48 = arith.constant 0 : index
    %36 = vector.load %arg12[%c0_45, %c1_46, %c2_47, %c0_48] : memref<1x10x12x32xbf16, #tpu.memory_space<vmem>>, vector<1x8x8x32xbf16>
    %37 = vector.shape_cast %36 : vector<1x8x8x32xbf16> to vector<64x32xbf16>
    %c0_49 = arith.constant 0 : index
    %c1_50 = arith.constant 1 : index
    %c3_51 = arith.constant 3 : index
    %c0_52 = arith.constant 0 : index
    %38 = vector.load %arg12[%c0_49, %c1_50, %c3_51, %c0_52] : memref<1x10x12x32xbf16, #tpu.memory_space<vmem>>, vector<1x8x8x32xbf16>
    %39 = vector.shape_cast %38 : vector<1x8x8x32xbf16> to vector<64x32xbf16>
    %c0_53 = arith.constant 0 : index
    %c2_54 = arith.constant 2 : index
    %c1_55 = arith.constant 1 : index
    %c0_56 = arith.constant 0 : index
    %40 = vector.load %arg12[%c0_53, %c2_54, %c1_55, %c0_56] : memref<1x10x12x32xbf16, #tpu.memory_space<vmem>>, vector<1x8x8x32xbf16>
    %41 = vector.shape_cast %40 : vector<1x8x8x32xbf16> to vector<64x32xbf16>
    %c0_57 = arith.constant 0 : index
    %c2_58 = arith.constant 2 : index
    %c2_59 = arith.constant 2 : index
    %c0_60 = arith.constant 0 : index
    %42 = vector.load %arg12[%c0_57, %c2_58, %c2_59, %c0_60] : memref<1x10x12x32xbf16, #tpu.memory_space<vmem>>, vector<1x8x8x32xbf16>
    %43 = vector.shape_cast %42 : vector<1x8x8x32xbf16> to vector<64x32xbf16>
    %c0_61 = arith.constant 0 : index
    %c2_62 = arith.constant 2 : index
    %c3_63 = arith.constant 3 : index
    %c0_64 = arith.constant 0 : index
    %44 = vector.load %arg12[%c0_61, %c2_62, %c3_63, %c0_64] : memref<1x10x12x32xbf16, #tpu.memory_space<vmem>>, vector<1x8x8x32xbf16>
    %45 = vector.shape_cast %44 : vector<1x8x8x32xbf16> to vector<64x32xbf16>
    %46 = tpu.concatenate %29, %31, %33, %35, %37, %39, %41, %43, %45 in 1 : vector<64x32xbf16>, vector<64x32xbf16>, vector<64x32xbf16>, vector<64x32xbf16>, vector<64x32xbf16>, vector<64x32xbf16>, vector<64x32xbf16>, vector<64x32xbf16>, vector<64x32xbf16> -> vector<64x288xbf16>
    %c0_65 = arith.constant 0 : index
    %c0_66 = arith.constant 0 : index
    %47 = vector.load %arg4[%c0_65, %c0_66] : memref<288x16xbf16, #tpu.memory_space<vmem>>, vector<288x16xbf16>
    %cst_67 = arith.constant dense<0.000000e+00> : vector<64x16xf32>
    %48 = tpu.matmul %46, %47, %cst_67 {dimension_numbers = #tpu.dot_dimension_numbers<[1], [0], [0], [1], [0, 0, 1, 1], [], []>} : vector<64x288xbf16>, vector<288x16xbf16>, vector<64x16xf32> -> vector<64x16xf32>
    %c0_68 = arith.constant 0 : index
    %c0_69 = arith.constant 0 : index
    %49 = vector.load %arg5[%c0_68, %c0_69] : memref<1x16xf32, #tpu.memory_space<vmem>>, vector<1x16xf32>
    %50 = vector.broadcast %49 : vector<1x16xf32> to vector<64x16xf32>
    %51 = arith.addf %48, %50 : vector<64x16xf32>
    %cst_70 = arith.constant 0.000000e+00 : f32
    %52 = vector.broadcast %cst_70 : f32 to vector<64x16xf32>
    %53 = arith.cmpf ogt, %51, %52 : vector<64x16xf32>
    %54 = math.exp %51 : vector<64x16xf32>
    %cst_71 = arith.constant 1.000000e+00 : f32
    %55 = vector.broadcast %cst_71 : f32 to vector<64x16xf32>
    %56 = arith.subf %54, %55 : vector<64x16xf32>
    %cst_72 = arith.constant 1.67326319 : f32
    %57 = vector.broadcast %cst_72 : f32 to vector<64x16xf32>
    %58 = arith.mulf %57, %56 : vector<64x16xf32>
    %59 = arith.select %53, %51, %58 : vector<64x16xi1>, vector<64x16xf32>
    %cst_73 = arith.constant 1.05070102 : f32
    %60 = vector.broadcast %cst_73 : f32 to vector<64x16xf32>
    %61 = arith.mulf %60, %59 : vector<64x16xf32>
    %62 = arith.truncf %61 : vector<64x16xf32> to vector<64x16xbf16>
    %63 = vector.shape_cast %62 : vector<64x16xbf16> to vector<1x8x8x16xbf16>
    %c0_74 = arith.constant 0 : index
    %c1_75 = arith.constant 1 : index
    %c2_76 = arith.constant 2 : index
    %c0_77 = arith.constant 0 : index
    %64 = vector.load %arg12[%c0_74, %c1_75, %c2_76, %c0_77] : memref<1x10x12x32xbf16, #tpu.memory_space<vmem>>, vector<1x8x8x16xbf16>
    tpu.vector_store %arg12[%c0_74, %c1_75, %c2_76, %c0_77], %63 {strides = array<i32>} : memref<1x10x12x32xbf16, #tpu.memory_space<vmem>>, vector<1x8x8x16xbf16>,
    %c0_78 = arith.constant 0 : index
    %c0_79 = arith.constant 0 : index
    %c1_80 = arith.constant 1 : index
    %c0_81 = arith.constant 0 : index
    %65 = vector.load %arg12[%c0_78, %c0_79, %c1_80, %c0_81] : memref<1x10x12x32xbf16, #tpu.memory_space<vmem>>, vector<1x8x8x16xbf16>
    %66 = vector.shape_cast %65 : vector<1x8x8x16xbf16> to vector<64x16xbf16>
    %c0_82 = arith.constant 0 : index
    %c0_83 = arith.constant 0 : index
    %c2_84 = arith.constant 2 : index
    %c0_85 = arith.constant 0 : index
    %67 = vector.load %arg12[%c0_82, %c0_83, %c2_84, %c0_85] : memref<1x10x12x32xbf16, #tpu.memory_space<vmem>>, vector<1x8x8x16xbf16>
    %68 = vector.shape_cast %67 : vector<1x8x8x16xbf16> to vector<64x16xbf16>
    %c0_86 = arith.constant 0 : index
    %c0_87 = arith.constant 0 : index
    %c3_88 = arith.constant 3 : index
    %c0_89 = arith.constant 0 : index
    %69 = vector.load %arg12[%c0_86, %c0_87, %c3_88, %c0_89] : memref<1x10x12x32xbf16, #tpu.memory_space<vmem>>, vector<1x8x8x16xbf16>
    %70 = vector.shape_cast %69 : vector<1x8x8x16xbf16> to vector<64x16xbf16>
    %c0_90 = arith.constant 0 : index
    %c1_91 = arith.constant 1 : index
    %c1_92 = arith.constant 1 : index
    %c0_93 = arith.constant 0 : index
    %71 = vector.load %arg12[%c0_90, %c1_91, %c1_92, %c0_93] : memref<1x10x12x32xbf16, #tpu.memory_space<vmem>>, vector<1x8x8x16xbf16>
    %72 = vector.shape_cast %71 : vector<1x8x8x16xbf16> to vector<64x16xbf16>
    %c0_94 = arith.constant 0 : index
    %c1_95 = arith.constant 1 : index
    %c2_96 = arith.constant 2 : index
    %c0_97 = arith.constant 0 : index
    %73 = vector.load %arg12[%c0_94, %c1_95, %c2_96, %c0_97] : memref<1x10x12x32xbf16, #tpu.memory_space<vmem>>, vector<1x8x8x16xbf16>
    %74 = vector.shape_cast %73 : vector<1x8x8x16xbf16> to vector<64x16xbf16>
    %c0_98 = arith.constant 0 : index
    %c1_99 = arith.constant 1 : index
    %c3_100 = arith.constant 3 : index
    %c0_101 = arith.constant 0 : index
    %75 = vector.load %arg12[%c0_98, %c1_99, %c3_100, %c0_101] : memref<1x10x12x32xbf16, #tpu.memory_space<vmem>>, vector<1x8x8x16xbf16>
    %76 = vector.shape_cast %75 : vector<1x8x8x16xbf16> to vector<64x16xbf16>
    %c0_102 = arith.constant 0 : index
    %c2_103 = arith.constant 2 : index
    %c1_104 = arith.constant 1 : index
    %c0_105 = arith.constant 0 : index
    %77 = vector.load %arg12[%c0_102, %c2_103, %c1_104, %c0_105] : memref<1x10x12x32xbf16, #tpu.memory_space<vmem>>, vector<1x8x8x16xbf16>
    %78 = vector.shape_cast %77 : vector<1x8x8x16xbf16> to vector<64x16xbf16>
    %c0_106 = arith.constant 0 : index
    %c2_107 = arith.constant 2 : index
    %c2_108 = arith.constant 2 : index
    %c0_109 = arith.constant 0 : index
    %79 = vector.load %arg12[%c0_106, %c2_107, %c2_108, %c0_109] : memref<1x10x12x32xbf16, #tpu.memory_space<vmem>>, vector<1x8x8x16xbf16>
    %80 = vector.shape_cast %79 : vector<1x8x8x16xbf16> to vector<64x16xbf16>
    %c0_110 = arith.constant 0 : index
    %c2_111 = arith.constant 2 : index
    %c3_112 = arith.constant 3 : index
    %c0_113 = arith.constant 0 : index
    %81 = vector.load %arg12[%c0_110, %c2_111, %c3_112, %c0_113] : memref<1x10x12x32xbf16, #tpu.memory_space<vmem>>, vector<1x8x8x16xbf16>
    %82 = vector.shape_cast %81 : vector<1x8x8x16xbf16> to vector<64x16xbf16>
    %83 = tpu.concatenate %66, %68, %70, %72, %74, %76, %78, %80, %82 in 1 : vector<64x16xbf16>, vector<64x16xbf16>, vector<64x16xbf16>, vector<64x16xbf16>, vector<64x16xbf16>, vector<64x16xbf16>, vector<64x16xbf16>, vector<64x16xbf16>, vector<64x16xbf16> -> vector<64x144xbf16>
    %c0_114 = arith.constant 0 : index
    %c0_115 = arith.constant 0 : index
    %84 = vector.load %arg6[%c0_114, %c0_115] : memref<144x16xbf16, #tpu.memory_space<vmem>>, vector<144x16xbf16>
    %cst_116 = arith.constant dense<0.000000e+00> : vector<64x16xf32>
    %85 = tpu.matmul %83, %84, %cst_116 {dimension_numbers = #tpu.dot_dimension_numbers<[1], [0], [0], [1], [0, 0, 1, 1], [], []>} : vector<64x144xbf16>, vector<144x16xbf16>, vector<64x16xf32> -> vector<64x16xf32>
    %c0_117 = arith.constant 0 : index
    %c0_118 = arith.constant 0 : index
    %86 = vector.load %arg7[%c0_117, %c0_118] : memref<1x16xf32, #tpu.memory_space<vmem>>, vector<1x16xf32>
    %87 = vector.broadcast %86 : vector<1x16xf32> to vector<64x16xf32>
    %88 = arith.addf %85, %87 : vector<64x16xf32>
    %cst_119 = arith.constant 0.000000e+00 : f32
    %89 = vector.broadcast %cst_119 : f32 to vector<64x16xf32>
    %90 = arith.cmpf ogt, %88, %89 : vector<64x16xf32>
    %91 = math.exp %88 : vector<64x16xf32>
    %cst_120 = arith.constant 1.000000e+00 : f32
    %92 = vector.broadcast %cst_120 : f32 to vector<64x16xf32>
    %93 = arith.subf %91, %92 : vector<64x16xf32>
    %cst_121 = arith.constant 1.67326319 : f32
    %94 = vector.broadcast %cst_121 : f32 to vector<64x16xf32>
    %95 = arith.mulf %94, %93 : vector<64x16xf32>
    %96 = arith.select %90, %88, %95 : vector<64x16xi1>, vector<64x16xf32>
    %cst_122 = arith.constant 1.05070102 : f32
    %97 = vector.broadcast %cst_122 : f32 to vector<64x16xf32>
    %98 = arith.mulf %97, %96 : vector<64x16xf32>
    %99 = arith.truncf %98 : vector<64x16xf32> to vector<64x16xbf16>
    %c0_123 = arith.constant 0 : index
    %c0_124 = arith.constant 0 : index
    %100 = vector.load %arg8[%c0_123, %c0_124] : memref<16x15xbf16, #tpu.memory_space<vmem>>, vector<16x15xbf16>
    %cst_125 = arith.constant dense<0.000000e+00> : vector<64x15xf32>
    %101 = tpu.matmul %99, %100, %cst_125 {dimension_numbers = #tpu.dot_dimension_numbers<[1], [0], [0], [1], [0, 0, 1, 1], [], []>} : vector<64x16xbf16>, vector<16x15xbf16>, vector<64x15xf32> -> vector<64x15xf32>
    %c0_126 = arith.constant 0 : index
    %c0_127 = arith.constant 0 : index
    %102 = vector.load %arg9[%c0_126, %c0_127] : memref<1x15xf32, #tpu.memory_space<vmem>>, vector<1x15xf32>
    %103 = vector.broadcast %102 : vector<1x15xf32> to vector<64x15xf32>
    %104 = arith.addf %101, %103 : vector<64x15xf32>
    %105 = vector.shape_cast %104 : vector<64x15xf32> to vector<1x64x15xf32>
    %106 = tpu.transpose %105, [0, 2, 1] : vector<1x64x15xf32> -> vector<1x15x64xf32>
    %107 = vector.shape_cast %106 : vector<1x15x64xf32> to vector<15x64xf32>
    %108 = arith.truncf %107 : vector<15x64xf32> to vector<15x64xbf16>
    %c0_128 = arith.constant 0 : index
    %c0_129 = arith.constant 0 : index
    %109 = vector.load %arg10[%c0_128, %c0_129] : memref<64x256xbf16, #tpu.memory_space<vmem>>, vector<64x256xbf16>
    %cst_130 = arith.constant dense<0.000000e+00> : vector<15x256xf32>
    %110 = tpu.matmul %108, %109, %cst_130 {dimension_numbers = #tpu.dot_dimension_numbers<[1], [0], [0], [1], [0, 0, 1, 1], [], []>} : vector<15x64xbf16>, vector<64x256xbf16>, vector<15x256xf32> -> vector<15x256xf32>
    %111 = vector.shape_cast %110 : vector<15x256xf32> to vector<1x3x5x256xf32>
    %cst_131 = arith.constant dense<0xFF800000> : vector<1x3x256xf32>
    %112 = vector.multi_reduction <maximumf>, %111, %cst_131 [2] : vector<1x3x5x256xf32> to vector<1x3x256xf32>
    %113 = vector.shape_cast %112 : vector<1x3x256xf32> to vector<1x3x1x256xf32>
    %114 = vector.broadcast %113 : vector<1x3x1x256xf32> to vector<1x3x5x256xf32>
    %115 = arith.subf %111, %114 : vector<1x3x5x256xf32>
    %116 = math.exp %115 : vector<1x3x5x256xf32>
    %cst_132 = arith.constant dense<0.000000e+00> : vector<1x3x256xf32>
    %117 = vector.multi_reduction <add>, %116, %cst_132 [2] : vector<1x3x5x256xf32> to vector<1x3x256xf32>
    %118 = vector.shape_cast %117 : vector<1x3x256xf32> to vector<1x3x1x256xf32>
    %119 = tpu.reciprocal %118 {approx = true} : vector<1x3x1x256xf32> -> vector<1x3x1x256xf32>
    %120 = vector.broadcast %119 : vector<1x3x1x256xf32> to vector<1x3x5x256xf32>
    %121 = arith.mulf %116, %120 : vector<1x3x5x256xf32>
    %c0_133 = arith.constant 0 : index
    %c0_134 = arith.constant 0 : index
    %c0_135 = arith.constant 0 : index
    %c0_136 = arith.constant 0 : index
    %122 = vector.load %arg11[%c0_133, %c0_134, %c0_135, %c0_136] : memref<1x3x5x256xf32, #tpu.memory_space<vmem>>, vector<1x3x5x256xf32>
    tpu.vector_store %arg11[%c0_133, %c0_134, %c0_135, %c0_136], %121 {strides = array<i32>} : memref<1x3x5x256xf32, #tpu.memory_space<vmem>>, vector<1x3x5x256xf32>,
    return
  }
  func.func @transform_0(%arg0: i32) -> (i32, i32, i32) {
    %c0_i32 = arith.constant 0 : i32
    %c0_i32_0 = arith.constant 0 : i32
    %c0_i32_1 = arith.constant 0 : i32
    return %arg0, %c0_i32, %c0_i32_0 : i32, i32, i32
  }
  func.func @transform_1(%arg0: i32) -> (i32, i32) {
    %c0_i32 = arith.constant 0 : i32
    %c0_i32_0 = arith.constant 0 : i32
    %c0_i32_1 = arith.constant 0 : i32
    return %c0_i32, %c0_i32_0 : i32, i32
  }
  func.func @transform_2(%arg0: i32) -> (i32, i32) {
    %c0_i32 = arith.constant 0 : i32
    %c0_i32_0 = arith.constant 0 : i32
    %c0_i32_1 = arith.constant 0 : i32
    return %c0_i32, %c0_i32_0 : i32, i32
  }
  func.func @transform_3(%arg0: i32) -> (i32, i32) {
    %c0_i32 = arith.constant 0 : i32
    %c0_i32_0 = arith.constant 0 : i32
    %c0_i32_1 = arith.constant 0 : i32
    return %c0_i32, %c0_i32_0 : i32, i32
  }
  func.func @transform_4(%arg0: i32) -> (i32, i32) {
    %c0_i32 = arith.constant 0 : i32
    %c0_i32_0 = arith.constant 0 : i32
    %c0_i32_1 = arith.constant 0 : i32
    return %c0_i32, %c0_i32_0 : i32, i32
  }
  func.func @transform_5(%arg0: i32) -> (i32, i32) {
    %c0_i32 = arith.constant 0 : i32
    %c0_i32_0 = arith.constant 0 : i32
    %c0_i32_1 = arith.constant 0 : i32
    return %c0_i32, %c0_i32_0 : i32, i32
  }
  func.func @transform_6(%arg0: i32) -> (i32, i32) {
    %c0_i32 = arith.constant 0 : i32
    %c0_i32_0 = arith.constant 0 : i32
    %c0_i32_1 = arith.constant 0 : i32
    return %c0_i32, %c0_i32_0 : i32, i32
  }
  func.func @transform_7(%arg0: i32) -> (i32, i32) {
    %c0_i32 = arith.constant 0 : i32
    %c0_i32_0 = arith.constant 0 : i32
    %c0_i32_1 = arith.constant 0 : i32
    return %c0_i32, %c0_i32_0 : i32, i32
  }
  func.func @transform_8(%arg0: i32) -> (i32, i32) {
    %c0_i32 = arith.constant 0 : i32
    %c0_i32_0 = arith.constant 0 : i32
    %c0_i32_1 = arith.constant 0 : i32
    return %c0_i32, %c0_i32_0 : i32, i32
  }
  func.func @transform_9(%arg0: i32) -> (i32, i32) {
    %c0_i32 = arith.constant 0 : i32
    %c0_i32_0 = arith.constant 0 : i32
    %c0_i32_1 = arith.constant 0 : i32
    return %c0_i32, %c0_i32_0 : i32, i32
  }
  func.func @transform_10(%arg0: i32) -> (i32, i32, i32, i32) {
    %c0_i32 = arith.constant 0 : i32
    %c0_i32_0 = arith.constant 0 : i32
    %c0_i32_1 = arith.constant 0 : i32
    %c0_i32_2 = arith.constant 0 : i32
    return %arg0, %c0_i32, %c0_i32_0, %c0_i32_1 : i32, i32, i32, i32
  }
}

</mosaic_0001>

<bundles_post_ra>
// kernel: tpu_custom_call.1
= control target key start
LH: loop header
LB: loop body
LE: loop exit
PB: predicated region body
PF: predicated region fallthrough
CT: control target
= control target key end

     0   :  { %s5795_s13 = smov 0   ;;  %s7316_s0 = inlined_call_operand.vmem [shape: bf16[2,64,128], index: 0, kind: input, shape index: {}]   ;;  %s7317_s1 = inlined_call_operand.vmem [shape: bf16[128,32], index: 1, kind: input, shape index: {}]   ;;  %s7318_s2 = inlined_call_operand.vmem [shape: f32[1,32], index: 2, kind: input, shape index: {}]   ;;  %s7319_s3 = inlined_call_operand.vmem [shape: bf16[288,16], index: 3, kind: input, shape index: {}]   ;;  %s7320_s4 = inlined_call_operand.vmem [shape: f32[1,16], index: 4, kind: input, shape index: {}]   ;;  %s7321_s5 = inlined_call_operand.vmem [shape: bf16[144,16], index: 5, kind: input, shape index: {}]   ;;  %s7322_s6 = inlined_call_operand.vmem [shape: f32[1,16], index: 6, kind: input, shape index: {}]   ;;  %s7323_s7 = inlined_call_operand.vmem [shape: bf16[16,15], index: 7, kind: input, shape index: {}]   ;;  %s7324_s8 = inlined_call_operand.vmem [shape: f32[1,15], index: 8, kind: input, shape index: {}]   ;;  %s7325_s9 = inlined_call_operand.vmem [shape: bf16[64,256], index: 9, kind: input, shape index: {}]   ;;  %s7326_s10 = inlined_call_operand.vmem [shape: f32[2,3,5,256], index: 10, kind: output, shape index: {}]  }
   0x1 LB: > { %s5191_s14 = sadd.s32 4294967295, %s5729_s13   ;;  %p5195_p0 = scmp.ge.s32.totalorder %s5729_s13, 1  ;;  %s5729_s13 = sphi %s5795_s13, %s20_s13  }
   0x2   : > { %p312_p1 = scmp.lt.s32.totalorder %s5729_s13, 3 }
   0x4   : > { %p313_p2 = pnand %p5195_p0, %p312_p1 }
   0x5   : > { %v5573_v0 = vld [vmem:[%s7317_s1] sm:$0xff] (!%p313_p2)   ;;  %p350_p3 = scmp.lt.s32.totalorder (!%p313_p2), %s5191_s14, 1  ;;  %v5574_v1 = vld [vmem:[%s7317_s1 + $0x8] sm:$0xff] (!%p313_p2)   ;;  %v5575_v2 = vld [vmem:[%s7317_s1 + $0x10] sm:$0xff] (!%p313_p2)   ;;  %vm592_vm0 = vcmask (!%p313_p2), 253952   ;;  %vm585_vm1 = vcmask (!%p313_p2), 257024  }
   0x6   : > { %316 = sbr.rel (%p313_p2) target bundleno = 1888 (0x760), region = 60  ;;  %5508 = vmatprep.subr.bf16.mxu0 (!%p313_p2), %v5573_v0  ;;  %v5576_v3 = vld [vmem:[%s7317_s1 + $0x18] sm:$0xff] (!%p313_p2)   ;;  %v5577_v5 = vld [vmem:[%s7317_s1 + $0x20] sm:$0xff] (!%p313_p2)   ;;  %v5578_v6 = vld [vmem:[%s7317_s1 + $0x28] sm:$0xff] (!%p313_p2)   ;;  %v5731_v12 = vmov (!%p313_p2), 0   ;;  %vm587_vm2 = vcmask (!%p313_p2), 254976  }
   0x7   : > { %5509 = vmatpush3.bf16.msra.mxu0 (!%p313_p2), %v5573_v0  ;;  %v5579_v7 = vld [vmem:[%s7317_s1 + $0x30] sm:$0xff] (!%p313_p2)   ;;  %v5580_v8 = vld [vmem:[%s7317_s1 + $0x38] sm:$0xff] (!%p313_p2)   ;;  %586 = vst.msk [vmem:[#allocation2] sm:$0xf] (!%p313_p2), %vm585_vm1, %v5731_v12  ;;  %590 = vst.msk [vmem:[#allocation2 + $0x48] sm:$0xf] (!%p313_p2), %vm585_vm1, %v5731_v12 }
   0x8   : > { %5510 = vmatprep.subr.bf16.mxu0 (!%p313_p2), %v5574_v1  ;;  %594 = vst.msk [vmem:[#allocation2 + $0x8] sm:$0x1] (!%p313_p2), %vm592_vm0, %v5731_v12  ;;  %595 = vst.msk [vmem:[#allocation2 + $0x10] sm:$0x1] (!%p313_p2), %vm592_vm0, %v5731_v12  ;;  %vm603_vm3 = vcmask (!%p313_p2), 254977   ;;  %v5585_v13 = vld [vmem:[%s7319_s3 + $0x80] sm:$0xff] (!%p313_p2)  }
   0x9   : > { %596 = vst.msk [vmem:[#allocation2 + $0x18] sm:$0x1] (!%p313_p2), %vm592_vm0, %v5731_v12  ;;  %597 = vst.msk [vmem:[#allocation2 + $0x20] sm:$0x1] (!%p313_p2), %vm592_vm0, %v5731_v12  ;;  %v5586_v14 = vld [vmem:[%s7319_s3 + $0x88] sm:$0xff] (!%p313_p2)   ;;  %vm671_vm4 = vcmask (!%p313_p2), 257025  }
   0xa   : > { %598 = vst.msk [vmem:[#allocation2 + $0x28] sm:$0x1] (!%p313_p2), %vm592_vm0, %v5731_v12  ;;  %599 = vst.msk [vmem:[#allocation2 + $0x30] sm:$0x1] (!%p313_p2), %vm592_vm0, %v5731_v12  ;;  %v5199_v15 = vld [vmem:[%s7318_s2] ss:$0 sm:$0xff] (!%p313_p2) }
   0xb   : > { %5511 = vmatpush3.bf16.msra.mxu0 (!%p313_p2), %v5574_v1  ;;  %600 = vst.msk [vmem:[#allocation2 + $0x38] sm:$0x1] (!%p313_p2), %vm592_vm0, %v5731_v12  ;;  %601 = vst.msk [vmem:[#allocation2 + $0x40] sm:$0x1] (!%p313_p2), %vm592_vm0, %v5731_v12  ;;  %vm843_vm12 = vcmask (!%p313_p2), 1042432   ;;  %vm844_vm13 = vcmask (!%p313_p2), 1046532  }
   0xc   : > { %5512 = vmatprep.subr.bf16.mxu0 (!%p313_p2), %v5575_v2  ;;  %593 = vst.msk [vmem:[#allocation2] sm:$0x1] (!%p313_p2), %vm592_vm0, %v5731_v12  ;;  %602 = vst.msk [vmem:[#allocation2 + $0x48] sm:$0x1] (!%p313_p2), %vm592_vm0, %v5731_v12  ;;  %vm886_vm14 = vsmask.f32 (!%p313_p2), 2304 }
   0xd   : > { %s7334_s14 = smov (!%p350_p3, %s5191_s14), 1  ;;  %588 = vst.msk [vmem:[#allocation2 + $0x4] sm:$0x3] %vm587_vm2, %v5731_v12  ;;  %591 = vst.msk [vmem:[#allocation2 + $0x4c] sm:$0x3] %vm587_vm2, %v5731_v12  ;;  %s5732_s29 = smov 32  }
   0xe   : > { %s5428_s21 = sshll.u32 %s7334_s14, 5  ;;  %605 = vst.msk [vmem:[#allocation2 + $0xc] sm:$0x2] %vm603_vm3, %v5731_v12  ;;  %606 = vst.msk [vmem:[#allocation2 + $0x14] sm:$0x2] %vm603_vm3, %v5731_v12  ;;  %s5733_s16 = smov 96  }
   0xf   : > { %s354_s24 = scalar_lea.vmem %s7316_s0, %s5428_s21  ;;  %5513 = vmatpush3.bf16.msra.mxu0 %v5575_v2  ;;  %607 = vst.msk [vmem:[#allocation2 + $0x1c] sm:$0x2] %vm603_vm3, %v5731_v12  ;;  %608 = vst.msk [vmem:[#allocation2 + $0x24] sm:$0x2] %vm603_vm3, %v5731_v12  ;;  %v5876_v17 = vld [vmem:[#allocation2] sm:$0xe] }
  0x10   : > { %v5581_v4 = vld [vmem:[%s354_s24] sm:$0xff]   ;;  %5514 = vmatprep.subr.bf16.mxu0 %v5576_v3  ;;  %v5582_v9 = vld [vmem:[%s354_s24 + $0x8] sm:$0xff]   ;;  %v5583_v10 = vld [vmem:[%s354_s24 + $0x10] sm:$0xff]   ;;  %609 = vst.msk [vmem:[#allocation2 + $0x2c] sm:$0x2] %vm603_vm3, %v5731_v12  ;;  %v890_v25 = vshrl.u32 %v5876_v17, 16 }
  0x11   : > { %5524 = vmatprep.mubr.bf16.mxu0 %v5581_v4  ;;  %v5584_v11 = vld [vmem:[%s354_s24 + $0x18] sm:$0xff]   ;;  %610 = vst.msk [vmem:[#allocation2 + $0x34] sm:$0x2] %vm603_vm3, %v5731_v12  ;;  %611 = vst.msk [vmem:[#allocation2 + $0x3c] sm:$0x2] %vm603_vm3, %v5731_v12  ;;  %v893_v26 = vshll.u32 %v5876_v17, 16 }
  0x12   : > { %612 = vst.msk [vmem:[#allocation2 + $0x44] sm:$0x2] %vm603_vm3, %v5731_v12  ;;  %613 = vst.msk [vmem:[#allocation2 + $0x4c] sm:$0x2] %vm603_vm3, %v5731_v12  ;;  %v5891_v30 = vld [vmem:[#allocation2 + $0x48] sm:$0xe] }
  0x13   : > { %5515 = vmatpush3.bf16.msra.mxu0 %v5576_v3  ;;  %604 = vst.msk [vmem:[#allocation2 + $0x4] sm:$0x2] %vm603_vm3, %v5731_v12  ;;  %v892_v33 = vrot.slane %v890_v25, 5  ;;  %v895_v34 = vrot.slane %v893_v26, 6  ;;  %v1689_v36 = vshrl.u32 %v5891_v30, 16  ;;  %v1692_v37 = vshll.u32 %v5891_v30, 16  ;;  %vm5970_vm3 = vmor %vm843_vm12, %vm844_vm13 }
  0x14   : > { %5516 = vmatprep.subr.bf16.mxu0 %v5577_v5  ;;  %v5906_v51 = vld [vmem:[#allocation2 + $0x4] sm:$0x1]  ;;  %v5228_v59 = vrot.slane %v5876_v17, 9  ;;  %v1384_v2 = vld [vmem:[#allocation2 + $0x48] sm:$0xf]  ;;  %s5734_s23 = smov 64  }
  0x15   : > { %v896_v47 = vor.u32 %v895_v34, %v892_v33  ;;  %v5908_v52 = vrot.slane %v1689_v36, 5  ;;  %v5910_v53 = vrot.slane %v1692_v37, 6  ;;  %v848_v60 = vrot.slane %v5906_v51, 5  ;;  %s5735_s27 = smov 16   ;;  %s5736_s18 = smov 48  }
  0x16   : > { %vm887_vm15 = vsmask.f32 6416  ;;  %vm704_vm2 = vsmask.f32 3328  ;;  %vm2336_vm12 = vcmask 122880   ;;  %s5737_s24 = smov 80  }
  0x17   : > { %5517 = vmatpush3.bf16.msra.mxu0 %v5577_v5  ;;  %v5918_v0 = vrot.slane %v896_v47, 4  ;;  %v1695_v5 = vor.u32 %v5910_v53, %v5908_v52  ;;  %s5738_s19 = smov 112  }
  0x18   : > { %5518 = vmatprep.subr.bf16.mxu0 %v5578_v6 }
  0x19   : > { %v1561_v43 = vld [vmem:[#allocation2 + $0x4c] sm:$0x3] }
  0x1a   : > { %v878_v32 = vld [vmem:[#allocation2 + $0x4] sm:$0x3]  ;;  %v1698_v55 = vshrl.u32 %v1561_v43, 16  ;;  %v1701_v56 = vshll.u32 %v1561_v43, 16 }
  0x1b   : > { %5519 = vmatpush3.bf16.msra.mxu0 %v5578_v6  ;;  %v899_v42 = vshrl.u32 %v878_v32, 16  ;;  %v902_v48 = vshll.u32 %v878_v32, 16 }
  0x1c   : > { %5520 = vmatprep.subr.bf16.mxu0 %v5579_v7  ;;  %v5924_v6 = vrot.slane %v1698_v55, 5 }
  0x1d   : > { %v5916_v61 = vrot.slane %v899_v42, 5  ;;  %v5920_v1 = vrot.slane %v902_v48, 6 }
  0x1f   : > { %5521 = vmatpush3.bf16.msra.mxu0 %v5579_v7  ;;  %v5926_v7 = vrot.slane %v1701_v56, 6 }
  0x20   : > { %5522 = vmatprep.subr.bf16.mxu0 %v5580_v8 }
  0x23   : > { %5523 = vmatpush3.bf16.msra.mxu0 %v5580_v8 }
  0x24   : > { %5532 = vmatprep.subr.bf16.mxu0 %v5585_v13 }
  0x26   : > { %5525 = vmatmul.mubr.bf16.vlgmr.msra.gmra.mrb[0].mxu0 %v5582_v9 }
  0x27   : > { %5528 = vmatprep.mubr.bf16.mxu0 %v5583_v10  ;;  %5533 = vmatpush3.bf16.msra.mxu0 %v5585_v13 }
  0x28   : > { %5534 = vmatprep.subr.bf16.mxu0 %v5586_v14 }
  0x2b   : > { %5535 = vmatpush3.bf16.msra.mxu0 %v5586_v14  ;;  %v1485_v14 = vshrl.u32 %v1384_v2, 16 }
  0x2d   : > { %v5939_v32 = vrot.slane %v1485_v14, 4 }
  0x2e   : > { %5529 = vmatmul.mubr.bf16.gmra.mrb[4].mxu0 %v5584_v11 }
  0xf9   : > { %v5526_v16 = vpop.f32.mrb[0].mxu0 }
  0xfa   : > { %v5878_v18 = vadd.f32 %v5526_v16, %v5199_v15  ;;  %v498_v19 = vpop.f32.mrb[1].mxu0 }
  0xfb   : > { %v5880_v20 = vadd.f32 %v5199_v15, %v498_v19  ;;  %v5527_v21 = vpop.f32.mrb[2].mxu0 }
  0xfc   : > { %v541_v22 = vmul.f32 1.442695, %v5878_v18  ;;  %v5883_v23 = vadd.f32 %v5527_v21, %v5199_v15  ;;  %v501_v24 = vpop.f32.mrb[3].mxu0  ;;  %vm531_vm5 = vcmp.gt.f32.partialorder %v5878_v18, 0.0 }
  0xfd   : > { %v537_v27 = vmul.f32 1.442695, %v5880_v20  ;;  %v5888_v28 = vadd.f32 %v5199_v15, %v501_v24  ;;  %vm529_vm6 = vcmp.gt.f32.partialorder %v5880_v20, 0.0  ;;  %v1488_v24 = vshll.u32 %v1384_v2, 16 }
  0xfe   : > { %5625 = vpow2.f32 %v541_v22  ;;  %v543_v29 = vmul.f32 1.442695, %v5883_v23  ;;  %vm532_vm7 = vcmp.gt.f32.partialorder %v5883_v23, 0.0 }
  0xff   : > { %5627 = vpow2.f32 %v537_v27  ;;  %v539_v31 = vmul.f32 1.442695, %v5888_v28  ;;  %vm530_vm8 = vcmp.gt.f32.partialorder %v5888_v28, 0.0 }
 0x100   : > { %5629 = vpow2.f32 %v543_v29 }
 0x101   : > { %5631 = vpow2.f32 %v539_v31  ;;  %v5530_v35 = vpop.f32.mrb[4].mxu0 }
 0x102   : > { %v5896_v38 = vadd.f32 %v5530_v35, %v5199_v15  ;;  %v514_v39 = vpop.f32.mrb[5].mxu0 }
 0x103   : > { %v5898_v40 = vadd.f32 %v5199_v15, %v514_v39  ;;  %v5531_v41 = vpop.f32.mrb[6].mxu0 }
 0x104   : > { %v549_v44 = vmul.f32 1.442695, %v5896_v38  ;;  %v5901_v45 = vadd.f32 %v5531_v41, %v5199_v15  ;;  %v517_v46 = vpop.f32.mrb[7].mxu0  ;;  %vm535_vm9 = vcmp.gt.f32.partialorder %v5896_v38, 0.0  ;;  %v1490_v41 = vrot.slane %v1488_v24, 5 }
 0x105   : > { %v545_v49 = vmul.f32 1.442695, %v5898_v40  ;;  %v5904_v50 = vadd.f32 %v5199_v15, %v517_v46  ;;  %vm533_vm10 = vcmp.gt.f32.partialorder %v5898_v40, 0.0 }
 0x106   : > { %5633 = vpow2.f32 %v549_v44  ;;  %v551_v54 = vmul.f32 1.442695, %v5901_v45  ;;  %vm536_vm11 = vcmp.gt.f32.partialorder %v5901_v45, 0.0  ;;  %v1491_v14 = vor.u32 %v1490_v41, %v5939_v32 }
 0x107   : > { %5635 = vpow2.f32 %v545_v49  ;;  %v547_v57 = vmul.f32 1.442695, %v5904_v50  ;;  %vm534_vm1 = vcmp.gt.f32.partialorder %v5904_v50, 0.0 }
 0x108   : > { %v5626_v58 = vpop.eup %5625  ;;  %5637 = vpow2.f32 %v551_v54 }
 0x109   : > { %v5628_v62 = vpop.eup %5627  ;;  %v5214_v63 = vadd.f32 -1.0, %v5626_v58  ;;  %5639 = vpow2.f32 %v547_v57 }
 0x10a   : > { %v5630_v3 = vpop.eup %5629  ;;  %v5212_v4 = vadd.f32 -1.0, %v5628_v62  ;;  %v5947_v62 = vld [vmem:[#allocation2 + $0x4c] sm:$0x1] }
 0x10b   : > { %v5632_v8 = vpop.eup %5631  ;;  %v563_v9 = vmul.f32 1.6732632, %v5214_v63  ;;  %v5215_v10 = vadd.f32 -1.0, %v5630_v3 }
 0x10c   : > { %v561_v11 = vmul.f32 1.6732632, %v5212_v4  ;;  %v5213_v13 = vadd.f32 -1.0, %v5632_v8 }
 0x10d   : > { %v571_v15 = vsel %vm531_vm5, %v5878_v18, %v563_v9  ;;  %v564_v16 = vmul.f32 1.6732632, %v5215_v10  ;;  %v1494_v10 = vshll.u32 %v5947_v62, 16  ;;  %vm705_vm5 = vsmask.f32 7440 }
 0x10e   : > { %v579_v19 = vmul.f32 1.050701, %v571_v15  ;;  %v569_v21 = vsel %vm529_vm6, %v5880_v20, %v561_v11  ;;  %v562_v22 = vmul.f32 1.6732632, %v5213_v13  ;;  %vm5983_vm6 = vmor %vm886_vm14, %vm887_vm15 }
 0x10f   : > { %v577_v25 = vmul.f32 1.050701, %v569_v21  ;;  %v572_v26 = vsel %vm532_vm7, %v5883_v23, %v564_v16  ;;  %vm6024_vm7 = vmor %vm704_vm2, %vm705_vm5  ;;  %vm3524_vm2 = vcmask 130048  }
 0x110   : > { %v5634_v18 = vpop.eup %5633  ;;  %v5431_v27 = vpack.c.bf16 %v579_v19, %v579_v19  ;;  %v580_v29 = vmul.f32 1.050701, %v572_v26  ;;  %v570_v31 = vsel %vm530_vm8, %v5888_v28, %v562_v22  ;;  %v905_v19 = vor.u32 %v5920_v1, %v5916_v61 }
 0x111   : > { %v5636_v20 = vpop.eup %5635  ;;  %v5429_v33 = vpack.c.bf16 %v577_v25, %v577_v25  ;;  %v578_v34 = vmul.f32 1.050701, %v570_v31  ;;  %v5218_v35 = vadd.f32 -1.0, %v5634_v18  ;;  %v1704_v1 = vor.u32 %v5926_v7, %v5924_v6 }
 0x112   : > { %v5638_v23 = vpop.eup %5637  ;;  %v642_v36 = vrot.slane %v5431_v27, 7  ;;  %v5432_v37 = vpack.c.bf16 %v580_v29, %v580_v29  ;;  %v5216_v39 = vadd.f32 -1.0, %v5636_v20  ;;  %v5989_v27 = vrot.slane %v1494_v10, 5 }
 0x113   : > { %v5640_v42 = vpop.eup %5639  ;;  %v638_v43 = vrot.slane %v5429_v33, 7  ;;  %v5430_v44 = vpack.c.bf16 %v578_v34, %v578_v34  ;;  %v567_v46 = vmul.f32 1.6732632, %v5218_v35  ;;  %v5219_v28 = vadd.f32 -1.0, %v5638_v23 }
 0x114   : > { %v643_v47 = vrot.slane %v642_v36, 4  ;;  %676 = vst.msk [vmem:[#allocation2 + $0x18] sm:$0xe] %vm671_vm4, %v642_v36  ;;  %v644_v48 = vrot.slane %v5432_v37, 7  ;;  %v565_v49 = vmul.f32 1.6732632, %v5216_v39  ;;  %v849_v23 = vsel %vm5970_vm3, %v5228_v59, %v848_v60 }
 0x115   : > { %v5217_v54 = vadd.f32 -1.0, %v5640_v42  ;;  %v639_v55 = vrot.slane %v638_v43, 4  ;;  %672 = vst.msk [vmem:[#allocation2 + $0x8] sm:$0xe] %vm671_vm4, %v638_v43  ;;  %v640_v56 = vrot.slane %v5430_v44, 7  ;;  %v575_v57 = vsel %vm535_vm9, %v5896_v38, %v567_v46 }
 0x116   : > { %v568_v58 = vmul.f32 1.6732632, %v5219_v28  ;;  %677 = vst.msk [vmem:[#allocation2 + $0x1c] sm:$0x1] %vm592_vm0, %v643_v47  ;;  %v645_v63 = vrot.slane %v644_v48, 4  ;;  %v573_v3 = vsel %vm533_vm10, %v5898_v40, %v565_v49  ;;  %v5251_v31 = vrot.slane %v5891_v30, 9 }
 0x117   : > { %678 = vst.msk [vmem:[#allocation2 + $0x20] sm:$0xe] %vm671_vm4, %v644_v48  ;;  %v583_v2 = vmul.f32 1.050701, %v575_v57  ;;  %v566_v4 = vmul.f32 1.6732632, %v5217_v54  ;;  %v6014_v39 = vsel %vm5983_vm6, %v5918_v0, %v905_v19 }
 0x118   : > { %673 = vst.msk [vmem:[#allocation2 + $0xc] sm:$0x1] %vm592_vm0, %v639_v55  ;;  %v641_v8 = vrot.slane %v640_v56, 4  ;;  %v581_v38 = vmul.f32 1.050701, %v573_v3  ;;  %v576_v9 = vsel %vm536_vm11, %v5901_v45, %v568_v58  ;;  %v1552_v6 = vrot.slane %v5947_v62, 5 }
 0x119   : > { %674 = vst.msk [vmem:[#allocation2 + $0x10] sm:$0xe] %vm671_vm4, %v640_v56  ;;  %v5435_v11 = vpack.c.bf16 %v583_v2, %v583_v2  ;;  %v584_v13 = vmul.f32 1.050701, %v576_v9  ;;  %v574_v40 = vsel %vm534_vm1, %v5904_v50, %v566_v4  ;;  %v1696_v50 = vrot.slane %v1695_v5, 4  ;;  %v5587_v57 = vld [vmem:[%s7319_s3 + $0x40] sm:$0xff]  }
 0x11a   : > { %679 = vst.msk [vmem:[#allocation2 + $0x24] sm:$0x1] %vm592_vm0, %v645_v63  ;;  %675 = vst.msk [vmem:[#allocation2 + $0x14] sm:$0x1] %vm592_vm0, %v641_v8  ;;  %v5433_v15 = vpack.c.bf16 %v581_v38, %v581_v38  ;;  %v582_v16 = vmul.f32 1.050701, %v574_v40  ;;  %5457 = vmatprep.subr.bf16.mxu1 %v5587_v57 }
 0x11b   : > { %v650_v45 = vrot.slane %v5435_v11, 7  ;;  %v5436_v21 = vpack.c.bf16 %v584_v13, %v584_v13  ;;  %v5977_v26 = vld [vmem:[#allocation2 + $0x18] sm:$0xe]  ;;  %v5994_v5 = vrot.slane %v1491_v14, 4  ;;  %v6034_v28 = vsel %vm5983_vm6, %v1696_v50, %v1704_v1  ;;  %v5588_v8 = vld [vmem:[%s7319_s3] sm:$0xff]   ;;  %v5589_v40 = vld [vmem:[%s7319_s3 + $0x48] sm:$0xff]  }
 0x11c   : > { %v646_v24 = vrot.slane %v5433_v15, 7  ;;  %v5434_v25 = vpack.c.bf16 %v582_v16, %v582_v16  ;;  %v5979_v18 = vld [vmem:[#allocation2 + $0x18] sm:$0xe]  ;;  %v5992_v53 = vld [vmem:[#allocation2 + $0x8] sm:$0xe]  ;;  %v5231_v34 = vrot.slane %v5977_v26, 9  ;;  %5458 = vmatpush3.bf16.msra.mxu1 %v5588_v8 }
 0x11d   : > { %v651_v29 = vrot.slane %v650_v45, 4  ;;  %684 = vst.msk [vmem:[#allocation2 + $0x38] sm:$0xe] %vm671_vm4, %v650_v45  ;;  %v652_v52 = vrot.slane %v5436_v21, 7  ;;  %v695_v33 = vld [vmem:[#allocation2 + $0x1c] sm:$0x1]  ;;  %v1497_v47 = vsel %vm6024_vm7, %v5994_v5, %v5989_v27  ;;  %5459 = vmatprep.subr.bf16.mxu1 %v5589_v40 }
 0x11e   : > { %v647_v32 = vrot.slane %v646_v24, 4  ;;  %680 = vst.msk [vmem:[#allocation2 + $0x28] sm:$0xe] %vm671_vm4, %v646_v24  ;;  %v648_v20 = vrot.slane %v5434_v25, 7  ;;  %v5245_v37 = vrot.slane %v5979_v18, 9  ;;  %v5229_v51 = vrot.slane %v5992_v53, 9 }
 0x11f   : > { %685 = vst.msk [vmem:[#allocation2 + $0x3c] sm:$0x1] %vm592_vm0, %v651_v29  ;;  %v653_v7 = vrot.slane %v652_v52, 4  ;;  %v691_v35 = vld [vmem:[#allocation2 + $0xc] sm:$0x1]  ;;  %v1581_v59 = vshrl.u32 %v5979_v18, 16 }
 0x120   : > { %686 = vst.msk [vmem:[#allocation2 + $0x40] sm:$0xe] %vm671_vm4, %v652_v52  ;;  %v6008_v36 = vld [vmem:[#allocation2 + $0x10] sm:$0xe]  ;;  %v649_v41 = vrot.slane %v648_v20, 4  ;;  %v852_v17 = vrot.slane %v691_v35, 5 }
 0x121   : > { %681 = vst.msk [vmem:[#allocation2 + $0x2c] sm:$0x1] %vm592_vm0, %v647_v32  ;;  %v6019_v42 = vld [vmem:[#allocation2 + $0x1c] sm:$0x1]  ;;  %687 = vst.msk [vmem:[#allocation2 + $0x44] sm:$0x1] %vm592_vm0, %v653_v7 }
 0x122   : > { %682 = vst.msk [vmem:[#allocation2 + $0x30] sm:$0xe] %vm671_vm4, %v648_v20  ;;  %v693_v0 = vld [vmem:[#allocation2 + $0x14] sm:$0x1]  ;;  %v860_v43 = vrot.slane %v695_v33, 5  ;;  %v1528_v46 = vrot.slane %v6019_v42, 5  ;;  %v853_v48 = vsel %vm5970_vm3, %v5229_v51, %v852_v17 }
 0x123   : > { %v6029_v44 = vld [vmem:[#allocation2 + $0x14] sm:$0x1]  ;;  %683 = vst.msk [vmem:[#allocation2 + $0x34] sm:$0x1] %vm592_vm0, %v649_v41  ;;  %v5230_v49 = vrot.slane %v6008_v36, 9  ;;  %v856_v54 = vrot.slane %v693_v0, 5  ;;  %v5256_v58 = vcombine.low %v849_v23, %v853_v48 }
 0x124   : > { %v1498_v55 = vld [vmem:[#allocation2 + $0x10] sm:$0xe]  ;;  %v1524_v56 = vrot.slane %v6029_v44, 5  ;;  %v861_v63 = vsel %vm5970_vm3, %v5231_v34, %v860_v43  ;;  %v1529_v3 = vsel %vm5970_vm3, %v5245_v37, %v1528_v46  ;;  %v1554_v4 = vld [vmem:[#allocation2 + $0x14] sm:$0x3]  ;;  %v1583_v19 = vrot.slane %v1581_v59, 5 }
 0x125   : > { %v5244_v2 = vrot.slane %v1498_v55, 9  ;;  %v857_v38 = vsel %vm5970_vm3, %v5230_v49, %v856_v54  ;;  %v1555_v9 = vld [vmem:[#allocation2 + $0x1c] sm:$0x3]  ;;  %v1563_v10 = vshrl.u32 %v1498_v55, 16  ;;  %v1566_v11 = vshll.u32 %v1498_v55, 16  ;;  %1730 = vrot.lane.b32.xlu0 %v5256_v58, %s5732_s29  ;;  %v5590_v1 = vld [vmem:[%s7319_s3 + $0x8] sm:$0xff]  }
 0x126   : > { %v1572_v13 = vshrl.u32 %v1554_v4, 16  ;;  %v5257_v14 = vcombine.low %v857_v38, %v861_v63  ;;  %v1575_v16 = vshll.u32 %v1554_v4, 16  ;;  %v879_v45 = vld [vmem:[#allocation2 + $0xc] sm:$0x3]  ;;  %v1584_v52 = vshll.u32 %v5979_v18, 16  ;;  %v5591_v37 = vld [vmem:[%s7319_s3 + $0x50] sm:$0xff]   ;;  %5460 = vmatpush3.bf16.msra.mxu1 %v5590_v1 }
 0x127   : > { %v1525_v15 = vsel %vm5970_vm3, %v5244_v2, %v1524_v56  ;;  %v1565_v50 = vrot.slane %v1563_v10, 5  ;;  %v1568_v24 = vrot.slane %v1566_v11, 6  ;;  %v1590_v32 = vshrl.u32 %v1555_v9, 16  ;;  %v1163_v23 = vld [vmem:[#allocation2 + $0x18] sm:$0xe]  ;;  %v5592_v0 = vld [vmem:[%s7319_s3 + $0x10] sm:$0xff]   ;;  %5461 = vmatprep.subr.bf16.mxu1 %v5591_v37 }
 0x128   : > { %v5280_v21 = vcombine.low %v1525_v15, %v1529_v3  ;;  %v1574_v25 = vrot.slane %v1572_v13, 5  ;;  %1732 = vrot.lane.b32.xlu1 %v5257_v14, %s5732_s29  ;;  %v1577_v29 = vrot.slane %v1575_v16, 6  ;;  %v1593_v20 = vshll.u32 %v1555_v9, 16  ;;  %v1219_v59 = vld [vmem:[#allocation2 + $0x1c] sm:$0x3] }
 0x129   : > { %vm1862_vm0 = vcmask 261120   ;;  %v1569_v33 = vor.u32 %v1568_v24, %v1565_v50  ;;  %v908_v34 = vshrl.u32 %v5992_v53, 16  ;;  %v911_v7 = vshll.u32 %v5992_v53, 16  ;;  %v1164_v56 = vld [vmem:[#allocation2 + $0x20] sm:$0xe] }
 0x12a   : > { %v917_v35 = vshrl.u32 %v879_v45, 16  ;;  %1842 = vrot.lane.b32.xlu0 %v5280_v21, %s5733_s16  ;;  %v1578_v41 = vor.u32 %v1577_v29, %v1574_v25  ;;  %v1586_v51 = vrot.slane %v1584_v52, 6  ;;  %v1592_v18 = vrot.slane %v1590_v32, 5  ;;  %v1220_v38 = vld [vmem:[#allocation2 + $0x24] sm:$0x3]  ;;  %5462 = vmatpush3.bf16.msra.mxu1 %v5592_v0 }
 0x12b   : > { %v1595_v17 = vrot.slane %v1593_v20, 6  ;;  %v1570_v53 = vrot.slane %v1569_v33, 4  ;;  %v910_v43 = vrot.slane %v908_v34, 5  ;;  %v913_v46 = vrot.slane %v911_v7, 6  ;;  %v1037_v21 = vld [vmem:[#allocation2 + $0x18] sm:$0xf] }
 0x12c   : > { %v919_v48 = vrot.slane %v917_v35, 5  ;;  %v1587_v49 = vor.u32 %v1586_v51, %v1583_v19  ;;  %v920_v55 = vshll.u32 %v879_v45, 16  ;;  %v1262_v57 = vshrl.u32 %v1163_v23, 16  ;;  %v1038_v29 = vld [vmem:[#allocation2 + $0x1c] sm:$0x1] }
 0x12d   : > { %v1596_v54 = vor.u32 %v1595_v17, %v1592_v18  ;;  %v1579_v58 = vsel %vm5983_vm6, %v1570_v53, %v1578_v41  ;;  %v914_v63 = vor.u32 %v913_v46, %v910_v43  ;;  %v1265_v2 = vshll.u32 %v1163_v23, 16  ;;  %v1039_v34 = vld [vmem:[#allocation2 + $0x20] sm:$0xf]  ;;  %v1040_v37 = vld [vmem:[#allocation2 + $0x24] sm:$0x1]  ;;  %v5593_v51 = vld [vmem:[%s7319_s3 + $0x58] sm:$0xff]  }
 0x12e   : > { %v1271_v3 = vshrl.u32 %v1219_v59, 16  ;;  %v1588_v4 = vrot.slane %v1587_v49, 4  ;;  %v922_v8 = vrot.slane %v920_v55, 6  ;;  %v1264_v9 = vrot.slane %v1262_v57, 5  ;;  %v6088_v53 = vld [vmem:[#allocation2 + $0x20] sm:$0xe]  ;;  %5463 = vmatprep.subr.bf16.mxu1 %v5593_v51 }
 0x12f   : > { %v1274_v10 = vshll.u32 %v1219_v59, 16  ;;  %v915_v11 = vrot.slane %v914_v63, 4  ;;  %v1267_v13 = vrot.slane %v1265_v2, 6  ;;  %v1280_v14 = vshrl.u32 %v1164_v56, 16  ;;  %v5594_v43 = vld [vmem:[%s7319_s3 + $0x18] sm:$0xff]   ;;  %v5595_v55 = vld [vmem:[%s7319_s3 + $0x60] sm:$0xff]  }
 0x130   : > { %v1273_v40 = vrot.slane %v1271_v3, 5  ;;  %v1597_v15 = vsel %vm5983_vm6, %v1588_v4, %v1596_v54  ;;  %v923_v16 = vor.u32 %v922_v8, %v919_v48  ;;  %v1283_v45 = vshll.u32 %v1164_v56, 16  ;;  %v1556_v54 = vld [vmem:[#allocation2 + $0x24] sm:$0x3]  ;;  %5464 = vmatpush3.bf16.msra.mxu1 %v5594_v43 }
 0x131   : > { %v1276_v19 = vrot.slane %v1274_v10, 6  ;;  %v5284_v50 = vcombine.low %v1579_v58, %v1597_v15  ;;  %v1268_v24 = vor.u32 %v1267_v13, %v1264_v9  ;;  %v1282_v25 = vrot.slane %v1280_v14, 5  ;;  %v5596_v2 = vld [vmem:[%s7319_s3 + $0x20] sm:$0xff]   ;;  %5465 = vmatprep.subr.bf16.mxu1 %v5595_v55  ;;  %v1557_v13 = vld [vmem:[#allocation2 + $0x2c] sm:$0x3] }
 0x132   : > { %v1289_v1 = vshrl.u32 %v1220_v38, 16  ;;  %v924_v52 = vsel %vm5983_vm6, %v915_v11, %v923_v16  ;;  %v1285_v20 = vrot.slane %v1283_v45, 6  ;;  %v1292_v33 = vshll.u32 %v1220_v38, 16  ;;  %v6105_v11 = vld [vmem:[#allocation2 + $0x28] sm:$0xe] }
 0x133   : > { %v1277_v32 = vor.u32 %v1276_v19, %v1273_v40  ;;  %5536 = vmatprep.mubr.msk.bf16.mxu0 %vm1862_vm0, %v5284_v50  ;;  %v5260_v7 = vcombine.low %v6014_v39, %v924_v52  ;;  %v1269_v35 = vrot.slane %v1268_v24, 4  ;;  %v1078_v41 = vshrl.u32 %v1037_v21, 16 }
 0x134   : > { %v1291_v23 = vrot.slane %v1289_v1, 5  ;;  %v1286_v18 = vor.u32 %v1285_v20, %v1282_v25  ;;  %v1294_v17 = vrot.slane %v1292_v33, 6  ;;  %v1081_v59 = vshll.u32 %v1037_v21, 16  ;;  %5466 = vmatpush3.bf16.msra.mxu1 %v5596_v2 }
 0x135   : > { %v1087_v0 = vshll.u32 %v1038_v29, 16  ;;  %1750 = vrot.lane.b32.xlu1 %v5260_v7, %s5734_s23  ;;  %v1278_v39 = vsel %vm5983_vm6, %v1269_v35, %v1277_v32  ;;  %v1080_v46 = vrot.slane %v1078_v41, 4  ;;  %v1092_v48 = vshrl.u32 %v1039_v34, 16  ;;  %v6113_v35 = vld [vmem:[#allocation2 + $0x8] sm:$0xe] }
 0x136   : > { %v1095_v49 = vshll.u32 %v1039_v34, 16  ;;  %v1287_v56 = vrot.slane %v1286_v18, 4  ;;  %v1295_v57 = vor.u32 %v1294_v17, %v1291_v23  ;;  %v1083_v58 = vrot.slane %v1081_v59, 5  ;;  %v1217_v23 = vld [vmem:[#allocation2 + $0xc] sm:$0x3] }
 0x137   : > { %v1089_v63 = vrot.slane %v1087_v0, 5  ;;  %v1094_v3 = vrot.slane %v1092_v48, 4  ;;  %v1101_v8 = vshll.u32 %v1040_v37, 16  ;;  %v1599_v38 = vshrl.u32 %v6088_v53, 16  ;;  %v6117_v17 = vld [vmem:[#allocation2 + $0x10] sm:$0xe] }
 0x138   : > { %v1097_v4 = vrot.slane %v1095_v49, 5  ;;  %v1296_v9 = vsel %vm5983_vm6, %v1287_v56, %v1295_v57  ;;  %v1084_v10 = vor.u32 %v1083_v58, %v1080_v46  ;;  %v1602_v40 = vshll.u32 %v6088_v53, 16  ;;  %v5597_v59 = vld [vmem:[%s7319_s3 + $0x68] sm:$0xff]   ;;  %v1218_v49 = vld [vmem:[#allocation2 + $0x14] sm:$0x3] }
 0x139   : > { %v1608_v14 = vshrl.u32 %v1556_v54, 16  ;;  %v5273_v15 = vcombine.low %v1278_v39, %v1296_v9  ;;  %v1103_v19 = vrot.slane %v1101_v8, 5  ;;  %v1601_v45 = vrot.slane %v1599_v38, 5  ;;  %5467 = vmatprep.subr.bf16.mxu1 %v5597_v59  ;;  %v5598_v57 = vld [vmem:[%s7319_s3 + $0x28] sm:$0xff]  }
 0x13a   : > { %v1098_v16 = vor.u32 %v1097_v4, %v1094_v3  ;;  %v1085_v21 = vrot.slane %v1084_v10, 4  ;;  %v1604_v50 = vrot.slane %v1602_v40, 6  ;;  %v1611_v25 = vshll.u32 %v1556_v54, 16  ;;  %v6131_v4 = vld [vmem:[#allocation2 + $0x30] sm:$0xe]  ;;  %5468 = vmatpush3.bf16.msra.mxu1 %v5598_v57 }
 0x13b   : > { %v1610_v24 = vrot.slane %v1608_v14, 5  ;;  %1804 = vrot.lane.b32.xlu0 %v5273_v15, %s5732_s29  ;;  %v1617_v29 = vshrl.u32 %v6105_v11, 16  ;;  %v1620_v52 = vshll.u32 %v6105_v11, 16  ;;  %v1626_v32 = vshrl.u32 %v1557_v13, 16 }
 0x13c   : > { %v1099_v1 = vrot.slane %v1098_v16, 4  ;;  %v1090_v20 = vsel %vm6024_vm7, %v1085_v21, %v1089_v63  ;;  %v1605_v33 = vor.u32 %v1604_v50, %v1601_v45  ;;  %v1613_v34 = vrot.slane %v1611_v25, 6  ;;  %v6136_v21 = vld [vmem:[#allocation2 + $0x38] sm:$0xe]  ;;  %v1558_v50 = vld [vmem:[#allocation2 + $0x34] sm:$0x3] }
 0x13d   : > { %v1629_v7 = vshll.u32 %v1557_v13, 16  ;;  %v1619_v41 = vrot.slane %v1617_v29, 5  ;;  %v1622_v51 = vrot.slane %v1620_v52, 6  ;;  %v1628_v18 = vrot.slane %v1626_v32, 5 }
 0x13e   : > { %v1104_v37 = vsel %vm6024_vm7, %v1099_v1, %v1103_v19  ;;  %v1606_v43 = vrot.slane %v1605_v33, 4  ;;  %v1614_v39 = vor.u32 %v1613_v34, %v1610_v24  ;;  %v1226_v54 = vshrl.u32 %v6113_v35, 16 }
 0x13f   : > { %v5265_v0 = vcombine.low %v1090_v20, %v1104_v37  ;;  %v1631_v46 = vrot.slane %v1629_v7, 6  ;;  %v1623_v48 = vor.u32 %v1622_v51, %v1619_v41  ;;  %v1229_v55 = vshll.u32 %v6113_v35, 16 }
 0x140   : > { %v1235_v56 = vshrl.u32 %v1217_v23, 16  ;;  %v1615_v58 = vsel %vm5983_vm6, %v1606_v43, %v1614_v39  ;;  %v1238_v2 = vshll.u32 %v1217_v23, 16  ;;  %v1244_v3 = vshrl.u32 %v6117_v17, 16  ;;  %v1559_v23 = vld [vmem:[#allocation2 + $0x3c] sm:$0x3] }
 0x141   : > { %1772 = vrot.lane.b32.xlu1 %v5265_v0, %s5733_s16  ;;  %v1632_v63 = vor.u32 %v1631_v46, %v1628_v18  ;;  %v1624_v8 = vrot.slane %v1623_v48, 4  ;;  %v1228_v38 = vrot.slane %v1226_v54, 5  ;;  %v1231_v9 = vrot.slane %v1229_v55, 6  ;;  %v5599_v18 = vld [vmem:[%s7319_s3 + $0x70] sm:$0xff]  }
 0x142   : > { %v1237_v10 = vrot.slane %v1235_v56, 5  ;;  %v1240_v13 = vrot.slane %v1238_v2, 6  ;;  %v1246_v40 = vrot.slane %v1244_v3, 5  ;;  %v1247_v14 = vshll.u32 %v6117_v17, 16  ;;  %v1370_v46 = vld [vmem:[#allocation2 + $0x10] sm:$0xf]  ;;  %5469 = vmatprep.subr.bf16.mxu1 %v5599_v18 }
 0x143   : > { %v1253_v15 = vshrl.u32 %v1218_v49, 16  ;;  %v1633_v16 = vsel %vm5983_vm6, %v1624_v8, %v1632_v63  ;;  %v1232_v19 = vor.u32 %v1231_v9, %v1228_v38  ;;  %v1256_v45 = vshll.u32 %v1218_v49, 16  ;;  %v5600_v2 = vld [vmem:[%s7319_s3 + $0x30] sm:$0xff]   ;;  %v1372_v38 = vld [vmem:[#allocation2 + $0x18] sm:$0xf] }
 0x144   : > { %v1635_v24 = vshrl.u32 %v6131_v4, 16  ;;  %v5285_v25 = vcombine.low %v1615_v58, %v1633_v16  ;;  %v1241_v1 = vor.u32 %v1240_v13, %v1237_v10  ;;  %v1249_v29 = vrot.slane %v1247_v14, 6  ;;  %5470 = vmatpush3.bf16.msra.mxu1 %v5600_v2 }
 0x145   : > { %v1255_v52 = vrot.slane %v1253_v15, 5  ;;  %v1233_v32 = vrot.slane %v1232_v19, 4  ;;  %v1258_v20 = vrot.slane %v1256_v45, 6  ;;  %v1638_v34 = vshll.u32 %v6131_v4, 16 }
 0x146   : > { %v1637_v33 = vrot.slane %v1635_v24, 5  ;;  %5537 = vmatmul.mubr.msk.bf16.vlgmr.msra.gmra.mrb[8].mxu0 %vm1862_vm0, %v5285_v25  ;;  %v1250_v7 = vor.u32 %v1249_v29, %v1246_v40  ;;  %v1644_v37 = vshrl.u32 %v1558_v50, 16  ;;  %v1647_v41 = vshll.u32 %v1558_v50, 16  ;;  %v6154_v24 = vld [vmem:[#allocation2 + $0x24] sm:$0x1] }
 0x147   : > { %v1653_v51 = vshrl.u32 %v6136_v21, 16  ;;  %v1242_v59 = vsel %vm5983_vm6, %v1233_v32, %v1241_v1  ;;  %v1259_v0 = vor.u32 %v1258_v20, %v1255_v52  ;;  %v1640_v43 = vrot.slane %v1638_v34, 6  ;;  %v5601_v32 = vld [vmem:[%s7319_s3 + $0x78] sm:$0xff]  }
 0x148   : > { %v1656_v39 = vshll.u32 %v6136_v21, 16  ;;  %v1251_v48 = vrot.slane %v1250_v7, 4  ;;  %v1646_v49 = vrot.slane %v1644_v37, 5  ;;  %v1649_v54 = vrot.slane %v1647_v41, 6  ;;  %5471 = vmatprep.subr.bf16.mxu1 %v5601_v32  ;;  %v6195_v32 = vld [vmem:[#allocation2 + $0x34] sm:$0x1] }
 0x149   : > { %v1655_v55 = vrot.slane %v1653_v51, 5  ;;  %v1641_v56 = vor.u32 %v1640_v43, %v1637_v33  ;;  %v1662_v58 = vshrl.u32 %v1559_v23, 16  ;;  %v1665_v63 = vshll.u32 %v1559_v23, 16  ;;  %v1033_v23 = vld [vmem:[#allocation2 + $0x8] sm:$0xf] }
 0x14a   : > { %v1658_v57 = vrot.slane %v1656_v39, 6  ;;  %v1260_v3 = vsel %vm5983_vm6, %v1251_v48, %v1259_v0  ;;  %v1650_v8 = vor.u32 %v1649_v54, %v1646_v49  ;;  %v1387_v9 = vshrl.u32 %v1370_v46, 16  ;;  %v5602_v48 = vld [vmem:[%s7319_s3 + $0x38] sm:$0xff]  }
 0x14b   : > { %v1390_v10 = vshll.u32 %v1370_v46, 16  ;;  %v5272_v13 = vcombine.low %v1242_v59, %v1260_v3  ;;  %v1642_v40 = vrot.slane %v1641_v56, 4  ;;  %v1664_v15 = vrot.slane %v1662_v58, 5  ;;  %v6167_v59 = vld [vmem:[#allocation2 + $0xc] sm:$0x1]  ;;  %5472 = vmatpush3.bf16.msra.mxu1 %v5602_v48 }
 0x14c   : > { %v1659_v14 = vor.u32 %v1658_v57, %v1655_v55  ;;  %v1667_v16 = vrot.slane %v1665_v63, 6  ;;  %v1389_v19 = vrot.slane %v1387_v9, 4  ;;  %v1396_v50 = vshll.u32 %v6029_v44, 16  ;;  %v6163_v44 = vld [vmem:[#allocation2 + $0x2c] sm:$0x1]  ;;  %3683 = vmatprep.subr.bf16.mxu1 %v5731_v12 }
 0x14d   : > { %v1392_v45 = vrot.slane %v1390_v10, 5  ;;  %1802 = vrot.lane.b32.xlu0 %v5272_v13, %s5732_s29  ;;  %v1651_v25 = vsel %vm5983_vm6, %v1642_v40, %v1650_v8  ;;  %v1401_v29 = vshrl.u32 %v1372_v38, 16  ;;  %v1404_v52 = vshll.u32 %v1372_v38, 16  ;;  %v6180_v57 = vld [vmem:[#allocation2 + $0x14] sm:$0x1] }
 0x14e   : > { %v1660_v1 = vrot.slane %v1659_v14, 4  ;;  %v1668_v20 = vor.u32 %v1667_v16, %v1664_v15  ;;  %v1398_v34 = vrot.slane %v1396_v50, 5  ;;  %v1410_v7 = vshll.u32 %v6019_v42, 16  ;;  %v1035_v42 = vld [vmem:[#allocation2 + $0x10] sm:$0xf] }
 0x14f   : > { %v1393_v33 = vor.u32 %v1392_v45, %v1389_v19  ;;  %v1403_v37 = vrot.slane %v1401_v29, 4  ;;  %v1406_v41 = vrot.slane %v1404_v52, 5  ;;  %v5246_v51 = vrot.slane %v6088_v53, 9  ;;  %v6186_v9 = vld [vmem:[#allocation2 + $0x40] sm:$0xe] }
 0x150   : > { %v1532_v18 = vrot.slane %v6154_v24, 5  ;;  %v1669_v0 = vsel %vm5983_vm6, %v1660_v1, %v1668_v20  ;;  %v1412_v39 = vrot.slane %v1410_v7, 5  ;;  %v5247_v46 = vrot.slane %v6105_v11, 9  ;;  %v1560_v15 = vld [vmem:[#allocation2 + $0x44] sm:$0x3] }
 0x151   : > { %v1394_v43 = vrot.slane %v1393_v33, 4  ;;  %v5286_v49 = vcombine.low %v1651_v25, %v1669_v0  ;;  %v1407_v54 = vor.u32 %v1406_v41, %v1403_v37  ;;  %v1536_v55 = vrot.slane %v6163_v44, 5 }
 0x152   : > { %v1533_v53 = vsel %vm5970_vm3, %v5246_v51, %v1532_v18  ;;  %v1050_v58 = vshrl.u32 %v1033_v23, 16  ;;  %v1053_v63 = vshll.u32 %v1033_v23, 16  ;;  %v1059_v11 = vshll.u32 %v6167_v59, 16  ;;  %v6197_v23 = vld [vmem:[#allocation2 + $0x3c] sm:$0x1] }
 0x153   : > { %v1399_v56 = vsel %vm6024_vm7, %v1394_v43, %v1398_v34  ;;  %5540 = vmatprep.mubr.msk.bf16.mxu0 %vm1862_vm0, %v5286_v49  ;;  %v1408_v2 = vrot.slane %v1407_v54, 4  ;;  %v1537_v3 = vsel %vm5970_vm3, %v5247_v46, %v1536_v55  ;;  %v1064_v8 = vshrl.u32 %v1035_v42, 16 }
 0x154   : > { %v1067_v38 = vshll.u32 %v1035_v42, 16  ;;  %v5281_v10 = vcombine.low %v1533_v53, %v1537_v3  ;;  %v1052_v13 = vrot.slane %v1050_v58, 4  ;;  %v1055_v40 = vrot.slane %v1053_v63, 5  ;;  %v880_v53 = vld [vmem:[#allocation2 + $0x14] sm:$0x3] }
 0x155   : > { %v1061_v14 = vrot.slane %v1059_v11, 5  ;;  %v1413_v16 = vsel %vm6024_vm7, %v1408_v2, %v1412_v39  ;;  %v1066_v19 = vrot.slane %v1064_v8, 4  ;;  %v1073_v50 = vshll.u32 %v6180_v57, 16  ;;  %v881_v3 = vld [vmem:[#allocation2 + $0x1c] sm:$0x3] }
 0x156   : > { %v1069_v45 = vrot.slane %v1067_v38, 5  ;;  %v5276_v25 = vcombine.low %v1399_v56, %v1413_v16  ;;  %1844 = vrot.lane.b32.xlu0 %v5281_v10, %s5733_s16  ;;  %v1056_v1 = vor.u32 %v1055_v40, %v1052_v13  ;;  %v1671_v29 = vshrl.u32 %v6186_v9, 16 }
 0x157   : > { %v1674_v52 = vshll.u32 %v6186_v9, 16  ;;  %v1075_v33 = vrot.slane %v1073_v50, 5  ;;  %v1680_v34 = vshrl.u32 %v1560_v15, 16  ;;  %v1683_v7 = vshll.u32 %v1560_v15, 16 }
 0x158   : > { %v1070_v20 = vor.u32 %v1069_v45, %v1066_v19  ;;  %1822 = vrot.lane.b32.xlu1 %v5276_v25, %s5734_s23  ;;  %v1057_v37 = vrot.slane %v1056_v1, 4  ;;  %v1673_v41 = vrot.slane %v1671_v29, 5  ;;  %v5248_v18 = vrot.slane %v6131_v4, 9  ;;  %v1374_v19 = vld [vmem:[#allocation2 + $0x20] sm:$0xf] }
 0x159   : > { %v1676_v51 = vrot.slane %v1674_v52, 6  ;;  %v1682_v43 = vrot.slane %v1680_v34, 5  ;;  %v1685_v39 = vrot.slane %v1683_v7, 6  ;;  %v1540_v46 = vrot.slane %v6195_v32, 5 }
 0x15a   : > { %v1071_v0 = vrot.slane %v1070_v20, 4  ;;  %v1062_v42 = vsel %vm6024_vm7, %v1057_v37, %v1061_v14  ;;  %v5249_v49 = vrot.slane %v6136_v21, 9  ;;  %v1544_v54 = vrot.slane %v6197_v23, 5 }
 0x15b   : > { %v1677_v48 = vor.u32 %v1676_v51, %v1673_v41  ;;  %v1686_v56 = vor.u32 %v1685_v39, %v1682_v43  ;;  %v1541_v4 = vsel %vm5970_vm3, %v5248_v18, %v1540_v46  ;;  %v926_v58 = vshrl.u32 %v6008_v36, 16  ;;  %v6225_v43 = vld [vmem:[#allocation2 + $0x20] sm:$0xe] }
 0x15c   : > { %v1076_v55 = vsel %vm6024_vm7, %v1071_v0, %v1075_v33  ;;  %v1545_v2 = vsel %vm5970_vm3, %v5249_v49, %v1544_v54  ;;  %v929_v21 = vshll.u32 %v6008_v36, 16  ;;  %v935_v10 = vshrl.u32 %v880_v53, 16  ;;  %v1376_v33 = vld [vmem:[#allocation2 + $0x28] sm:$0xf] }
 0x15d   : > { %v5264_v63 = vcombine.low %v1062_v42, %v1076_v55  ;;  %v1678_v11 = vrot.slane %v1677_v48, 4  ;;  %v5282_v8 = vcombine.low %v1541_v4, %v1545_v2  ;;  %v928_v38 = vrot.slane %v926_v58, 5  ;;  %v6227_v49 = vld [vmem:[#allocation2 + $0x28] sm:$0xe]  ;;  %v6231_v4 = vld [vmem:[#allocation2 + $0x2c] sm:$0x1] }
 0x15e   : > { %v938_v13 = vshll.u32 %v880_v53, 16  ;;  %v931_v14 = vrot.slane %v929_v21, 6  ;;  %v944_v15 = vshrl.u32 %v5977_v26, 16  ;;  %v947_v16 = vshll.u32 %v5977_v26, 16  ;;  %v6222_v26 = vld [vmem:[#allocation2 + $0x24] sm:$0x1] }
 0x15f   : > { %1770 = vrot.lane.b32.xlu1 %v5264_v63, %s5733_s16  ;;  %v1687_v40 = vsel %vm5983_vm6, %v1678_v11, %v1686_v56  ;;  %1846 = vrot.lane.b32.xlu0 %v5282_v8, %s5733_s16  ;;  %v937_v36 = vrot.slane %v935_v10, 5  ;;  %v953_v25 = vshrl.u32 %v881_v3, 16  ;;  %v956_v20 = vshll.u32 %v881_v3, 16  ;;  %v6234_v2 = vld [vmem:[#allocation2 + $0x28] sm:$0xe] }
 0x160   : > { %v5287_v45 = vcombine.low %v1687_v40, %v6034_v28  ;;  %v940_v50 = vrot.slane %v938_v13, 6  ;;  %v932_v1 = vor.u32 %v931_v14, %v928_v38  ;;  %v946_v29 = vrot.slane %v944_v15, 5  ;;  %v1221_v10 = vld [vmem:[#allocation2 + $0x2c] sm:$0x3] }
 0x161   : > { %v949_v52 = vrot.slane %v947_v16, 6  ;;  %v955_v7 = vrot.slane %v953_v25, 5  ;;  %v1415_v37 = vshrl.u32 %v1374_v19, 16  ;;  %v1418_v41 = vshll.u32 %v1374_v19, 16  ;;  %v6241_v16 = vld [vmem:[#allocation2 + $0x30] sm:$0xe] }
 0x162   : > { %5541 = vmatmul.mubr.msk.bf16.gmra.mrb[12].mxu0 %vm1862_vm0, %v5287_v45  ;;  %v941_v34 = vor.u32 %v940_v50, %v937_v36  ;;  %v933_v51 = vrot.slane %v932_v1, 4  ;;  %v958_v18 = vrot.slane %v956_v20, 6  ;;  %v1424_v0 = vshll.u32 %v6154_v24, 16  ;;  %v1222_v20 = vld [vmem:[#allocation2 + $0x34] sm:$0x3] }
 0x163   : > { %v950_v28 = vor.u32 %v949_v52, %v946_v29  ;;  %v1417_v39 = vrot.slane %v1415_v37, 4  ;;  %v1420_v46 = vrot.slane %v1418_v41, 5  ;;  %v1429_v42 = vshrl.u32 %v1376_v33, 16 }
 0x164   : > { %v1432_v48 = vshll.u32 %v1376_v33, 16  ;;  %v942_v54 = vsel %vm5983_vm6, %v933_v51, %v941_v34  ;;  %v959_v55 = vor.u32 %v958_v18, %v955_v7  ;;  %v1426_v56 = vrot.slane %v1424_v0, 5  ;;  %v882_v18 = vld [vmem:[#allocation2 + $0x24] sm:$0x3] }
 0x165   : > { %v951_v53 = vrot.slane %v950_v28, 4  ;;  %v1421_v58 = vor.u32 %v1420_v46, %v1417_v39  ;;  %v1431_v63 = vrot.slane %v1429_v42, 4  ;;  %v1438_v24 = vshll.u32 %v6163_v44, 16 }
 0x166   : > { %v1434_v11 = vrot.slane %v1432_v48, 5  ;;  %v5232_v21 = vrot.slane %v6225_v43, 9  ;;  %v864_v8 = vrot.slane %v6222_v26, 5  ;;  %v5233_v38 = vrot.slane %v6227_v49, 9 }
 0x167   : > { %v960_v3 = vsel %vm5983_vm6, %v951_v53, %v959_v55  ;;  %v1422_v40 = vrot.slane %v1421_v58, 4  ;;  %v1440_v15 = vrot.slane %v1438_v24, 5  ;;  %v868_v19 = vrot.slane %v6231_v4, 5 }
 0x168   : > { %v5261_v13 = vcombine.low %v942_v54, %v960_v3  ;;  %v1435_v14 = vor.u32 %v1434_v11, %v1431_v63  ;;  %v865_v44 = vsel %vm5970_vm3, %v5232_v21, %v864_v8  ;;  %v1298_v45 = vshrl.u32 %v6234_v2, 16  ;;  %v883_v21 = vld [vmem:[#allocation2 + $0x2c] sm:$0x3] }
 0x169   : > { %v1301_v36 = vshll.u32 %v6234_v2, 16  ;;  %v1427_v50 = vsel %vm6024_vm7, %v1422_v40, %v1426_v56  ;;  %v1307_v1 = vshrl.u32 %v1221_v10, 16  ;;  %v1310_v29 = vshll.u32 %v1221_v10, 16 }
 0x16a   : > { %1752 = vrot.lane.b32.xlu1 %v5261_v13, %s5734_s23  ;;  %v1436_v25 = vrot.slane %v1435_v14, 4  ;;  %v869_v52 = vsel %vm5970_vm3, %v5233_v38, %v868_v19  ;;  %v1300_v33 = vrot.slane %v1298_v45, 5  ;;  %v1316_v7 = vshrl.u32 %v6241_v16, 16 }
 0x16b   : > { %v1303_v34 = vrot.slane %v1301_v36, 6  ;;  %v5258_v41 = vcombine.low %v865_v44, %v869_v52  ;;  %v1309_v51 = vrot.slane %v1307_v1, 5  ;;  %v1312_v28 = vrot.slane %v1310_v29, 6 }
 0x16c   : > { %v1441_v37 = vsel %vm6024_vm7, %v1436_v25, %v1440_v15  ;;  %v1318_v46 = vrot.slane %v1316_v7, 5  ;;  %v1319_v42 = vshll.u32 %v6241_v16, 16  ;;  %v1325_v54 = vshrl.u32 %v1222_v20, 16  ;;  %v1378_v15 = vld [vmem:[#allocation2 + $0x30] sm:$0xf] }
 0x16d   : > { %v5277_v0 = vcombine.low %v1427_v50, %v1441_v37  ;;  %v1304_v39 = vor.u32 %v1303_v34, %v1300_v33  ;;  %v1313_v48 = vor.u32 %v1312_v28, %v1309_v51  ;;  %v1328_v53 = vshll.u32 %v1222_v20, 16  ;;  %v1380_v33 = vld [vmem:[#allocation2 + $0x38] sm:$0xf] }
 0x16e   : > { %1734 = vrot.lane.b32.xlu1 %v5258_v41, %s5732_s29  ;;  %v962_v55 = vshrl.u32 %v6225_v43, 16  ;;  %v1321_v58 = vrot.slane %v1319_v42, 6  ;;  %v965_v63 = vshll.u32 %v6225_v43, 16  ;;  %v971_v11 = vshrl.u32 %v882_v18, 16 }
 0x16f   : > { %1824 = vrot.lane.b32.xlu0 %v5277_v0, %s5734_s23  ;;  %v1305_v56 = vrot.slane %v1304_v39, 4  ;;  %v1327_v24 = vrot.slane %v1325_v54, 5  ;;  %v1330_v3 = vrot.slane %v1328_v53, 6  ;;  %v974_v38 = vshll.u32 %v882_v18, 16 }
 0x170   : > { %v964_v8 = vrot.slane %v962_v55, 5  ;;  %v1322_v13 = vor.u32 %v1321_v58, %v1318_v46  ;;  %v967_v40 = vrot.slane %v965_v63, 6  ;;  %v973_v14 = vrot.slane %v971_v11, 5  ;;  %v6269_v46 = vld [vmem:[#allocation2 + $0x30] sm:$0xe] }
 0x171   : > { %v1314_v10 = vsel %vm5983_vm6, %v1305_v56, %v1313_v48  ;;  %v1331_v44 = vor.u32 %v1330_v3, %v1327_v24  ;;  %v976_v19 = vrot.slane %v974_v38, 6  ;;  %v980_v45 = vshrl.u32 %v6227_v49, 16  ;;  %v6274_v55 = vld [vmem:[#allocation2 + $0x3c] sm:$0x1]  ;;  %v6278_v24 = vld [vmem:[#allocation2 + $0x38] sm:$0xe] }
 0x172   : > { %v983_v36 = vshll.u32 %v6227_v49, 16  ;;  %v1323_v43 = vrot.slane %v1322_v13, 4  ;;  %v968_v50 = vor.u32 %v967_v40, %v964_v8  ;;  %v989_v25 = vshrl.u32 %v883_v21, 16  ;;  %v6267_v49 = vld [vmem:[#allocation2 + $0x34] sm:$0x1] }
 0x173   : > { %v992_v1 = vshll.u32 %v883_v21, 16  ;;  %v977_v29 = vor.u32 %v976_v19, %v973_v14  ;;  %v982_v52 = vrot.slane %v980_v45, 5  ;;  %v1443_v34 = vshrl.u32 %v1378_v15, 16 }
 0x174   : > { %v985_v20 = vrot.slane %v983_v36, 6  ;;  %v1332_v7 = vsel %vm5983_vm6, %v1323_v43, %v1331_v44  ;;  %v969_v37 = vrot.slane %v968_v50, 4  ;;  %v991_v41 = vrot.slane %v989_v25, 5  ;;  %v1223_v44 = vld [vmem:[#allocation2 + $0x3c] sm:$0x3] }
 0x175   : > { %v994_v51 = vrot.slane %v992_v1, 6  ;;  %v5274_v28 = vcombine.low %v1314_v10, %v1332_v7  ;;  %v1445_v0 = vrot.slane %v1443_v34, 4  ;;  %v1446_v39 = vshll.u32 %v1378_v15, 16  ;;  %v6282_v10 = vld [vmem:[#allocation2 + $0x38] sm:$0xe] }
 0x176   : > { %v986_v18 = vor.u32 %v985_v20, %v982_v52  ;;  %v978_v42 = vsel %vm5983_vm6, %v969_v37, %v977_v29  ;;  %v1452_v54 = vshll.u32 %v6195_v32, 16  ;;  %v1457_v53 = vshrl.u32 %v1380_v33, 16  ;;  %v6286_v15 = vld [vmem:[#allocation2 + $0x40] sm:$0xe]  ;;  %v1224_v52 = vld [vmem:[#allocation2 + $0x44] sm:$0x3] }
 0x177   : > { %v995_v48 = vor.u32 %v994_v51, %v991_v41  ;;  %1806 = vrot.lane.b32.xlu0 %v5274_v28, %s5732_s29  ;;  %v1448_v58 = vrot.slane %v1446_v39, 5  ;;  %v1460_v63 = vshll.u32 %v1380_v33, 16  ;;  %v1466_v11 = vshll.u32 %v6197_v23, 16  ;;  %v1041_v28 = vld [vmem:[#allocation2 + $0x28] sm:$0xf] }
 0x178   : > { %v987_v56 = vrot.slane %v986_v18, 4  ;;  %v1454_v3 = vrot.slane %v1452_v54, 5  ;;  %v1459_v21 = vrot.slane %v1457_v53, 4  ;;  %v5234_v8 = vrot.slane %v6269_v46, 9 }
 0x179   : > { %v872_v38 = vrot.slane %v6267_v49, 5  ;;  %v1449_v13 = vor.u32 %v1448_v58, %v1445_v0  ;;  %v1462_v40 = vrot.slane %v1460_v63, 5  ;;  %v1468_v14 = vrot.slane %v1466_v11, 5  ;;  %v1043_v63 = vld [vmem:[#allocation2 + $0x30] sm:$0xf] }
 0x17a   : > { %v996_v32 = vsel %vm5983_vm6, %v987_v56, %v995_v48  ;;  %v5235_v45 = vrot.slane %v6278_v24, 9  ;;  %v876_v36 = vrot.slane %v6274_v55, 5  ;;  %v1334_v25 = vshrl.u32 %v6282_v10, 16  ;;  %v6300_v48 = vld [vmem:[#allocation2 + $0x2c] sm:$0x1] }
 0x17b   : > { %v5262_v23 = vcombine.low %v978_v42, %v996_v32  ;;  %v873_v19 = vsel %vm5970_vm3, %v5234_v8, %v872_v38  ;;  %v1450_v43 = vrot.slane %v1449_v13, 4  ;;  %v1463_v50 = vor.u32 %v1462_v40, %v1459_v21  ;;  %v6306_v40 = vld [vmem:[#allocation2 + $0x34] sm:$0x1] }
 0x17c   : > { %v1337_v1 = vshll.u32 %v6282_v10, 16  ;;  %v877_v29 = vsel %vm5970_vm3, %v5235_v45, %v876_v36  ;;  %v1343_v20 = vshrl.u32 %v1223_v44, 16  ;;  %v1346_v33 = vshll.u32 %v1223_v44, 16  ;;  %v1382_v36 = vld [vmem:[#allocation2 + $0x40] sm:$0xf] }
 0x17d   : > { %1754 = vrot.lane.b32.xlu1 %v5262_v23, %s5734_s23  ;;  %v1352_v34 = vshrl.u32 %v6286_v15, 16  ;;  %v1455_v7 = vsel %vm6024_vm7, %v1450_v43, %v1454_v3  ;;  %v1464_v37 = vrot.slane %v1463_v50, 4  ;;  %v5259_v41 = vcombine.low %v873_v19, %v877_v29  ;;  %v1383_v29 = vld [vmem:[#allocation2 + $0x44] sm:$0x1] }
 0x17e   : > { %v1336_v51 = vrot.slane %v1334_v25, 5  ;;  %v1339_v18 = vrot.slane %v1337_v1, 6  ;;  %v1345_v0 = vrot.slane %v1343_v20, 5  ;;  %v1348_v39 = vrot.slane %v1346_v33, 6 }
 0x17f   : > { %v1354_v42 = vrot.slane %v1352_v34, 5  ;;  %v1469_v54 = vsel %vm6024_vm7, %v1464_v37, %v1468_v14  ;;  %v1355_v53 = vshll.u32 %v6286_v15, 16  ;;  %v1361_v56 = vshrl.u32 %v1224_v52, 16 }
 0x180   : > { %v1364_v58 = vshll.u32 %v1224_v52, 16  ;;  %v5278_v11 = vcombine.low %v1455_v7, %v1469_v54  ;;  %v1340_v3 = vor.u32 %v1339_v18, %v1336_v51  ;;  %v1349_v21 = vor.u32 %v1348_v39, %v1345_v0  ;;  %v884_v39 = vld [vmem:[#allocation2 + $0x34] sm:$0x3] }
 0x181   : > { %1736 = vrot.lane.b32.xlu1 %v5259_v41, %s5732_s29  ;;  %v1106_v8 = vshrl.u32 %v1041_v28, 16  ;;  %v1357_v38 = vrot.slane %v1355_v53, 6  ;;  %v1363_v32 = vrot.slane %v1361_v56, 5  ;;  %v1109_v44 = vshll.u32 %v1041_v28, 16 }
 0x182   : > { %v1366_v13 = vrot.slane %v1364_v58, 6  ;;  %1826 = vrot.lane.b32.xlu0 %v5278_v11, %s5734_s23  ;;  %v1341_v14 = vrot.slane %v1340_v3, 4  ;;  %v1115_v19 = vshll.u32 %v6300_v48, 16  ;;  %v1120_v45 = vshrl.u32 %v1043_v63, 16 }
 0x183   : > { %v1108_v23 = vrot.slane %v1106_v8, 4  ;;  %v1358_v43 = vor.u32 %v1357_v38, %v1354_v42  ;;  %v1111_v25 = vrot.slane %v1109_v44, 5  ;;  %v1123_v1 = vshll.u32 %v1043_v63, 16 }
 0x184   : > { %v1367_v50 = vor.u32 %v1366_v13, %v1363_v32  ;;  %v1350_v52 = vsel %vm5983_vm6, %v1341_v14, %v1349_v21  ;;  %v1117_v20 = vrot.slane %v1115_v19, 5  ;;  %v1122_v33 = vrot.slane %v1120_v45, 4  ;;  %v885_v21 = vld [vmem:[#allocation2 + $0x3c] sm:$0x3] }
 0x185   : > { %v1129_v34 = vshll.u32 %v6306_v40, 16  ;;  %v1359_v7 = vrot.slane %v1358_v43, 4  ;;  %v1112_v37 = vor.u32 %v1111_v25, %v1108_v23  ;;  %v1125_v41 = vrot.slane %v1123_v1, 5 }
 0x186   : > { %v1471_v51 = vshrl.u32 %v1382_v36, 16  ;;  %v1474_v18 = vshll.u32 %v1382_v36, 16  ;;  %v1480_v0 = vshll.u32 %v1383_v29, 16  ;;  %v998_v42 = vshrl.u32 %v6269_v46, 16 }
 0x187   : > { %v1131_v28 = vrot.slane %v1129_v34, 5  ;;  %v1368_v54 = vsel %vm5983_vm6, %v1359_v7, %v1367_v50  ;;  %v1113_v53 = vrot.slane %v1112_v37, 4  ;;  %v1126_v56 = vor.u32 %v1125_v41, %v1122_v33  ;;  %v1045_v41 = vld [vmem:[#allocation2 + $0x38] sm:$0xf] }
 0x188   : > { %v1473_v58 = vrot.slane %v1471_v51, 4  ;;  %v5275_v63 = vcombine.low %v1350_v52, %v1368_v54  ;;  %v1476_v11 = vrot.slane %v1474_v18, 5  ;;  %v1482_v3 = vrot.slane %v1480_v0, 5 }
 0x189   : > { %v1000_v8 = vrot.slane %v998_v42, 5  ;;  %v1118_v38 = vsel %vm6024_vm7, %v1113_v53, %v1117_v20  ;;  %v1127_v32 = vrot.slane %v1126_v56, 4  ;;  %v1001_v13 = vshll.u32 %v6269_v46, 16  ;;  %v1047_v53 = vld [vmem:[#allocation2 + $0x40] sm:$0xf] }
 0x18a   : > { %v1007_v44 = vshrl.u32 %v884_v39, 16  ;;  %1808 = vrot.lane.b32.xlu0 %v5275_v63, %s5732_s29  ;;  %v1477_v14 = vor.u32 %v1476_v11, %v1473_v58  ;;  %v1010_v23 = vshll.u32 %v884_v39, 16  ;;  %v1016_v19 = vshrl.u32 %v6278_v24, 16  ;;  %v6344_v63 = vld [vmem:[#allocation2 + $0x3c] sm:$0x1] }
 0x18b   : > { %v1019_v45 = vshll.u32 %v6278_v24, 16  ;;  %v1132_v36 = vsel %vm6024_vm7, %v1127_v32, %v1131_v28  ;;  %v1003_v43 = vrot.slane %v1001_v13, 6  ;;  %v1025_v25 = vshrl.u32 %v885_v21, 16  ;;  %v6346_v11 = vld [vmem:[#allocation2 + $0x44] sm:$0x1] }
 0x18c   : > { %v1009_v50 = vrot.slane %v1007_v44, 5  ;;  %v5266_v1 = vcombine.low %v1118_v38, %v1132_v36  ;;  %v1478_v52 = vrot.slane %v1477_v14, 4  ;;  %v1012_v20 = vrot.slane %v1010_v23, 6 }
 0x18d   : > { %v1018_v33 = vrot.slane %v1016_v19, 5  ;;  %v1004_v46 = vor.u32 %v1003_v43, %v1000_v8  ;;  %v1021_v34 = vrot.slane %v1019_v45, 6  ;;  %v1027_v7 = vrot.slane %v1025_v25, 5 }
 0x18e   : > { %v1028_v37 = vshll.u32 %v885_v21, 16  ;;  %1774 = vrot.lane.b32.xlu1 %v5266_v1, %s5733_s16  ;;  %v1483_v24 = vsel %vm6024_vm7, %v1478_v52, %v1482_v3  ;;  %v1013_v51 = vor.u32 %v1012_v20, %v1009_v50  ;;  %v5250_v28 = vrot.slane %v6186_v9, 9  ;;  %v688_v20 = vld [vmem:[#allocation2] sm:$0xf] }
 0x18f   : > { %v1548_v18 = vrot.slane %v1383_v29, 5  ;;  %v5279_v0 = vcombine.low %v1483_v24, %v1497_v47  ;;  %v1005_v39 = vrot.slane %v1004_v46, 4  ;;  %v1022_v42 = vor.u32 %v1021_v34, %v1018_v33  ;;  %v690_v33 = vld [vmem:[#allocation2 + $0x8] sm:$0xf] }
 0x190   : > { %v1030_v54 = vrot.slane %v1028_v37, 6  ;;  %v1553_v9 = vsel %vm5970_vm3, %v5251_v31, %v1552_v6  ;;  %v1134_v29 = vshrl.u32 %v1045_v41, 16  ;;  %v1137_v58 = vshll.u32 %v1045_v41, 16 }
 0x191   : > { %v1549_v56 = vsel %vm5970_vm3, %v5250_v28, %v1548_v18  ;;  %1828 = vrot.lane.b32.xlu0 %v5279_v0, %s5734_s23  ;;  %v1014_v27 = vsel %vm5983_vm6, %v1005_v39, %v1013_v51  ;;  %v1023_v5 = vrot.slane %v1022_v42, 4  ;;  %v1148_v21 = vshrl.u32 %v1047_v53, 16 }
 0x192   : > { %v1031_v47 = vor.u32 %v1030_v54, %v1027_v7  ;;  %v1136_v3 = vrot.slane %v1134_v29, 4  ;;  %v1139_v62 = vrot.slane %v1137_v58, 5  ;;  %v5283_v31 = vcombine.low %v1549_v56, %v1553_v9 }
 0x193   : > { %v1151_v6 = vshll.u32 %v1047_v53, 16  ;;  %v1150_v32 = vrot.slane %v1148_v21, 4  ;;  %v1143_v13 = vshll.u32 %v6344_v63, 16  ;;  %v1157_v14 = vshll.u32 %v6346_v11, 16  ;;  %v5715_v53 = vld [vmem:[#allocation2 + $0x4] sm:$0x1] }
 0x194   : > { %v1032_v30 = vsel %vm5983_vm6, %v1023_v5, %v1031_v47  ;;  %v1140_v38 = vor.u32 %v1139_v62, %v1136_v3  ;;  %v708_v34 = vshrl.u32 %v688_v20, 16  ;;  %v711_v7 = vshll.u32 %v688_v20, 16  ;;  %v5716_v3 = vld [vmem:[#allocation2 + $0xc] sm:$0x1] }
 0x195   : > { %v5263_v8 = vcombine.low %v1014_v27, %v1032_v30  ;;  %1848 = vrot.lane.b32.xlu0 %v5283_v31, %s5733_s16  ;;  %v1153_v44 = vrot.slane %v1151_v6, 5  ;;  %v1145_v45 = vrot.slane %v1143_v13, 5  ;;  %v1159_v43 = vrot.slane %v1157_v14, 5  ;;  %v694_v13 = vld [vmem:[#allocation2 + $0x18] sm:$0xf] }
 0x196   : > { %v1141_v23 = vrot.slane %v1140_v38, 4  ;;  %v722_v41 = vshrl.u32 %v690_v33, 16  ;;  %v725_v24 = vshll.u32 %v690_v33, 16  ;;  %v710_v51 = vrot.slane %v708_v34, 4  ;;  %v692_v38 = vld [vmem:[#allocation2 + $0x10] sm:$0xf] }
 0x197   : > { %1756 = vrot.lane.b32.xlu1 %v5263_v8, %s5734_s23  ;;  %v1154_v19 = vor.u32 %v1153_v44, %v1150_v32  ;;  %v1731_v52 = vpop.permute.xlu0 %1730  ;;  %v713_v28 = vrot.slane %v711_v7, 5  ;;  %v1191_v54 = vrot.slane %v6180_v57, 5  ;;  %v717_v56 = vshll.u32 %v5715_v53, 16 }
 0x198   : > { %v1146_v50 = vsel %vm6024_vm7, %v1141_v23, %v1145_v45  ;;  %v724_v18 = vrot.slane %v722_v41, 4  ;;  %v727_v0 = vrot.slane %v725_v24, 5  ;;  %v1187_v29 = vrot.slane %v6167_v59, 5 }
 0x199   : > { %v1155_v36 = vrot.slane %v1154_v19, 4  ;;  %v714_v9 = vor.u32 %v713_v28, %v710_v51  ;;  %v5237_v58 = vrot.slane %v6117_v17, 9  ;;  %v5236_v5 = vrot.slane %v6113_v35, 9 }
 0x19a   : > { %v6359_v46 = vpop.permute.xlu1 %1732  ;;  %v728_v27 = vor.u32 %v727_v0, %v724_v18  ;;  %v731_v62 = vshll.u32 %v5716_v3, 16  ;;  %v719_v30 = vrot.slane %v717_v56, 5  ;;  %vm1884_vm4 = vcmask 785408   ;;  %v5717_v18 = vld [vmem:[#allocation2 + $0x14] sm:$0x1] }
 0x19b   : > { %v1160_v25 = vsel %vm6024_vm7, %v1155_v36, %v1159_v43  ;;  %v1192_v47 = vsel %vm5970_vm3, %v5237_v58, %v1191_v54  ;;  %v715_v31 = vrot.slane %v714_v9, 4  ;;  %v1188_v57 = vsel %vm5970_vm3, %v5236_v5, %v1187_v29  ;;  %v5719_v29 = vld [vmem:[#allocation2 + $0x24] sm:$0x1]  ;;  %v5720_v5 = vld [vmem:[#allocation2 + $0x1c] sm:$0x1] }
 0x19c   : > { %v5267_v1 = vcombine.low %v1146_v50, %v1160_v25  ;;  %v1843_v37 = vpop.permute.xlu0 %1842  ;;  %v729_v8 = vrot.slane %v728_v27, 4  ;;  %v5268_v59 = vcombine.low %v1188_v57, %v1192_v47  ;;  %v733_v17 = vrot.slane %v731_v62, 5  ;;  %v5721_v3 = vld [vmem:[#allocation2 + $0x20] sm:$0xe]  ;;  %v5722_v57 = vld [vmem:[#allocation2 + $0x18] sm:$0xe] }
 0x19d   : > { %v720_v35 = vsel %vm6024_vm7, %v715_v31, %v719_v30  ;;  %v736_v14 = vshrl.u32 %v692_v38, 16  ;;  %v739_v23 = vshll.u32 %v692_v38, 16  ;;  %vm1875_vm8 = vcmask 523264  }
 0x19e   : > { %1776 = vrot.lane.b32.xlu1 %v5267_v1, %s5733_s16  ;;  %v734_v44 = vsel %vm6024_vm7, %v729_v8, %v733_v17  ;;  %v750_v36 = vshrl.u32 %v694_v13, 16  ;;  %v753_v43 = vshll.u32 %v694_v13, 16  ;;  %v745_v0 = vshll.u32 %v5717_v18, 16 }
 0x19f   : > { %v5252_v25 = vcombine.low %v720_v35, %v734_v44  ;;  %v738_v1 = vrot.slane %v736_v14, 4  ;;  %v741_v20 = vrot.slane %v739_v23, 5  ;;  %v1199_v58 = vrot.slane %v5719_v29, 5 }
 0x1a0   : > { %v752_v34 = vrot.slane %v750_v36, 4  ;;  %v755_v7 = vrot.slane %v753_v43, 5  ;;  %v1195_v47 = vrot.slane %v5720_v5, 5  ;;  %v698_v43 = vld [vmem:[#allocation2 + $0x28] sm:$0xf]  ;;  %vm2334_vm11 = vcmask 125953  }
 0x1a1   : > { %v1865_v33 = vsel %vm1862_vm0, %v5252_v25, %v1731_v52  ;;  %v742_v28 = vor.u32 %v741_v20, %v738_v1  ;;  %v747_v52 = vrot.slane %v745_v0, 5  ;;  %v778_v25 = vshrl.u32 %v698_v43, 16 }
 0x1a2   : > { %v756_v54 = vor.u32 %v755_v7, %v752_v34  ;;  %v781_v1 = vshll.u32 %v698_v43, 16  ;;  %v5241_v34 = vrot.slane %v6241_v16, 9 }
 0x1a3   : > { %v743_v9 = vrot.slane %v742_v28, 4  ;;  %v780_v7 = vrot.slane %v778_v25, 4  ;;  %v5240_v28 = vrot.slane %v6234_v2, 9  ;;  %v773_v2 = vshll.u32 %v6222_v26, 16 }
 0x1a4   : > { %v757_v27 = vrot.slane %v756_v54, 4 }
 0x1a5   : > { %v748_v30 = vsel %vm6024_vm7, %v743_v9, %v747_v52  ;;  %v700_v52 = vld [vmem:[#allocation2 + $0x30] sm:$0xf] }
 0x1a7   : > { %v1751_v39 = vpop.permute.xlu1 %1750 }
 0x1a8   : > { %v1877_v41 = vsel %vm1875_vm8, %v1865_v33, %v1751_v39  ;;  %v5239_v39 = vrot.slane %v5721_v3, 9  ;;  %v1203_v33 = vrot.slane %v6300_v48, 5  ;;  %v787_v48 = vshll.u32 %v6231_v4, 16  ;;  %v702_v3 = vld [vmem:[#allocation2 + $0x38] sm:$0xf] }
 0x1a9   : > { %v809_v26 = vshll.u32 %v702_v3, 16 }
 0x1aa   : > { %v1200_v8 = vsel %vm5970_vm3, %v5239_v39, %v1199_v58  ;;  %v775_v39 = vrot.slane %v773_v2, 5 }
 0x1ad   : > { %v6361_v42 = vpop.permute.xlu0 %1804 }
 0x1b3   : > { %v6369_v21 = vpop.permute.xlu1 %1772 }
 0x1bf   : > { %v1803_v6 = vpop.permute.xlu0 %1802 }
 0x1c0   : > { %v1899_v32 = vsel %vm1862_vm0, %v5268_v59, %v1803_v6  ;;  %v5238_v6 = vrot.slane %v5722_v57, 9 }
 0x1c2   : > { %v1196_v17 = vsel %vm5970_vm3, %v5238_v6, %v1195_v47  ;;  %v789_v47 = vrot.slane %v787_v48, 5 }
 0x1c3   : > { %v5269_v35 = vcombine.low %v1196_v17, %v1200_v8  ;;  %v806_v8 = vshrl.u32 %v702_v3, 16 }
 0x1c5   : > { %v1902_v44 = vsel %vm1862_vm0, %v5269_v35, %v6361_v42 }
 0x1c8   : > { %v1845_v53 = vpop.permute.xlu0 %1844 }
 0x1ca   : > { %v1823_v19 = vpop.permute.xlu1 %1822 }
 0x1cb   : > { %v1910_v45 = vsel %vm1875_vm8, %v1899_v32, %v1823_v19 }
 0x1cc   : > { %v1918_v50 = vsel %vm1884_vm4, %v1910_v45, %v1843_v37  ;;  %v5718_v37 = vld [vmem:[#allocation2 + $0x1c] sm:$0x1] }
 0x1cd   : > { %2124 = vmatprep.mubr.bf16.mxu1 %v1918_v50  ;;  %v759_v56 = vshll.u32 %v5718_v37, 16  ;;  %v696_v50 = vld [vmem:[#allocation2 + $0x20] sm:$0xf] }
 0x1ce   : > { %v764_v20 = vshrl.u32 %v696_v50, 16  ;;  %v767_v42 = vshll.u32 %v696_v50, 16 }
 0x1cf   : > { %v761_v62 = vrot.slane %v759_v56, 5 }
 0x1d0   : > { %v766_v18 = vrot.slane %v764_v20, 4  ;;  %v769_v0 = vrot.slane %v767_v42, 5  ;;  %v815_v42 = vshll.u32 %v6274_v55, 16 }
 0x1d1   : > { %v1771_v24 = vpop.permute.xlu1 %1770  ;;  %v1847_v31 = vpop.permute.xlu0 %1846  ;;  %v762_v59 = vsel %vm6024_vm7, %v757_v27, %v761_v62  ;;  %v792_v62 = vshrl.u32 %v700_v52, 16 }
 0x1d2   : > { %v1886_v51 = vsel %vm1884_vm4, %v1877_v41, %v1771_v24  ;;  %v5253_v38 = vcombine.low %v748_v30, %v762_v59  ;;  %v783_v41 = vrot.slane %v781_v1, 5  ;;  %v770_v37 = vor.u32 %v769_v0, %v766_v18 }
 0x1d3   : > { %2125 = vmatmul.mubr.bf16.vlgmr.msra.gmra.mrb[0].mxu1 %v1886_v51  ;;  %v795_v30 = vshll.u32 %v700_v52, 16  ;;  %v794_v17 = vrot.slane %v792_v62, 4 }
 0x1d4   : > { %v1868_v13 = vsel %vm1862_vm0, %v5253_v38, %v6359_v46  ;;  %v1207_v46 = vrot.slane %v6306_v40, 5  ;;  %v1204_v40 = vsel %vm5970_vm3, %v5240_v28, %v1203_v33  ;;  %v784_v54 = vor.u32 %v783_v41, %v780_v7 }
 0x1d5   : > { %v771_v5 = vrot.slane %v770_v37, 4  ;;  %v817_v28 = vrot.slane %v815_v42, 5 }
 0x1d6   : > { %v785_v58 = vrot.slane %v784_v54, 4 }
 0x1d7   : > { %v776_v6 = vsel %vm6024_vm7, %v771_v5, %v775_v39 }
 0x1d8   : > { %v790_v4 = vsel %vm6024_vm7, %v785_v58, %v789_v47 }
 0x1d9   : > { %v5254_v59 = vcombine.low %v776_v6, %v790_v4 }
 0x1dc   : > { %v1753_v32 = vpop.permute.xlu1 %1752 }
 0x1dd   : > { %v1879_v14 = vsel %vm1875_vm8, %v1868_v13, %v1753_v32  ;;  %v797_v32 = vrot.slane %v795_v30, 5  ;;  %v1211_v13 = vrot.slane %v6344_v63, 5 }
 0x1de   : > { %v1889_v36 = vsel %vm1884_vm4, %v1879_v14, %v6369_v21  ;;  %v1208_v21 = vsel %vm5970_vm3, %v5241_v34, %v1207_v46 }
 0x1df   : > { %v798_v50 = vor.u32 %v797_v32, %v794_v17 }
 0x1e0   : > { %v1735_v24 = vpop.permute.xlu1 %1734 }
 0x1e1   : > { %v1825_v23 = vpop.permute.xlu0 %1824  ;;  %v1871_v35 = vsel %vm1862_vm0, %v5254_v59, %v1735_v24  ;;  %v799_v20 = vrot.slane %v798_v50, 4 }
 0x1e2   : > { %v1912_v19 = vsel %vm1875_vm8, %v1902_v44, %v1825_v23  ;;  %v5243_v44 = vrot.slane %v6286_v15, 9  ;;  %v808_v23 = vrot.slane %v806_v8, 4  ;;  %v801_v15 = vshll.u32 %v6267_v49, 16 }
 0x1e3   : > { %v1921_v45 = vsel %vm1884_vm4, %v1912_v19, %v1845_v53  ;;  %v5270_v53 = vcombine.low %v1204_v40, %v1208_v21  ;;  %v811_v19 = vrot.slane %v809_v26, 5 }
 0x1e4   : > { %2132 = vmatprep.mubr.bf16.mxu1 %v1921_v45  ;;  %v803_v7 = vrot.slane %v801_v15, 5 }
 0x1e5   : > { %2133 = vmatmul.mubr.bf16.gmra.mrb[4].mxu1 %v1889_v36  ;;  %v5242_v36 = vrot.slane %v6282_v10, 9  ;;  %v812_v1 = vor.u32 %v811_v19, %v808_v23  ;;  %v6456_v23 = vld [vmem:[#allocation2] sm:$0xe] }
 0x1e6   : > { %v2548_v15 = vshll.u32 %v6456_v23, 16 }
 0x1e7   : > { %v1212_v25 = vsel %vm5970_vm3, %v5242_v36, %v1211_v13  ;;  %v813_v41 = vrot.slane %v812_v1, 4 }
 0x1e9   : > { %v1807_v51 = vpop.permute.xlu0 %1806  ;;  %v818_v21 = vsel %vm6024_vm7, %v813_v41, %v817_v28 }
 0x1ea   : > { %v1905_v16 = vsel %vm1862_vm0, %v5270_v53, %v1807_v51  ;;  %v804_v51 = vsel %vm6024_vm7, %v799_v20, %v803_v7 }
 0x1eb   : > { %v5255_v18 = vcombine.low %v804_v51, %v818_v21  ;;  %v2352_v21 = vld [vmem:[#allocation2] sm:$0xf] }
 0x1ef   : > { %v1755_v56 = vpop.permute.xlu1 %1754 }
 0x1f0   : > { %v1881_v14 = vsel %vm1875_vm8, %v1871_v35, %v1755_v56 }
 0x1f3   : > { %v1737_v57 = vpop.permute.xlu1 %1736 }
 0x1f4   : > { %v1827_v9 = vpop.permute.xlu0 %1826  ;;  %v1874_v55 = vsel %vm1862_vm0, %v5255_v18, %v1737_v57 }
 0x1f5   : > { %v1914_v29 = vsel %vm1875_vm8, %v1905_v16, %v1827_v9 }
 0x1f6   : > { %v1924_v27 = vsel %vm1884_vm4, %v1914_v29, %v1847_v31  ;;  %v1215_v31 = vrot.slane %v6346_v11, 5 }
 0x1f7   : > { %2140 = vmatprep.mubr.bf16.mxu1 %v1924_v27  ;;  %v6451_v27 = vld [vmem:[%s7320_s4] ss:$0 sm:$0xff] }
 0x1f8   : > { %v1216_v43 = vsel %vm5970_vm3, %v5243_v44, %v1215_v31 }
 0x1f9   : > { %v5271_v46 = vcombine.low %v1212_v25, %v1216_v43  ;;  %v2536_v25 = vld [vmem:[#allocation2 + $0x4] sm:$0x3] }
 0x1fa   : > { %v2557_v51 = vshll.u32 %v2536_v25, 16 }
 0x1fc   : > { %v1809_v38 = vpop.permute.xlu0 %1808 }
 0x1fd   : > { %v1908_v10 = vsel %vm1862_vm0, %v5271_v46, %v1809_v38 }
 0x200   : > { %v1775_v45 = vpop.permute.xlu1 %1774 }
 0x201   : > { %v1892_v11 = vsel %vm1884_vm4, %v1881_v14, %v1775_v45 }
 0x202   : > { %2141 = vmatmul.mubr.bf16.gmra.mrb[8].mxu1 %v1892_v11 }
 0x203   : > { %v1829_v63 = vpop.permute.xlu0 %1828 }
 0x204   : > { %v1916_v33 = vsel %vm1875_vm8, %v1908_v10, %v1829_v63  ;;  %v2545_v63 = vshrl.u32 %v6456_v23, 16 }
 0x206   : > { %v2547_v41 = vrot.slane %v2545_v63, 5 }
 0x207   : > { %v1849_v34 = vpop.permute.xlu0 %1848 }
 0x208   : > { %v1927_v24 = vsel %vm1884_vm4, %v1916_v33, %v1849_v34  ;;  %v2554_v34 = vshrl.u32 %v2536_v25, 16 }
 0x209   : > { %2148 = vmatprep.mubr.bf16.mxu1 %v1927_v24  ;;  %v1757_v49 = vpop.permute.xlu1 %1756  ;;  %v2550_v24 = vrot.slane %v2548_v15, 6 }
 0x20a   : > { %v1883_v0 = vsel %vm1875_vm8, %v1874_v55, %v1757_v49 }
 0x210   : > { %v1777_v40 = vpop.permute.xlu1 %1776 }
 0x211   : > { %v1895_v54 = vsel %vm1884_vm4, %v1883_v0, %v1777_v40  ;;  %v2551_v0 = vor.u32 %v2550_v24, %v2547_v41  ;;  %v2556_v40 = vrot.slane %v2554_v34, 5 }
 0x212   : > { %2149 = vmatmul.mubr.bf16.gmra.mrb[12].mxu1 %v1895_v54  ;;  %v2559_v54 = vrot.slane %v2557_v51, 6 }
 0x219   : > { %v5538_v53 = vpop.f32.mrb[8].mxu0 }
 0x21a   : > { %v2191_v37 = vpop.f32.mrb[9].mxu0 }
 0x21b   : > { %v5539_v48 = vpop.f32.mrb[10].mxu0 }
 0x21c   : > { %v2194_v16 = vpop.f32.mrb[11].mxu0 }
 0x235   : > { %v6440_v56 = vpop.f32.mrb[12].mxu0 }
 0x236   : > { %v6442_v9 = vpop.f32.mrb[13].mxu0 }
 0x237   : > { %v6444_v29 = vpop.f32.mrb[14].mxu0 }
 0x238   : > { %v6446_v2 = vpop.f32.mrb[15].mxu0 }
 0x2a6   : > { %v5473_v58 = vpop.f32.mrb[0].mxu1 }
 0x2a7   : > { %v5474_v52 = vpop.f32.mrb[1].mxu1 }
 0x2a8   : > { %v5475_v5 = vadd.f32 %v5474_v52, %v5473_v58  ;;  %v5476_v47 = vpop.f32.mrb[2].mxu1  ;;  %v5327_v58 = vrot.slane %v6456_v23, 9 }
 0x2a9   : > { %v5477_v3 = vpop.f32.mrb[3].mxu1 }
 0x2aa   : > { %v2127_v39 = vadd.f32 %v5475_v5, %v6451_v27  ;;  %v5478_v4 = vadd.f32 %v5477_v3, %v5476_v47  ;;  %v2552_v5 = vrot.slane %v2551_v0, 4  ;;  %v2560_v47 = vor.u32 %v2559_v54, %v2556_v40 }
 0x2ac   : > { %v2192_v62 = vadd.f32 %v2191_v37, %v2127_v39  ;;  %v2130_v30 = vadd.f32 %v5478_v4, %v6451_v27  ;;  %v6470_v37 = vld [vmem:[#allocation2 + $0x4] sm:$0x1] }
 0x2ad   : > { %v2506_v52 = vrot.slane %v6470_v37, 5  ;;  %v2378_v39 = vshll.u32 %v6470_v37, 16 }
 0x2ae   : > { %v2230_v57 = vmul.f32 1.442695, %v2192_v62  ;;  %v2195_v6 = vadd.f32 %v2194_v16, %v2130_v30  ;;  %vm2222_vm9 = vcmp.gt.f32.partialorder %v2192_v62, 0.0  ;;  %v2372_v16 = vshll.u32 %v2352_v21, 16 }
 0x2b0   : > { %5641 = vpow2.f32 %v2230_v57  ;;  %v2232_v8 = vmul.f32 1.442695, %v2195_v6  ;;  %vm2223_vm10 = vcmp.gt.f32.partialorder %v2195_v6, 0.0 }
 0x2b2   : > { %5643 = vpow2.f32 %v2232_v8 }
 0x2b8   : > { %v5479_v26 = vpop.f32.mrb[4].mxu1 }
 0x2b9   : > { %v5480_v59 = vpop.f32.mrb[5].mxu1 }
 0x2ba   : > { %v5642_v31 = vpop.eup %5641  ;;  %v5481_v38 = vadd.f32 %v5480_v59, %v5479_v26  ;;  %v5482_v17 = vpop.f32.mrb[6].mxu1 }
 0x2bb   : > { %v5311_v32 = vadd.f32 -1.0, %v5642_v31  ;;  %v5483_v35 = vpop.f32.mrb[7].mxu1 }
 0x2bc   : > { %v5644_v13 = vpop.eup %5643  ;;  %v2135_v44 = vadd.f32 %v5481_v38, %v6451_v27  ;;  %v5484_v14 = vadd.f32 %v5483_v35, %v5482_v17 }
 0x2bd   : > { %v2254_v19 = vmul.f32 1.6732632, %v5311_v32  ;;  %v5312_v45 = vadd.f32 -1.0, %v5644_v13  ;;  %v2507_v32 = vsel %vm5970_vm3, %v5327_v58, %v2506_v52  ;;  %v6488_v13 = vsel %vm5983_vm6, %v2552_v5, %v2560_v47 }
 0x2be   : > { %v6458_v36 = vadd.f32 %v5538_v53, %v2135_v44  ;;  %v2138_v43 = vadd.f32 %v5484_v14, %v6451_v27 }
 0x2bf   : > { %v2262_v11 = vsel %vm2222_vm9, %v2192_v62, %v2254_v19  ;;  %v2255_v50 = vmul.f32 1.6732632, %v5312_v45  ;;  %v2374_v62 = vrot.slane %v2372_v16, 5 }
 0x2c0   : > { %v2270_v1 = vmul.f32 1.050701, %v2262_v11  ;;  %v2234_v46 = vmul.f32 1.442695, %v6458_v36  ;;  %v6464_v20 = vadd.f32 %v5539_v48, %v2138_v43  ;;  %v2369_v48 = vshrl.u32 %v2352_v21, 16 }
 0x2c1   : > { %v2263_v42 = vsel %vm2223_vm10, %v2195_v6, %v2255_v50  ;;  %vm2224_vm13 = vcmp.gt.f32.partialorder %v6458_v36, 0.0  ;;  %vm3562_vm10 = vcmask 654336  }
 0x2c2   : > { %v5437_v10 = vpack.c.bf16 %v2270_v1, %v2270_v1  ;;  %v2271_v33 = vmul.f32 1.050701, %v2263_v42  ;;  %5645 = vpow2.f32 %v2234_v46  ;;  %v2236_v7 = vmul.f32 1.442695, %v6464_v20 }
 0x2c3   : > { %v2371_v4 = vrot.slane %v2369_v48, 4  ;;  %vm2225_vm14 = vcmp.gt.f32.partialorder %v6464_v20, 0.0 }
 0x2c4   : > { %v2302_v28 = vrot.slane %v5437_v10, 7  ;;  %v5438_v49 = vpack.c.bf16 %v2271_v33, %v2271_v33  ;;  %5647 = vpow2.f32 %v2236_v7 }
 0x2c5   : > { %v2375_v1 = vor.u32 %v2374_v62, %v2371_v4 }
 0x2c6   : > { %v2303_v18 = vrot.slane %v2302_v28, 4  ;;  %2335 = vst.msk [vmem:[#allocation2 + $0x8] sm:$0xe] %vm2334_vm11, %v2302_v28  ;;  %v2304_v55 = vrot.slane %v5438_v49, 7 }
 0x2c7   : > { %v6512_v58 = vrot.slane %v2375_v1, 4 }
 0x2c8   : > { %2337 = vst.msk [vmem:[#allocation2 + $0xc] sm:$0x1] %vm2336_vm12, %v2303_v18  ;;  %v2305_v53 = vrot.slane %v2304_v55, 4 }
 0x2c9   : > { %2338 = vst.msk [vmem:[#allocation2 + $0x10] sm:$0xe] %vm2334_vm11, %v2304_v55 }
 0x2ca   : > { %2339 = vst.msk [vmem:[#allocation2 + $0x14] sm:$0x1] %vm2336_vm12, %v2305_v53 }
 0x2cc   : > { %v5646_v3 = vpop.eup %5645 }
 0x2cd   : > { %v5313_v30 = vadd.f32 -1.0, %v5646_v3  ;;  %v2481_v57 = vld [vmem:[#allocation2 + $0x8] sm:$0xe] }
 0x2ce   : > { %v6477_v6 = vld [vmem:[#allocation2 + $0x8] sm:$0xe]  ;;  %v5328_v8 = vrot.slane %v2481_v57, 9  ;;  %v2563_v26 = vshrl.u32 %v2481_v57, 16  ;;  %v2566_v59 = vshll.u32 %v2481_v57, 16  ;;  %v5648_v31 = vpop.eup %5647 }
 0x2cf   : > { %v2256_v38 = vmul.f32 1.6732632, %v5313_v30  ;;  %v6480_v17 = vld [vmem:[#allocation2 + $0xc] sm:$0x1]  ;;  %v2688_v44 = vld [vmem:[#allocation2 + $0x8] sm:$0xf] }
 0x2d0   : > { %v6484_v35 = vld [vmem:[#allocation2 + $0xc] sm:$0x1]  ;;  %v5314_v14 = vadd.f32 -1.0, %v5648_v31  ;;  %v2510_v23 = vrot.slane %v6480_v17, 5  ;;  %v6491_v19 = vld [vmem:[#allocation2 + $0x10] sm:$0xe] }
 0x2d1   : > { %v5335_v45 = vrot.slane %v6477_v6, 9  ;;  %v2842_v43 = vrot.slane %v6484_v35, 5  ;;  %v2264_v11 = vsel %vm2224_vm13, %v6458_v36, %v2256_v38  ;;  %v6498_v50 = vld [vmem:[#allocation2 + $0x14] sm:$0x1]  ;;  %v5336_v25 = vrot.slane %v6491_v19, 9 }
 0x2d2   : > { %v2537_v63 = vld [vmem:[#allocation2 + $0xc] sm:$0x3]  ;;  %v2565_v15 = vrot.slane %v2563_v26, 5  ;;  %v2272_v46 = vmul.f32 1.050701, %v2264_v11  ;;  %v2511_v10 = vsel %vm5970_vm3, %v5328_v8, %v2510_v23  ;;  %v2846_v7 = vrot.slane %v6498_v50, 5 }
 0x2d3   : > { %v2257_v42 = vmul.f32 1.6732632, %v5314_v14  ;;  %v2843_v33 = vsel %vm5970_vm3, %v5335_v45, %v2842_v43  ;;  %v5355_v34 = vcombine.low %v2507_v32, %v2511_v10  ;;  %v2568_v41 = vrot.slane %v2566_v59, 6  ;;  %v2690_v40 = vld [vmem:[#allocation2 + $0x10] sm:$0xf] }
 0x2d4   : > { %v2572_v36 = vshrl.u32 %v2537_v63, 16  ;;  %v5439_v24 = vpack.c.bf16 %v2272_v46, %v2272_v46  ;;  %v2575_v28 = vshll.u32 %v2537_v63, 16  ;;  %v2705_v49 = vshrl.u32 %v2688_v44, 16  ;;  %v6521_v43 = vld [vmem:[#allocation2 + $0x14] sm:$0x1] }
 0x2d5   : > { %v2265_v51 = vsel %vm2225_vm14, %v6464_v20, %v2257_v42  ;;  %3384 = vrot.lane.b32.xlu0 %v5355_v34, %s5735_s27  ;;  %v2847_v18 = vsel %vm5970_vm3, %v5336_v25, %v2846_v7  ;;  %v2569_v55 = vor.u32 %v2568_v41, %v2565_v15  ;;  %v5485_v53 = vpop.f32.mrb[8].mxu1  ;;  %v2708_v3 = vshll.u32 %v2688_v44, 16 }
 0x2d6   : > { %v2273_v21 = vmul.f32 1.050701, %v2265_v51  ;;  %v2574_v0 = vrot.slane %v2572_v36, 5  ;;  %v2306_v54 = vrot.slane %v5439_v24, 7  ;;  %v5367_v48 = vcombine.low %v2843_v33, %v2847_v18  ;;  %v5486_v20 = vpop.f32.mrb[9].mxu1 }
 0x2d7   : > { %v2577_v16 = vrot.slane %v2575_v28, 6  ;;  %v2570_v5 = vrot.slane %v2569_v55, 4  ;;  %v2707_v47 = vrot.slane %v2705_v49, 4  ;;  %v5487_v62 = vadd.f32 %v5486_v20, %v5485_v53  ;;  %v5488_v30 = vpop.f32.mrb[10].mxu1  ;;  %v2872_v36 = vld [vmem:[#allocation2 + $0xc] sm:$0x3] }
 0x2d8   : > { %v5440_v52 = vpack.c.bf16 %v2273_v21, %v2273_v21  ;;  %v2307_v4 = vrot.slane %v2306_v54, 4  ;;  %2340 = vst.msk [vmem:[#allocation2 + $0x18] sm:$0xe] %vm2334_vm11, %v2306_v54  ;;  %3444 = vrot.lane.b32.xlu1 %v5367_v48, %s5734_s23  ;;  %v2719_v8 = vshrl.u32 %v2690_v40, 16  ;;  %v5489_v59 = vpop.f32.mrb[11].mxu1  ;;  %v2710_v31 = vrot.slane %v2708_v3, 5 }
 0x2d9   : > { %v2578_v57 = vor.u32 %v2577_v16, %v2574_v0  ;;  %v2714_v38 = vshll.u32 %v6484_v35, 16  ;;  %v2722_v32 = vshll.u32 %v2690_v40, 16  ;;  %v2143_v14 = vadd.f32 %v5487_v62, %v6451_v27  ;;  %v6525_v35 = vld [vmem:[#allocation2 + $0x10] sm:$0xe]  ;;  %v5604_v21 = vld [vmem:[%s7321_s5 + $0x8] sm:$0xff]  }
 0x2da   : > { %v2308_v26 = vrot.slane %v5440_v52, 7  ;;  %2341 = vst.msk [vmem:[#allocation2 + $0x1c] sm:$0x1] %vm2336_vm12, %v2307_v4  ;;  %v5490_v44 = vadd.f32 %v5489_v59, %v5488_v30  ;;  %v2721_v45 = vrot.slane %v2719_v8, 4  ;;  %v2711_v63 = vor.u32 %v2710_v31, %v2707_v47  ;;  %v2873_v0 = vld [vmem:[#allocation2 + $0x14] sm:$0x3] }
 0x2db   : > { %v2579_v23 = vsel %vm5983_vm6, %v2570_v5, %v2578_v57  ;;  %v2724_v15 = vrot.slane %v2722_v32, 5  ;;  %v6528_v1 = vadd.f32 %v6442_v9, %v2143_v14  ;;  %v2728_v42 = vshll.u32 %v6498_v50, 16  ;;  %v5603_v9 = vld [vmem:[%s7321_s5] sm:$0xff]   ;;  %v6567_v47 = vld [vmem:[#allocation2 + $0x10] sm:$0xe] }
 0x2dc   : > { %v2309_v11 = vrot.slane %v2308_v26, 4  ;;  %2342 = vst.msk [vmem:[#allocation2 + $0x20] sm:$0xe] %vm2334_vm11, %v2308_v26  ;;  %v5359_v25 = vcombine.low %v6488_v13, %v2579_v23  ;;  %v2146_v46 = vadd.f32 %v5490_v44, %v6451_v27  ;;  %v6534_v10 = vrot.slane %v2378_v39, 5  ;;  %3684 = vmatpush1.bf16.msra.mxu1 %v5603_v9  ;;  %v5605_v57 = vld [vmem:[%s7321_s5 + $0x10] sm:$0xff]  }
 0x2dd   : > { %v2392_v33 = vshll.u32 %v6480_v17, 16  ;;  %v2712_v13 = vrot.slane %v2711_v63, 4  ;;  %v2725_v34 = vor.u32 %v2724_v15, %v2721_v45  ;;  %v2514_v7 = vrot.slane %v6521_v43, 5  ;;  %3685 = vmatprep.subr.bf16.mxu1 %v5731_v12  ;;  %v3208_v31 = vld [vmem:[#allocation2 + $0x14] sm:$0x3]  ;;  %v5606_v15 = vld [vmem:[%s7321_s5 + $0x18] sm:$0xff]  }
 0x2de   : > { %2343 = vst.msk [vmem:[#allocation2 + $0x24] sm:$0x1] %vm2336_vm12, %v2309_v11  ;;  %3404 = vrot.lane.b32.xlu1 %v5359_v25, %s5732_s29  ;;  %v2238_v50 = vmul.f32 1.442695, %v6528_v1  ;;  %v6545_v37 = vadd.f32 %v6446_v2, %v2146_v46  ;;  %v2716_v39 = vrot.slane %v2714_v38, 5  ;;  %v5329_v41 = vrot.slane %v6525_v35, 9 }
 0x2df   : > { %v2726_v24 = vrot.slane %v2725_v34, 4  ;;  %v2730_v51 = vrot.slane %v2728_v42, 5  ;;  %v6548_v28 = vld [vmem:[#allocation2 + $0x18] sm:$0xe]  ;;  %v2881_v49 = vshrl.u32 %v6477_v6, 16  ;;  %v2884_v48 = vshll.u32 %v6477_v6, 16 }
 0x2e0   : > { %5649 = vpow2.f32 %v2238_v50  ;;  %v2240_v18 = vmul.f32 1.442695, %v6545_v37  ;;  %v2717_v2 = vsel %vm6024_vm7, %v2712_v13, %v2716_v39  ;;  %v2515_v55 = vsel %vm5970_vm3, %v5329_v41, %v2514_v7  ;;  %3686 = vmatpush1.bf16.msra.mxu1 %v5604_v21  ;;  %v6583_v13 = vld [vmem:[#allocation2 + $0x18] sm:$0xe] }
 0x2e1   : > { %v2731_v40 = vsel %vm6024_vm7, %v2726_v24, %v2730_v51  ;;  %v6562_v54 = vld [vmem:[#allocation2 + $0x1c] sm:$0x1]  ;;  %v2883_v53 = vrot.slane %v2881_v49, 5  ;;  %v2890_v16 = vshrl.u32 %v2872_v36, 16  ;;  %v5330_v20 = vrot.slane %v6548_v28, 9  ;;  %3687 = vmatprep.subr.bf16.mxu1 %v5731_v12 }
 0x2e2   : > { %5651 = vpow2.f32 %v2240_v18  ;;  %v5363_v52 = vcombine.low %v2717_v2, %v2731_v40  ;;  %v2518_v5 = vrot.slane %v6562_v54, 5  ;;  %v2886_v3 = vrot.slane %v2884_v48, 6 }
 0x2e3   : > { %v2892_v4 = vrot.slane %v2890_v16, 5  ;;  %v2893_v62 = vshll.u32 %v2872_v36, 16  ;;  %v2899_v30 = vshrl.u32 %v6491_v19, 16  ;;  %v2902_v8 = vshll.u32 %v6491_v19, 16 }
 0x2e4   : > { %3424 = vrot.lane.b32.xlu0 %v5363_v52, %s5736_s18  ;;  %v2519_v6 = vsel %vm5970_vm3, %v5330_v20, %v2518_v5  ;;  %v2908_v26 = vshrl.u32 %v2873_v0, 16  ;;  %v2911_v59 = vshll.u32 %v2873_v0, 16  ;;  %v2887_v32 = vor.u32 %v2886_v3, %v2883_v53  ;;  %3688 = vmatpush1.bf16.msra.mxu1 %v5605_v57  ;;  %v5607_v5 = vld [vmem:[%s7321_s5 + $0x20] sm:$0xff]   ;;  %v3209_v57 = vld [vmem:[#allocation2 + $0x1c] sm:$0x3] }
 0x2e5   : > { %v5356_v38 = vcombine.low %v2515_v55, %v2519_v6  ;;  %v2895_v14 = vrot.slane %v2893_v62, 6  ;;  %v2901_v44 = vrot.slane %v2899_v30, 5  ;;  %v5491_v23 = vpop.f32.mrb[12].mxu1  ;;  %v2904_v45 = vrot.slane %v2902_v8, 6  ;;  %3689 = vmatprep.subr.bf16.mxu1 %v5731_v12 }
 0x2e6   : > { %v2910_v11 = vrot.slane %v2908_v26, 5  ;;  %v2913_v25 = vrot.slane %v2911_v59, 6  ;;  %v3217_v63 = vshrl.u32 %v6567_v47, 16  ;;  %v5492_v19 = vpop.f32.mrb[13].mxu1  ;;  %v2888_v46 = vrot.slane %v2887_v32, 4 }
 0x2e7   : > { %3386 = vrot.lane.b32.xlu1 %v5356_v38, %s5735_s27  ;;  %v2896_v42 = vor.u32 %v2895_v14, %v2892_v4  ;;  %v3220_v34 = vshll.u32 %v6567_v47, 16  ;;  %v3226_v7 = vshrl.u32 %v3208_v31, 16  ;;  %v5493_v9 = vadd.f32 %v5492_v19, %v5491_v23  ;;  %v5494_v50 = vpop.f32.mrb[14].mxu1  ;;  %v6607_v14 = vld [vmem:[#allocation2 + $0x14] sm:$0x1] }
 0x2e8   : > { %v2905_v39 = vor.u32 %v2904_v45, %v2901_v44  ;;  %v2914_v41 = vor.u32 %v2913_v25, %v2910_v11  ;;  %v3219_v36 = vrot.slane %v3217_v63, 5  ;;  %v5495_v24 = vpop.f32.mrb[15].mxu1  ;;  %v3229_v18 = vshll.u32 %v3208_v31, 16  ;;  %3690 = vmatpush1.bf16.msra.mxu1 %v5606_v15  ;;  %v5608_v25 = vld [vmem:[%s7321_s5 + $0x28] sm:$0xff]  }
 0x2e9   : > { %v2897_v51 = vsel %vm5983_vm6, %v2888_v46, %v2896_v42  ;;  %v3222_v49 = vrot.slane %v3220_v34, 6  ;;  %v3228_v21 = vrot.slane %v3226_v7, 5  ;;  %v2151_v55 = vadd.f32 %v5493_v9, %v6451_v27  ;;  %3691 = vmatprep.subr.bf16.mxu1 %v5731_v12  ;;  %v3026_v42 = vld [vmem:[#allocation2 + $0x18] sm:$0xf] }
 0x2ea   : > { %v5650_v2 = vpop.eup %5649  ;;  %v5496_v0 = vadd.f32 %v5495_v24, %v5494_v50  ;;  %v2906_v40 = vrot.slane %v2905_v39, 4  ;;  %v3235_v53 = vshrl.u32 %v6583_v13, 16  ;;  %v3231_v52 = vrot.slane %v3229_v18, 6 }
 0x2eb   : > { %v5315_v48 = vadd.f32 -1.0, %v5650_v2  ;;  %v3223_v16 = vor.u32 %v3222_v49, %v3219_v36  ;;  %v3238_v20 = vshll.u32 %v6583_v13, 16  ;;  %v6596_v4 = vadd.f32 %v6440_v56, %v2151_v55 }
 0x2ec   : > { %v5652_v3 = vpop.eup %5651  ;;  %v2154_v62 = vadd.f32 %v5496_v0, %v6451_v27  ;;  %v2915_v30 = vsel %vm5983_vm6, %v2906_v40, %v2914_v41  ;;  %v3237_v6 = vrot.slane %v3235_v53, 5  ;;  %vm2226_vm15 = vcmp.gt.f32.partialorder %v6528_v1, 0.0  ;;  %v3024_v27 = vld [vmem:[#allocation2 + $0x10] sm:$0xf]  ;;  %3692 = vmatpush1.bf16.msra.mxu1 %v5607_v5 }
 0x2ed   : > { %v2258_v8 = vmul.f32 1.6732632, %v5315_v48  ;;  %v5316_v26 = vadd.f32 -1.0, %v5652_v3  ;;  %v5371_v59 = vcombine.low %v2897_v51, %v2915_v30  ;;  %v3224_v31 = vrot.slane %v3223_v16, 4  ;;  %3693 = vmatprep.subr.bf16.mxu1 %v5731_v12  ;;  %v2692_v30 = vld [vmem:[#allocation2 + $0x18] sm:$0xf] }
 0x2ee   : > { %v2242_v38 = vmul.f32 1.442695, %v6596_v4  ;;  %v6605_v56 = vadd.f32 %v6444_v29, %v2154_v62  ;;  %v3232_v32 = vor.u32 %v3231_v52, %v3228_v21  ;;  %v3240_v45 = vrot.slane %v3238_v20, 6  ;;  %v3027_v21 = vld [vmem:[#allocation2 + $0x1c] sm:$0x1] }
 0x2ef   : > { %v2266_v44 = vsel %vm2226_vm15, %v6528_v1, %v2258_v8  ;;  %v2259_v23 = vmul.f32 1.6732632, %v5316_v26  ;;  %3464 = vrot.lane.b32.xlu0 %v5371_v59, %s5737_s24  ;;  %v3244_v11 = vshrl.u32 %v3209_v57, 16  ;;  %vm2227_vm1 = vcmp.gt.f32.partialorder %v6545_v37, 0.0  ;;  %v2693_v59 = vld [vmem:[#allocation2 + $0x1c] sm:$0x1] }
 0x2f0   : > { %v2274_v63 = vmul.f32 1.050701, %v2266_v44  ;;  %5653 = vpow2.f32 %v2242_v38  ;;  %v2244_v29 = vmul.f32 1.442695, %v6605_v56  ;;  %v3233_v15 = vsel %vm5983_vm6, %v3224_v31, %v3232_v32  ;;  %3694 = vmatpush1.bf16.msra.mxu1 %v5608_v25  ;;  %v2694_v44 = vld [vmem:[#allocation2 + $0x20] sm:$0xf] }
 0x2f1   : > { %v2267_v1 = vsel %vm2227_vm1, %v6545_v37, %v2259_v23  ;;  %v3241_v19 = vor.u32 %v3240_v45, %v3237_v6  ;;  %v3246_v46 = vrot.slane %v3244_v11, 5  ;;  %v3247_v9 = vshll.u32 %v3209_v57, 16  ;;  %v5609_v37 = vld [vmem:[%s7321_s5 + $0x30] sm:$0xff]   ;;  %3695 = vmatprep.subr.bf16.mxu1 %v5731_v12  ;;  %v5610_v57 = vld [vmem:[%s7321_s5 + $0x38] sm:$0xff]  }
 0x2f2   : > { %v5441_v34 = vpack.c.bf16 %v2274_v63, %v2274_v63  ;;  %v2275_v7 = vmul.f32 1.050701, %v2267_v1  ;;  %5655 = vpow2.f32 %v2244_v29  ;;  %v3041_v39 = vshrl.u32 %v3024_v27, 16 }
 0x2f3   : > { %v3242_v50 = vrot.slane %v3241_v19, 4  ;;  %v3044_v41 = vshll.u32 %v3024_v27, 16  ;;  %v3050_v36 = vshll.u32 %v6607_v14, 16  ;;  %v3249_v49 = vrot.slane %v3247_v9, 6 }
 0x2f4   : > { %v2310_v24 = vrot.slane %v5441_v34, 7  ;;  %v5442_v51 = vpack.c.bf16 %v2275_v7, %v2275_v7  ;;  %v3055_v18 = vshrl.u32 %v3026_v42, 16  ;;  %v3043_v2 = vrot.slane %v3041_v39, 4  ;;  %3696 = vmatpush1.bf16.msra.mxu1 %v5609_v37  ;;  %v2818_v37 = vld [vmem:[#allocation2 + $0x18] sm:$0xe] }
 0x2f5   : > { %v3046_v55 = vrot.slane %v3044_v41, 5  ;;  %v3052_v0 = vrot.slane %v3050_v36, 5  ;;  %v3058_v40 = vshll.u32 %v3026_v42, 16  ;;  %vm2228_vm5 = vcmp.gt.f32.partialorder %v6596_v4, 0.0  ;;  %3697 = vmatprep.subr.bf16.mxu1 %v5731_v12  ;;  %v2695_v42 = vld [vmem:[#allocation2 + $0x24] sm:$0x1] }
 0x2f6   : > { %v2311_v53 = vrot.slane %v2310_v24, 4  ;;  %2344 = vst.msk [vmem:[#allocation2 + $0x28] sm:$0xe] %vm2334_vm11, %v2310_v24  ;;  %v2312_v48 = vrot.slane %v5442_v51, 7  ;;  %v3250_v16 = vor.u32 %v3249_v49, %v3246_v46  ;;  %v3057_v52 = vrot.slane %v3055_v18, 4 }
 0x2f7   : > { %v3047_v20 = vor.u32 %v3046_v55, %v3043_v2  ;;  %v3060_v5 = vrot.slane %v3058_v40, 5  ;;  %v3064_v3 = vshll.u32 %v3027_v21, 16  ;;  %v5343_v62 = vrot.slane %v6567_v47, 9  ;;  %v2819_v18 = vld [vmem:[#allocation2 + $0x20] sm:$0xe] }
 0x2f8   : > { %2345 = vst.msk [vmem:[#allocation2 + $0x2c] sm:$0x1] %vm2336_vm12, %v2311_v53  ;;  %v2313_v6 = vrot.slane %v2312_v48, 4  ;;  %vm2229_vm9 = vcmp.gt.f32.partialorder %v6605_v56, 0.0  ;;  %v3251_v8 = vsel %vm5983_vm6, %v3242_v50, %v3250_v16  ;;  %v3178_v26 = vrot.slane %v6607_v14, 5  ;;  %3698 = vmatpush1.bf16.msra.mxu1 %v5610_v57 }
 0x2f9   : > { %2346 = vst.msk [vmem:[#allocation2 + $0x30] sm:$0xe] %vm2334_vm11, %v2312_v48  ;;  %v5344_v47 = vrot.slane %v6583_v13, 9  ;;  %v5383_v31 = vcombine.low %v3233_v15, %v3251_v8  ;;  %v3048_v38 = vrot.slane %v3047_v20, 4  ;;  %v3061_v32 = vor.u32 %v3060_v5, %v3057_v52  ;;  %v5611_v15 = vld [vmem:[%s7321_s5 + $0x40] sm:$0xff]   ;;  %3699 = vmatprep.subr.bf16.mxu1 %v5731_v12 }
 0x2fa   : > { %v3066_v27 = vrot.slane %v3064_v3, 5  ;;  %v5654_v23 = vpop.eup %5653  ;;  %2347 = vst.msk [vmem:[#allocation2 + $0x34] sm:$0x1] %vm2336_vm12, %v2313_v6  ;;  %v3179_v45 = vsel %vm5970_vm3, %v5343_v62, %v3178_v26  ;;  %v3182_v11 = vrot.slane %v3027_v21, 5  ;;  %v2733_v25 = vshrl.u32 %v2692_v30, 16 }
 0x2fb   : > { %v2736_v63 = vshll.u32 %v2692_v30, 16  ;;  %v5317_v14 = vadd.f32 -1.0, %v5654_v23  ;;  %5397 = vmatprep.mubr.msk.bf16.mxu1 %vm3524_vm2, %v5383_v31  ;;  %v3053_v13 = vsel %vm6024_vm7, %v3048_v38, %v3052_v0  ;;  %v3062_v29 = vrot.slane %v3061_v32, 4  ;;  %v2874_v62 = vld [vmem:[#allocation2 + $0x1c] sm:$0x3] }
 0x2fc   : > { %v2742_v1 = vshll.u32 %v2693_v59, 16  ;;  %v5656_v19 = vpop.eup %5655  ;;  %v3183_v46 = vsel %vm5970_vm3, %v5344_v47, %v3182_v11  ;;  %v2735_v34 = vrot.slane %v2733_v25, 4  ;;  %v2747_v9 = vshrl.u32 %v2694_v44, 16  ;;  %3700 = vmatpush1.bf16.msra.mxu1 %v5611_v15 }
 0x2fd   : > { %v2738_v7 = vrot.slane %v2736_v63, 5  ;;  %v2260_v50 = vmul.f32 1.6732632, %v5317_v14  ;;  %v5318_v39 = vadd.f32 -1.0, %v5656_v19  ;;  %v3067_v41 = vsel %vm6024_vm7, %v3062_v29, %v3066_v27 }
 0x2fe   : > { %v5379_v36 = vcombine.low %v3179_v45, %v3183_v46  ;;  %v5375_v24 = vcombine.low %v3053_v13, %v3067_v41  ;;  %v2744_v49 = vrot.slane %v2742_v1, 5  ;;  %v2749_v21 = vrot.slane %v2747_v9, 4  ;;  %v2875_v45 = vld [vmem:[#allocation2 + $0x24] sm:$0x3] }
 0x2ff   : > { %v2739_v51 = vor.u32 %v2738_v7, %v2735_v34  ;;  %v2268_v2 = vsel %vm2228_vm5, %v6596_v4, %v2260_v50  ;;  %v2261_v55 = vmul.f32 1.6732632, %v5318_v39  ;;  %v2750_v0 = vshll.u32 %v2694_v44, 16  ;;  %v2538_v50 = vld [vmem:[#allocation2 + $0x14] sm:$0x3] }
 0x300   : > { %3504 = vrot.lane.b32.xlu0 %v5379_v36, %s5738_s19  ;;  %v2756_v40 = vshll.u32 %v2695_v42, 16  ;;  %v2276_v53 = vmul.f32 1.050701, %v2268_v2  ;;  %3484 = vrot.lane.b32.xlu1 %v5375_v24, %s5733_s16  ;;  %v5337_v16 = vrot.slane %v2818_v37, 9  ;;  %v2850_v52 = vrot.slane %v2693_v59, 5 }
 0x301   : > { %v2740_v48 = vrot.slane %v2739_v51, 4  ;;  %v2269_v20 = vsel %vm2229_vm9, %v6605_v56, %v2261_v55  ;;  %v2752_v5 = vrot.slane %v2750_v0, 5  ;;  %v5338_v4 = vrot.slane %v2819_v18, 9 }
 0x302   : > { %v2758_v3 = vrot.slane %v2756_v40, 5  ;;  %v5443_v30 = vpack.c.bf16 %v2276_v53, %v2276_v53  ;;  %v2277_v57 = vmul.f32 1.050701, %v2269_v20  ;;  %v2851_v8 = vsel %vm5970_vm3, %v5337_v16, %v2850_v52 }
 0x303   : > { %v2745_v6 = vsel %vm6024_vm7, %v2740_v48, %v2744_v49  ;;  %v2753_v26 = vor.u32 %v2752_v5, %v2749_v21  ;;  %v2854_v47 = vrot.slane %v2695_v42, 5  ;;  %v2917_v31 = vshrl.u32 %v2818_v37, 16 }
 0x304   : > { %v2920_v59 = vshll.u32 %v2818_v37, 16  ;;  %v2314_v38 = vrot.slane %v5443_v30, 7  ;;  %v5444_v32 = vpack.c.bf16 %v2277_v57, %v2277_v57  ;;  %v2926_v27 = vshrl.u32 %v2874_v62, 16 }
 0x305   : > { %v2929_v56 = vshll.u32 %v2874_v62, 16  ;;  %v2754_v44 = vrot.slane %v2753_v26, 4  ;;  %v2855_v23 = vsel %vm5970_vm3, %v5338_v4, %v2854_v47  ;;  %v2919_v11 = vrot.slane %v2917_v31, 5  ;;  %v6680_v62 = vld [vmem:[#allocation2 + $0x24] sm:$0x1] }
 0x306   : > { %v2922_v25 = vrot.slane %v2920_v59, 6  ;;  %v2315_v63 = vrot.slane %v2314_v38, 4  ;;  %2348 = vst.msk [vmem:[#allocation2 + $0x38] sm:$0xe] %vm2334_vm11, %v2314_v38  ;;  %v2316_v14 = vrot.slane %v5444_v32, 7  ;;  %v5368_v13 = vcombine.low %v2851_v8, %v2855_v23 }
 0x307   : > { %v2928_v29 = vrot.slane %v2926_v27, 5  ;;  %v2759_v1 = vsel %vm6024_vm7, %v2754_v44, %v2758_v3  ;;  %v2931_v19 = vrot.slane %v2929_v56, 6  ;;  %v2935_v46 = vshrl.u32 %v2819_v18, 16  ;;  %v6682_v8 = vld [vmem:[#allocation2 + $0x20] sm:$0xe] }
 0x308   : > { %v2923_v15 = vor.u32 %v2922_v25, %v2919_v11  ;;  %2349 = vst.msk [vmem:[#allocation2 + $0x3c] sm:$0x1] %vm2336_vm12, %v2315_v63  ;;  %v2317_v42 = vrot.slane %v2316_v14, 4  ;;  %v5364_v34 = vcombine.low %v2745_v6, %v2759_v1  ;;  %3446 = vrot.lane.b32.xlu0 %v5368_v13, %s5734_s23  ;;  %v2938_v7 = vshll.u32 %v2819_v18, 16  ;;  %v2539_v18 = vld [vmem:[#allocation2 + $0x1c] sm:$0x3] }
 0x309   : > { %2350 = vst.msk [vmem:[#allocation2 + $0x40] sm:$0xe] %vm2334_vm11, %v2316_v14  ;;  %v2944_v9 = vshrl.u32 %v2875_v45, 16  ;;  %v2406_v39 = vshll.u32 %v6521_v43, 16  ;;  %v2937_v36 = vrot.slane %v2935_v46, 5  ;;  %v2947_v37 = vshll.u32 %v2875_v45, 16 }
 0x30a   : > { %v2924_v41 = vrot.slane %v2923_v15, 4  ;;  %2351 = vst.msk [vmem:[#allocation2 + $0x44] sm:$0x1] %vm2336_vm12, %v2317_v42  ;;  %3426 = vrot.lane.b32.xlu1 %v5364_v34, %s5736_s18  ;;  %v2940_v24 = vrot.slane %v2938_v7, 6  ;;  %v2581_v49 = vshrl.u32 %v6525_v35, 16  ;;  %v2584_v21 = vshll.u32 %v6525_v35, 16 }
 0x30b   : > { %v2946_v51 = vrot.slane %v2944_v9, 5  ;;  %v2932_v2 = vor.u32 %v2931_v19, %v2928_v29  ;;  %v2949_v55 = vrot.slane %v2947_v37, 6  ;;  %v2590_v0 = vshrl.u32 %v2538_v50, 16  ;;  %v6686_v59 = vld [vmem:[#allocation2 + $0x2c] sm:$0x1] }
 0x30c   : > { %v2593_v40 = vshll.u32 %v2538_v50, 16  ;;  %v2941_v53 = vor.u32 %v2940_v24, %v2937_v36  ;;  %v2583_v48 = vrot.slane %v2581_v49, 5  ;;  %v2586_v16 = vrot.slane %v2584_v21, 6  ;;  %v6688_v38 = vld [vmem:[#allocation2 + $0x28] sm:$0xe] }
 0x30d   : > { %v2599_v52 = vshrl.u32 %v6548_v28, 16  ;;  %v2950_v20 = vor.u32 %v2949_v55, %v2946_v51  ;;  %v2592_v5 = vrot.slane %v2590_v0, 5  ;;  %v2602_v4 = vshll.u32 %v6548_v28, 16  ;;  %v6697_v29 = vld [vmem:[#allocation2 + $0x24] sm:$0x1] }
 0x30e   : > { %v2595_v3 = vrot.slane %v2593_v40, 6  ;;  %v2942_v30 = vrot.slane %v2941_v53, 4  ;;  %v2587_v57 = vor.u32 %v2586_v16, %v2583_v48  ;;  %v2608_v6 = vshrl.u32 %v2539_v18, 16  ;;  %v2484_v1 = vld [vmem:[#allocation2 + $0x20] sm:$0xe] }
 0x30f   : > { %v2601_v35 = vrot.slane %v2599_v52, 5  ;;  %v2933_v26 = vsel %vm5983_vm6, %v2924_v41, %v2932_v2  ;;  %v2604_v47 = vrot.slane %v2602_v4, 6  ;;  %v2611_v31 = vshll.u32 %v2539_v18, 16  ;;  %v6701_v42 = vld [vmem:[#allocation2 + $0x28] sm:$0xe] }
 0x310   : > { %v2951_v28 = vsel %vm5983_vm6, %v2942_v30, %v2950_v20  ;;  %v2596_v32 = vor.u32 %v2595_v3, %v2592_v5  ;;  %v2610_v27 = vrot.slane %v2608_v6, 5  ;;  %v3186_v56 = vrot.slane %v6680_v62, 5  ;;  %v3028_v34 = vld [vmem:[#allocation2 + $0x20] sm:$0xf]  ;;  %v6707_v50 = vld [vmem:[#allocation2 + $0x2c] sm:$0x1] }
 0x311   : > { %v5372_v44 = vcombine.low %v2933_v26, %v2951_v28  ;;  %v2588_v23 = vrot.slane %v2587_v57, 4  ;;  %v2605_v45 = vor.u32 %v2604_v47, %v2601_v35  ;;  %v2613_v11 = vrot.slane %v2611_v31, 6  ;;  %v6709_v41 = vld [vmem:[#allocation2 + $0x2c] sm:$0x1]  ;;  %v6711_v36 = vld [vmem:[#allocation2 + $0x28] sm:$0xe] }
 0x312   : > { %v5345_v25 = vrot.slane %v6682_v8, 9  ;;  %v5346_v63 = vrot.slane %v6688_v38, 9  ;;  %v3190_v14 = vrot.slane %v6686_v59, 5  ;;  %v3253_v13 = vshrl.u32 %v6682_v8, 16  ;;  %v6722_v2 = vld [vmem:[#allocation2 + $0x34] sm:$0x1] }
 0x313   : > { %v2420_v15 = vshll.u32 %v6562_v54, 16  ;;  %3466 = vrot.lane.b32.xlu1 %v5372_v44, %s5737_s24  ;;  %v2606_v19 = vrot.slane %v2605_v45, 4  ;;  %v2614_v46 = vor.u32 %v2613_v11, %v2610_v27  ;;  %v2381_v37 = vsel %vm6024_vm7, %v6512_v58, %v6534_v10  ;;  %v6724_v55 = vld [vmem:[#allocation2 + $0x30] sm:$0xe]  ;;  %v3030_v30 = vld [vmem:[#allocation2 + $0x28] sm:$0xf] }
 0x314   : > { %v3187_v7 = vsel %vm5970_vm3, %v5345_v25, %v3186_v56  ;;  %v3191_v9 = vsel %vm5970_vm3, %v5346_v63, %v3190_v14  ;;  %v2597_v24 = vsel %vm5983_vm6, %v2588_v23, %v2596_v32  ;;  %v3256_v49 = vshll.u32 %v6682_v8, 16  ;;  %v2540_v56 = vld [vmem:[#allocation2 + $0x24] sm:$0x3] }
 0x315   : > { %v2615_v51 = vsel %vm5983_vm6, %v2606_v19, %v2614_v46  ;;  %v5380_v21 = vcombine.low %v3187_v7, %v3191_v9  ;;  %v6726_v0 = vrot.slane %v3253_v13, 5  ;;  %v3271_v40 = vshrl.u32 %v6688_v38, 16  ;;  %v2541_v46 = vld [vmem:[#allocation2 + $0x2c] sm:$0x3] }
 0x316   : > { %v5360_v18 = vcombine.low %v2597_v24, %v2615_v51  ;;  %v5331_v53 = vrot.slane %v2484_v1, 9  ;;  %v2522_v48 = vrot.slane %v6697_v29, 5  ;;  %v5332_v16 = vrot.slane %v6701_v42, 9 }
 0x317   : > { %3506 = vrot.lane.b32.xlu1 %v5380_v21, %s5738_s19  ;;  %v2526_v52 = vrot.slane %v6707_v50, 5  ;;  %v5339_v20 = vrot.slane %v6711_v36, 9  ;;  %v2858_v5 = vrot.slane %v6709_v41, 5  ;;  %v5340_v3 = vrot.slane %v6724_v55, 9 }
 0x318   : > { %3406 = vrot.lane.b32.xlu0 %v5360_v18, %s5732_s29  ;;  %v2862_v4 = vrot.slane %v6722_v2, 5  ;;  %v3069_v57 = vshrl.u32 %v3028_v34, 16  ;;  %v2523_v35 = vsel %vm5970_vm3, %v5331_v53, %v2522_v48  ;;  %v3072_v26 = vshll.u32 %v3028_v34, 16 }
 0x319   : > { %v2527_v6 = vsel %vm5970_vm3, %v5332_v16, %v2526_v52  ;;  %v3078_v47 = vshll.u32 %v6680_v62, 16  ;;  %v2859_v28 = vsel %vm5970_vm3, %v5339_v20, %v2858_v5  ;;  %v3274_v44 = vshll.u32 %v6688_v38, 16  ;;  %v2696_v5 = vld [vmem:[#allocation2 + $0x28] sm:$0xf] }
 0x31a   : > { %v5357_v31 = vcombine.low %v2523_v35, %v2527_v6  ;;  %v2863_v32 = vsel %vm5970_vm3, %v5340_v3, %v2862_v4  ;;  %v3071_v27 = vrot.slane %v3069_v57, 4  ;;  %v3074_v45 = vrot.slane %v3072_v26, 5  ;;  %v2698_v35 = vld [vmem:[#allocation2 + $0x30] sm:$0xf] }
 0x31b   : > { %v5369_v23 = vcombine.low %v2859_v28, %v2863_v32  ;;  %v3083_v11 = vshrl.u32 %v3030_v30, 16  ;;  %v3086_v25 = vshll.u32 %v3030_v30, 16  ;;  %v3092_v63 = vshll.u32 %v6686_v59, 16 }
 0x31c   : > { %3388 = vrot.lane.b32.xlu0 %v5357_v31, %s5735_s27  ;;  %v2617_v62 = vshrl.u32 %v2484_v1, 16  ;;  %v2620_v14 = vshll.u32 %v2484_v1, 16  ;;  %v3075_v13 = vor.u32 %v3074_v45, %v3071_v27  ;;  %v2626_v34 = vshrl.u32 %v2540_v56, 16 }
 0x31d   : > { %3448 = vrot.lane.b32.xlu1 %v5369_v23, %s5734_s23  ;;  %v3085_v19 = vrot.slane %v3083_v11, 4  ;;  %v2629_v7 = vshll.u32 %v2540_v56, 16  ;;  %v3080_v9 = vrot.slane %v3078_v47, 5  ;;  %v3088_v24 = vrot.slane %v3086_v25, 5 }
 0x31e   : > { %v2619_v51 = vrot.slane %v2617_v62, 5  ;;  %v2622_v21 = vrot.slane %v2620_v14, 6  ;;  %v3076_v18 = vrot.slane %v3075_v13, 4  ;;  %v2628_v53 = vrot.slane %v2626_v34, 5  ;;  %v6758_v13 = vld [vmem:[#allocation2 + $0x34] sm:$0x1] }
 0x31f   : > { %v2631_v48 = vrot.slane %v2629_v7, 6  ;;  %v2635_v16 = vshrl.u32 %v6701_v42, 16  ;;  %v3089_v52 = vor.u32 %v3088_v24, %v3085_v19  ;;  %v2638_v1 = vshll.u32 %v6701_v42, 16  ;;  %v6760_v19 = vld [vmem:[#allocation2 + $0x30] sm:$0xe] }
 0x320   : > { %v2623_v59 = vor.u32 %v2622_v21, %v2619_v51  ;;  %v2644_v20 = vshrl.u32 %v2541_v46, 16  ;;  %v3094_v3 = vrot.slane %v3092_v63, 5  ;;  %v2647_v57 = vshll.u32 %v2541_v46, 16  ;;  %v6763_v24 = vld [vmem:[#allocation2 + $0x38] sm:$0xe] }
 0x321   : > { %v2632_v4 = vor.u32 %v2631_v48, %v2628_v53  ;;  %v2637_v30 = vrot.slane %v2635_v16, 5  ;;  %v3090_v6 = vrot.slane %v3089_v52, 4  ;;  %v2640_v47 = vrot.slane %v2638_v1, 6  ;;  %v6769_v53 = vld [vmem:[#allocation2 + $0x3c] sm:$0x1] }
 0x322   : > { %v2624_v26 = vrot.slane %v2623_v59, 4  ;;  %v2646_v31 = vrot.slane %v2644_v20, 5  ;;  %v2649_v28 = vrot.slane %v2647_v57, 6  ;;  %v2761_v32 = vshrl.u32 %v2696_v5, 16  ;;  %v2876_v1 = vld [vmem:[#allocation2 + $0x2c] sm:$0x3] }
 0x323   : > { %v2764_v27 = vshll.u32 %v2696_v5, 16  ;;  %v2770_v56 = vshll.u32 %v6709_v41, 16  ;;  %v3081_v23 = vsel %vm6024_vm7, %v3076_v18, %v3080_v9  ;;  %v3095_v42 = vsel %vm6024_vm7, %v3090_v6, %v3094_v3 }
 0x324   : > { %v2641_v45 = vor.u32 %v2640_v47, %v2637_v30  ;;  %v2775_v11 = vshrl.u32 %v2698_v35, 16  ;;  %v5376_v25 = vcombine.low %v3081_v23, %v3095_v42  ;;  %v2650_v63 = vor.u32 %v2649_v28, %v2646_v31 }
 0x325   : > { %v2763_v62 = vrot.slane %v2761_v32, 4  ;;  %v2766_v14 = vrot.slane %v2764_v27, 5  ;;  %v2434_v46 = vshll.u32 %v6697_v29, 16  ;;  %v2778_v7 = vshll.u32 %v2698_v35, 16 }
 0x326   : > { %v2642_v34 = vrot.slane %v2641_v45, 4  ;;  %v2777_v41 = vrot.slane %v2775_v11, 4  ;;  %3486 = vrot.lane.b32.xlu0 %v5376_v25, %s5733_s16  ;;  %v2633_v9 = vsel %vm5983_vm6, %v2624_v26, %v2632_v4  ;;  %v2772_v21 = vrot.slane %v2770_v56, 5  ;;  %v2877_v26 = vld [vmem:[#allocation2 + $0x34] sm:$0x3] }
 0x327   : > { %v2767_v51 = vor.u32 %v2766_v14, %v2763_v62  ;;  %v2784_v18 = vshll.u32 %v6722_v2, 16  ;;  %v2780_v16 = vrot.slane %v2778_v7, 5  ;;  %v5333_v52 = vrot.slane %v6760_v19, 9 }
 0x328   : > { %v2651_v48 = vsel %vm5983_vm6, %v2642_v34, %v2650_v63  ;;  %v2530_v59 = vrot.slane %v6758_v13, 5  ;;  %v5334_v4 = vrot.slane %v6763_v24, 9  ;;  %v2534_v57 = vrot.slane %v6769_v53, 5  ;;  %v3032_v63 = vld [vmem:[#allocation2 + $0x30] sm:$0xf] }
 0x329   : > { %v5361_v20 = vcombine.low %v2633_v9, %v2651_v48  ;;  %v2768_v5 = vrot.slane %v2767_v51, 4  ;;  %v2786_v3 = vrot.slane %v2784_v18, 5  ;;  %v2781_v30 = vor.u32 %v2780_v16, %v2777_v41  ;;  %v3034_v41 = vld [vmem:[#allocation2 + $0x38] sm:$0xf]  ;;  %v3033_v16 = vld [vmem:[#allocation2 + $0x34] sm:$0x1] }
 0x32a   : > { %v2531_v2 = vsel %vm5970_vm3, %v5333_v52, %v2530_v59  ;;  %v2953_v35 = vshrl.u32 %v6711_v36, 16  ;;  %v2956_v47 = vshll.u32 %v6711_v36, 16  ;;  %v2962_v31 = vshrl.u32 %v2876_v1, 16 }
 0x32b   : > { %3408 = vrot.lane.b32.xlu1 %v5361_v20, %s5732_s29  ;;  %v2773_v6 = vsel %vm6024_vm7, %v2768_v5, %v2772_v21  ;;  %v2965_v28 = vshll.u32 %v2876_v1, 16  ;;  %v2782_v32 = vrot.slane %v2781_v30, 4  ;;  %v2535_v27 = vsel %vm5970_vm3, %v5334_v4, %v2534_v57  ;;  %v3035_v5 = vld [vmem:[#allocation2 + $0x3c] sm:$0x1] }
 0x32c   : > { %v2955_v56 = vrot.slane %v2953_v35, 5  ;;  %v2971_v23 = vshrl.u32 %v6724_v55, 16  ;;  %v5358_v42 = vcombine.low %v2531_v2, %v2535_v27  ;;  %v2958_v45 = vrot.slane %v2956_v47, 6  ;;  %v6802_v27 = vld [vmem:[#allocation2 + $0x30] sm:$0xe] }
 0x32d   : > { %v2964_v11 = vrot.slane %v2962_v31, 5  ;;  %v2967_v25 = vrot.slane %v2965_v28, 6  ;;  %v2787_v62 = vsel %vm6024_vm7, %v2782_v32, %v2786_v3  ;;  %v2974_v36 = vshll.u32 %v6724_v55, 16 }
 0x32e   : > { %v2973_v14 = vrot.slane %v2971_v23, 5  ;;  %v2980_v34 = vshrl.u32 %v2877_v26, 16  ;;  %v6792_v7 = vrot.slane %v3256_v49, 6  ;;  %v5365_v9 = vcombine.low %v2773_v6, %v2787_v62  ;;  %v2700_v62 = vld [vmem:[#allocation2 + $0x38] sm:$0xf] }
 0x32f   : > { %3390 = vrot.lane.b32.xlu1 %v5358_v42, %s5735_s27  ;;  %v2959_v51 = vor.u32 %v2958_v45, %v2955_v56  ;;  %v2983_v21 = vshll.u32 %v2877_v26, 16  ;;  %v2976_v18 = vrot.slane %v2974_v36, 6  ;;  %v3097_v52 = vshrl.u32 %v3032_v63, 16  ;;  %v6800_v26 = vld [vmem:[#allocation2 + $0x38] sm:$0xe] }
 0x330   : > { %v2982_v48 = vrot.slane %v2980_v34, 5  ;;  %v3100_v59 = vshll.u32 %v3032_v63, 16  ;;  %3428 = vrot.lane.b32.xlu0 %v5365_v9, %s5736_s18  ;;  %v2968_v55 = vor.u32 %v2967_v25, %v2964_v11  ;;  %v3111_v3 = vshrl.u32 %v3034_v41, 16 }
 0x331   : > { %v2960_v1 = vrot.slane %v2959_v51, 4  ;;  %v2985_v20 = vrot.slane %v2983_v21, 6  ;;  %v2977_v8 = vor.u32 %v2976_v18, %v2973_v14  ;;  %v3099_v49 = vrot.slane %v3097_v52, 4  ;;  %v2702_v18 = vld [vmem:[#allocation2 + $0x40] sm:$0xf] }
 0x332   : > { %v3102_v4 = vrot.slane %v3100_v59, 5  ;;  %v3114_v30 = vshll.u32 %v3034_v41, 16  ;;  %v6798_v2 = vrot.slane %v3271_v40, 5  ;;  %v3106_v35 = vshll.u32 %v3033_v16, 16  ;;  %v2703_v59 = vld [vmem:[#allocation2 + $0x44] sm:$0x1] }
 0x333   : > { %v2986_v57 = vor.u32 %v2985_v20, %v2982_v48  ;;  %v3113_v6 = vrot.slane %v3111_v3, 4  ;;  %v2978_v47 = vrot.slane %v2977_v8, 4  ;;  %v3120_v32 = vshll.u32 %v3035_v5, 16 }
 0x334   : > { %v3103_v31 = vor.u32 %v3102_v4, %v3099_v49  ;;  %v3116_v28 = vrot.slane %v3114_v30, 5  ;;  %v6806_v56 = vrot.slane %v3274_v44, 6  ;;  %v2969_v23 = vsel %vm5983_vm6, %v2960_v1, %v2968_v55  ;;  %v2701_v44 = vld [vmem:[#allocation2 + $0x3c] sm:$0x1]  ;;  %v2822_v55 = vld [vmem:[#allocation2 + $0x38] sm:$0xe] }
 0x335   : > { %v3194_v40 = vrot.slane %v3033_v16, 5  ;;  %v3198_v42 = vrot.slane %v3035_v5, 5  ;;  %v2987_v45 = vsel %vm5983_vm6, %v2978_v47, %v2986_v57  ;;  %v5348_v63 = vrot.slane %v6800_v26, 9  ;;  %v2823_v49 = vld [vmem:[#allocation2 + $0x40] sm:$0xe] }
 0x336   : > { %v3104_v11 = vrot.slane %v3103_v31, 4  ;;  %v3117_v25 = vor.u32 %v3116_v28, %v3113_v6  ;;  %v2448_v14 = vshll.u32 %v6707_v50, 16  ;;  %v5373_v36 = vcombine.low %v2969_v23, %v2987_v45  ;;  %v2878_v45 = vld [vmem:[#allocation2 + $0x3c] sm:$0x3] }
 0x337   : > { %v3108_v34 = vrot.slane %v3106_v35, 5  ;;  %v5347_v38 = vrot.slane %v6802_v27, 9  ;;  %v2462_v41 = vshll.u32 %v6758_v13, 16  ;;  %v3122_v51 = vrot.slane %v3120_v32, 5 }
 0x338   : > { %v3118_v9 = vrot.slane %v3117_v25, 4  ;;  %v3199_v21 = vsel %vm5970_vm3, %v5348_v63, %v3198_v42  ;;  %3468 = vrot.lane.b32.xlu0 %v5373_v36, %s5737_s24  ;;  %v3289_v52 = vshrl.u32 %v6802_v27, 16  ;;  %v2789_v1 = vshrl.u32 %v2700_v62, 16 }
 0x339   : > { %v3109_v48 = vsel %vm6024_vm7, %v3104_v11, %v3108_v34  ;;  %v3195_v16 = vsel %vm5970_vm3, %v5347_v38, %v3194_v40  ;;  %v3292_v5 = vshll.u32 %v6802_v27, 16  ;;  %v3307_v3 = vshrl.u32 %v6800_v26, 16 }
 0x33a   : > { %v3123_v20 = vsel %vm6024_vm7, %v3118_v9, %v3122_v51  ;;  %v2792_v8 = vshll.u32 %v2700_v62, 16  ;;  %v5381_v30 = vcombine.low %v3195_v16, %v3199_v21  ;;  %v2791_v57 = vrot.slane %v2789_v1, 4 }
 0x33b   : > { %v5377_v4 = vcombine.low %v3109_v48, %v3123_v20  ;;  %v2798_v35 = vshll.u32 %v2701_v44, 16  ;;  %v2803_v47 = vshrl.u32 %v2702_v18, 16  ;;  %v2806_v31 = vshll.u32 %v2702_v18, 16 }
 0x33c   : > { %v2794_v6 = vrot.slane %v2792_v8, 5  ;;  %v2812_v28 = vshll.u32 %v2703_v59, 16  ;;  %3508 = vrot.lane.b32.xlu0 %v5381_v30, %s5738_s19  ;;  %v5341_v23 = vrot.slane %v2822_v55, 9  ;;  %v2866_v40 = vrot.slane %v2701_v44, 5  ;;  %v2879_v44 = vld [vmem:[#allocation2 + $0x44] sm:$0x3] }
 0x33d   : > { %3488 = vrot.lane.b32.xlu1 %v5377_v4, %s5733_s16  ;;  %v2800_v32 = vrot.slane %v2798_v35, 5  ;;  %v5342_v42 = vrot.slane %v2823_v49, 9  ;;  %v2805_v25 = vrot.slane %v2803_v47, 4  ;;  %v2808_v63 = vrot.slane %v2806_v31, 5 }
 0x33e   : > { %v2795_v11 = vor.u32 %v2794_v6, %v2791_v57  ;;  %v2814_v62 = vrot.slane %v2812_v28, 5  ;;  %v2867_v36 = vsel %vm5970_vm3, %v5341_v23, %v2866_v40  ;;  %v2870_v34 = vrot.slane %v2703_v59, 5  ;;  %v2542_v40 = vld [vmem:[#allocation2 + $0x34] sm:$0x3] }
 0x33f   : > { %v2989_v38 = vshrl.u32 %v2822_v55, 16  ;;  %v2992_v9 = vshll.u32 %v2822_v55, 16  ;;  %v2809_v21 = vor.u32 %v2808_v63, %v2805_v25  ;;  %v2998_v18 = vshrl.u32 %v2878_v45, 16 }
 0x340   : > { %v2796_v51 = vrot.slane %v2795_v11, 4  ;;  %v3001_v48 = vshll.u32 %v2878_v45, 16  ;;  %v2871_v16 = vsel %vm5970_vm3, %v5342_v42, %v2870_v34  ;;  %v3007_v8 = vshrl.u32 %v2823_v49, 16  ;;  %v2543_v34 = vld [vmem:[#allocation2 + $0x3c] sm:$0x3] }
 0x341   : > { %v2991_v1 = vrot.slane %v2989_v38, 5  ;;  %v2994_v20 = vrot.slane %v2992_v9, 6  ;;  %v2810_v30 = vrot.slane %v2809_v21, 4  ;;  %v5370_v57 = vcombine.low %v2867_v36, %v2871_v16 }
 0x342   : > { %v2801_v4 = vsel %vm6024_vm7, %v2796_v51, %v2800_v32  ;;  %v3000_v35 = vrot.slane %v2998_v18, 5  ;;  %v3003_v6 = vrot.slane %v3001_v48, 6  ;;  %v3009_v55 = vrot.slane %v3007_v8, 5 }
 0x343   : > { %v2995_v59 = vor.u32 %v2994_v20, %v2991_v1  ;;  %v3010_v47 = vshll.u32 %v2823_v49, 16  ;;  %v2815_v31 = vsel %vm6024_vm7, %v2810_v30, %v2814_v62  ;;  %3450 = vrot.lane.b32.xlu0 %v5370_v57, %s5734_s23  ;;  %v3016_v28 = vshrl.u32 %v2879_v44, 16  ;;  %v6845_v1 = vld [vmem:[#allocation2 + $0x4c] sm:$0x1]  ;;  %v6847_v57 = vld [vmem:[#allocation2 + $0x44] sm:$0x1] }
 0x344   : > { %v3019_v23 = vshll.u32 %v2879_v44, 16  ;;  %v2653_v42 = vshrl.u32 %v6760_v19, 16  ;;  %v3310_v45 = vshll.u32 %v6800_v26, 16  ;;  %v5366_v32 = vcombine.low %v2801_v4, %v2815_v31 }
 0x345   : > { %v2996_v11 = vrot.slane %v2995_v59, 4  ;;  %v3012_v25 = vrot.slane %v3010_v47, 6  ;;  %v3018_v63 = vrot.slane %v3016_v28, 5  ;;  %v2656_v49 = vshll.u32 %v6760_v19, 16 }
 0x346   : > { %v3021_v36 = vrot.slane %v3019_v23, 6  ;;  %v2655_v38 = vrot.slane %v2653_v42, 5  ;;  %3430 = vrot.lane.b32.xlu1 %v5366_v32, %s5736_s18  ;;  %v3004_v62 = vor.u32 %v3003_v6, %v3000_v35  ;;  %v2662_v51 = vshrl.u32 %v2542_v40, 16  ;;  %s5554_s18 = smul.u32 48, %s7334_s14 }
 0x347   : > { %v3013_v9 = vor.u32 %v3012_v25, %v3009_v55  ;;  %v2665_v21 = vshll.u32 %v2542_v40, 16  ;;  %v2658_v48 = vrot.slane %v2656_v49, 6  ;;  %v2671_v16 = vshrl.u32 %v6763_v24, 16  ;;  %v6849_v55 = vld [vmem:[#allocation2 + $0x40] sm:$0xe]  ;;  %v3385_v17 = vpop.permute.xlu0 %3384 }
 0x348   : > { %v3022_v18 = vor.u32 %v3021_v36, %v3018_v63  ;;  %v2674_v44 = vshll.u32 %v6763_v24, 16  ;;  %v2664_v8 = vrot.slane %v2662_v51, 5  ;;  %v2680_v30 = vshrl.u32 %v2543_v34, 16  ;;  %v6855_v25 = vld [vmem:[#allocation2 + $0x48] sm:$0xe]  ;;  %s7287_s21 = scalar_lea.vmem %s7326_s10, %s5554_s18 }
 0x349   : > { %v3014_v20 = vrot.slane %v3013_v9, 4  ;;  %v2667_v4 = vrot.slane %v2665_v21, 6  ;;  %v2659_v19 = vor.u32 %v2658_v48, %v2655_v38  ;;  %v2673_v59 = vrot.slane %v2671_v16, 5  ;;  %v3036_v51 = vld [vmem:[#allocation2 + $0x40] sm:$0xf] }
 0x34a   : > { %v2676_v35 = vrot.slane %v2674_v44, 6  ;;  %v2683_v6 = vshll.u32 %v2543_v34, 16  ;;  %v3005_v47 = vsel %vm5983_vm6, %v2996_v11, %v3004_v62  ;;  %v2682_v28 = vrot.slane %v2680_v30, 5  ;;  %v3038_v16 = vld [vmem:[#allocation2 + $0x48] sm:$0xf] }
 0x34b   : > { %v3023_v24 = vsel %vm5983_vm6, %v3014_v20, %v3022_v18  ;;  %v2668_v31 = vor.u32 %v2667_v4, %v2664_v8  ;;  %v2660_v40 = vrot.slane %v2659_v19, 4  ;;  %v5349_v63 = vrot.slane %v6849_v55, 9  ;;  %v2354_v8 = vld [vmem:[#allocation2 + $0x8] sm:$0xf] }
 0x34c   : > { %v5374_v23 = vcombine.low %v3005_v47, %v3023_v24  ;;  %v2677_v42 = vor.u32 %v2676_v35, %v2673_v59  ;;  %v2685_v32 = vrot.slane %v2683_v6, 6  ;;  %v3202_v36 = vrot.slane %v6847_v57, 5 }
 0x34d   : > { %v5350_v34 = vrot.slane %v6855_v25, 9  ;;  %v3206_v38 = vrot.slane %v6845_v1, 5  ;;  %v2476_v11 = vshll.u32 %v6769_v53, 16  ;;  %v6864_v49 = vrot.slane %v3289_v52, 5 }
 0x34e   : > { %3470 = vrot.lane.b32.xlu1 %v5374_v23, %s5737_s24  ;;  %v2678_v62 = vrot.slane %v2677_v42, 4  ;;  %v2686_v9 = vor.u32 %v2685_v32, %v2682_v28  ;;  %v6869_v21 = vrot.slane %v3292_v5, 6  ;;  %v6873_v18 = vrot.slane %v3307_v3, 5  ;;  %v2358_v32 = vld [vmem:[#allocation2 + $0x18] sm:$0xf] }
 0x34f   : > { %v3203_v48 = vsel %vm5970_vm3, %v5349_v63, %v3202_v36  ;;  %v3207_v52 = vsel %vm5970_vm3, %v5350_v34, %v3206_v38  ;;  %v2669_v44 = vsel %vm5983_vm6, %v2660_v40, %v2668_v31  ;;  %v3325_v27 = vshrl.u32 %v6849_v55, 16 }
 0x350   : > { %v2687_v20 = vsel %vm5983_vm6, %v2678_v62, %v2686_v9  ;;  %v5382_v5 = vcombine.low %v3203_v48, %v3207_v52  ;;  %v6884_v26 = vrot.slane %v3310_v45, 6  ;;  %v3125_v4 = vshrl.u32 %v3036_v51, 16  ;;  %v2356_v45 = vld [vmem:[#allocation2 + $0x10] sm:$0xf]  ;;  %v6895_v52 = vpop.permute.xlu1 %3444 }
 0x351   : > { %v5362_v3 = vcombine.low %v2669_v44, %v2687_v20  ;;  %v3128_v30 = vshll.u32 %v3036_v51, 16  ;;  %v3328_v19 = vshll.u32 %v6849_v55, 16  ;;  %v3134_v22 = vshll.u32 %v6847_v57, 16 }
 0x352   : > { %3510 = vrot.lane.b32.xlu1 %v5382_v5, %s5738_s19  ;;  %v3139_v59 = vshrl.u32 %v3038_v16, 16  ;;  %v3142_v35 = vshll.u32 %v3038_v16, 16  ;;  %v3127_v6 = vrot.slane %v3125_v4, 4  ;;  %v3148_v24 = vshll.u32 %v6845_v1, 16 }
 0x353   : > { %3410 = vrot.lane.b32.xlu0 %v5362_v3, %s5732_s29  ;;  %v3130_v47 = vrot.slane %v3128_v30, 5  ;;  %v2383_v31 = vshrl.u32 %v2354_v8, 16  ;;  %v6891_v28 = vrot.slane %v3325_v27, 5  ;;  %v2386_v42 = vshll.u32 %v2354_v8, 16 }
 0x354   : > { %v3141_v23 = vrot.slane %v3139_v59, 4  ;;  %v3144_v40 = vrot.slane %v3142_v35, 5  ;;  %v3343_v63 = vshrl.u32 %v6855_v25, 16  ;;  %v3346_v57 = vshll.u32 %v6855_v25, 16  ;;  %v3210_v59 = vld [vmem:[#allocation2 + $0x24] sm:$0x3] }
 0x355   : > { %v3131_v36 = vor.u32 %v3130_v47, %v3127_v6  ;;  %v2385_v34 = vrot.slane %v2383_v31, 4  ;;  %v3150_v62 = vrot.slane %v3148_v24, 5  ;;  %v2388_v9 = vrot.slane %v2386_v42, 5 }
 0x356   : > { %v3145_v38 = vor.u32 %v3144_v40, %v3141_v23  ;;  %v2397_v51 = vshrl.u32 %v2356_v45, 16  ;;  %v3136_v1 = vrot.slane %v3134_v22, 5  ;;  %v2400_v16 = vshll.u32 %v2356_v45, 16  ;;  %v3211_v45 = vld [vmem:[#allocation2 + $0x2c] sm:$0x3] }
 0x357   : > { %v3132_v48 = vrot.slane %v3131_v36, 4  ;;  %v2411_v44 = vshrl.u32 %v2358_v32, 16  ;;  %v2389_v27 = vor.u32 %v2388_v9, %v2385_v34  ;;  %v2414_v8 = vshll.u32 %v2358_v32, 16 }
 0x358   : > { %v3146_v20 = vrot.slane %v3145_v38, 4  ;;  %v2399_v5 = vrot.slane %v2397_v51, 4  ;;  %v2394_v25 = vrot.slane %v2392_v33, 5  ;;  %v2402_v4 = vrot.slane %v2400_v16, 5  ;;  %v2360_v51 = vld [vmem:[#allocation2 + $0x20] sm:$0xf]  ;;  %v3425_v16 = vpop.permute.xlu0 %3424 }
 0x359   : > { %v3137_v3 = vsel %vm6024_vm7, %v3132_v48, %v3136_v1  ;;  %v2413_v30 = vrot.slane %v2411_v44, 4  ;;  %v2390_v35 = vrot.slane %v2389_v27, 4  ;;  %vm3545_vm3 = vcmask 392192   ;;  %v2362_v27 = vld [vmem:[#allocation2 + $0x28] sm:$0xf] }
 0x35a   : > { %v3151_v22 = vsel %vm6024_vm7, %v3146_v20, %v3150_v62  ;;  %v2416_v6 = vrot.slane %v2414_v8, 5  ;;  %v2403_v24 = vor.u32 %v2402_v4, %v2399_v5  ;;  %v2408_v31 = vrot.slane %v2406_v39, 5  ;;  %v3405_v39 = vpop.permute.xlu1 %3404 }
 0x35b   : > { %v5378_v47 = vcombine.low %v3137_v3, %v3151_v22  ;;  %v3259_v23 = vor.u32 %v6792_v7, %v6726_v0  ;;  %v2395_v33 = vsel %vm6024_vm7, %v2390_v35, %v2394_v25  ;;  %v3262_v42 = vshrl.u32 %v3210_v59, 16 }
 0x35c   : > { %v2417_v40 = vor.u32 %v2416_v6, %v2413_v30  ;;  %v3265_v32 = vshll.u32 %v3210_v59, 16  ;;  %v5351_v43 = vcombine.low %v2381_v37, %v2395_v33  ;;  %v2404_v36 = vrot.slane %v2403_v24, 4  ;;  %v3212_v30 = vld [vmem:[#allocation2 + $0x34] sm:$0x3] }
 0x35d   : > { %3490 = vrot.lane.b32.xlu0 %v5378_v47, %s5733_s16  ;;  %v2422_v0 = vrot.slane %v2420_v15, 5  ;;  %v3277_v7 = vor.u32 %v6806_v56, %v6798_v2  ;;  %v3264_v38 = vrot.slane %v3262_v42, 5  ;;  %v3280_v9 = vshrl.u32 %v3211_v45, 16 }
 0x35e   : > { %v2418_v34 = vrot.slane %v2417_v40, 4  ;;  %v3267_v62 = vrot.slane %v3265_v32, 6  ;;  %v3527_v48 = vsel %vm3524_vm2, %v5351_v43, %v3385_v17  ;;  %v2409_v1 = vsel %vm6024_vm7, %v2404_v36, %v2408_v31 }
 0x35f   : > { %v3260_v58 = vrot.slane %v3259_v23, 4  ;;  %v3283_v10 = vshll.u32 %v3211_v45, 16  ;;  %v3538_v37 = vsel %vm1862_vm0, %v3527_v48, %v3405_v39  ;;  %v3282_v2 = vrot.slane %v3280_v9, 5 }
 0x360   : > { %v2423_v54 = vsel %vm6024_vm7, %v2418_v34, %v2422_v0  ;;  %v3268_v15 = vor.u32 %v3267_v62, %v3264_v38  ;;  %v3278_v44 = vrot.slane %v3277_v7, 4  ;;  %v2425_v5 = vshrl.u32 %v2360_v51, 16  ;;  %v2366_v38 = vld [vmem:[#allocation2 + $0x38] sm:$0xf] }
 0x361   : > { %v6925_v56 = vcombine.low %v2409_v1, %v2423_v54  ;;  %v3285_v20 = vrot.slane %v3283_v10, 6  ;;  %v6929_v8 = vrot.slane %v3328_v19, 6  ;;  %v6931_v3 = vrot.slane %v3343_v63, 5  ;;  %v3465_v50 = vpop.permute.xlu0 %3464 }
 0x362   : > { %v6933_v25 = vrot.slane %v3346_v57, 6  ;;  %v2428_v4 = vshll.u32 %v2360_v51, 16  ;;  %v3547_v59 = vsel %vm3545_vm3, %v3538_v37, %v3425_v16  ;;  %v6938_v22 = vsel %vm5983_vm6, %v3260_v58, %v3268_v15  ;;  %v3213_v57 = vld [vmem:[#allocation2 + $0x3c] sm:$0x3]  ;;  %v3214_v37 = vld [vmem:[#allocation2 + $0x44] sm:$0x3]  ;;  %v3387_v16 = vpop.permute.xlu1 %3386 }
 0x363   : > { %v3286_v35 = vor.u32 %v3285_v20, %v3282_v2  ;;  %v2427_v6 = vrot.slane %v2425_v5, 4  ;;  %v2436_v55 = vrot.slane %v2434_v46, 5  ;;  %v2439_v19 = vshrl.u32 %v2362_v27, 16  ;;  %v2364_v46 = vld [vmem:[#allocation2 + $0x30] sm:$0xf] }
 0x364   : > { %v2430_v47 = vrot.slane %v2428_v4, 5  ;;  %v2442_v24 = vshll.u32 %v2362_v27, 16  ;;  %v3295_v31 = vor.u32 %v6869_v21, %v6864_v49  ;;  %v3298_v45 = vshrl.u32 %v3212_v30, 16  ;;  %v3215_v4 = vld [vmem:[#allocation2 + $0x4c] sm:$0x3] }
 0x365   : > { %v6944_v63 = vsel %vm5983_vm6, %v3278_v44, %v3286_v35  ;;  %v3301_v23 = vshll.u32 %v3212_v30, 16  ;;  %v2441_v40 = vrot.slane %v2439_v19, 4  ;;  %v2450_v42 = vrot.slane %v2448_v14, 5 }
 0x366   : > { %v5384_v17 = vcombine.low %v6938_v22, %v6944_v63  ;;  %v2431_v33 = vor.u32 %v2430_v47, %v2427_v6  ;;  %v2444_v29 = vrot.slane %v2442_v24, 5  ;;  %v3300_v32 = vrot.slane %v3298_v45, 5 }
 0x367   : > { %v3303_v43 = vrot.slane %v3301_v23, 6  ;;  %v3313_v39 = vor.u32 %v6884_v26, %v6873_v18  ;;  %v3316_v21 = vshrl.u32 %v3213_v57, 16  ;;  %v3319_v0 = vshll.u32 %v3213_v57, 16 }
 0x368   : > { %v2432_v36 = vrot.slane %v2431_v33, 4  ;;  %v2445_v49 = vor.u32 %v2444_v29, %v2441_v40  ;;  %v3296_v7 = vrot.slane %v3295_v31, 4  ;;  %v2453_v62 = vshrl.u32 %v2364_v46, 16 }
 0x369   : > { %v3304_v34 = vor.u32 %v3303_v43, %v3300_v32  ;;  %v2456_v9 = vshll.u32 %v2364_v46, 16  ;;  %v3314_v48 = vrot.slane %v3313_v39, 4  ;;  %v3318_v1 = vrot.slane %v3316_v21, 5 }
 0x36a   : > { %v2446_v51 = vrot.slane %v2445_v49, 4  ;;  %v3321_v58 = vrot.slane %v3319_v0, 6  ;;  %v3555_v14 = vsel %vm1875_vm8, %v3547_v59, %v6895_v52  ;;  %v2437_v18 = vsel %vm6024_vm7, %v2432_v36, %v2436_v55 }
 0x36b   : > { %v2455_v26 = vrot.slane %v2453_v62, 4  ;;  %v2458_v10 = vrot.slane %v2456_v9, 5  ;;  %v2467_v2 = vshrl.u32 %v2366_v38, 16  ;;  %v2470_v44 = vshll.u32 %v2366_v38, 16 }
 0x36c   : > { %v2451_v54 = vsel %vm6024_vm7, %v2446_v51, %v2450_v42  ;;  %v3322_v15 = vor.u32 %v3321_v58, %v3318_v1  ;;  %v3305_v27 = vsel %vm5983_vm6, %v3296_v7, %v3304_v34  ;;  %v3331_v52 = vor.u32 %v6929_v8, %v6891_v28 }
 0x36d   : > { %v5353_v20 = vcombine.low %v2437_v18, %v2451_v54  ;;  %v2459_v5 = vor.u32 %v2458_v10, %v2455_v26  ;;  %v2469_v59 = vrot.slane %v2467_v2, 4  ;;  %v2472_v35 = vrot.slane %v2470_v44, 5 }
 0x36e   : > { %v3323_v30 = vsel %vm5983_vm6, %v3314_v48, %v3322_v15  ;;  %v3334_v6 = vshrl.u32 %v3214_v37, 16  ;;  %vm3579_vm11 = vcmask 916480   ;;  %v3337_v19 = vshll.u32 %v3214_v37, 16 }
 0x36f   : > { %v5385_v47 = vcombine.low %v3305_v27, %v3323_v30  ;;  %v2460_v55 = vrot.slane %v2459_v5, 4  ;;  %v2473_v24 = vor.u32 %v2472_v35, %v2469_v59  ;;  %v3349_v31 = vor.u32 %v6933_v25, %v6931_v3 }
 0x370   : > { %v3336_v57 = vrot.slane %v3334_v6, 5  ;;  %v3352_v45 = vshrl.u32 %v3215_v4, 16  ;;  %v3564_v23 = vsel %vm3562_vm10, %v3555_v14, %v3465_v50  ;;  %v3332_v28 = vrot.slane %v3331_v52, 4 }
 0x371   : > { %v3339_v8 = vrot.slane %v3337_v19, 6  ;;  %v3355_v40 = vshll.u32 %v3215_v4, 16  ;;  %v2464_v46 = vrot.slane %v2462_v41, 5  ;;  %v2474_v42 = vrot.slane %v2473_v24, 4 }
 0x372   : > { %v3505_v33 = vpop.permute.xlu0 %3504  ;;  %v3485_v29 = vpop.permute.xlu1 %3484  ;;  %v2478_v32 = vrot.slane %v2476_v11, 5  ;;  %v3354_v43 = vrot.slane %v3352_v45, 5  ;;  %v3350_v3 = vrot.slane %v3349_v31, 4  ;;  %v3530_v60 = vsel %vm3524_vm2, %v6925_v56, %v3387_v16 }
 0x373   : > { %v3572_v39 = vsel %vm1884_vm4, %v3564_v23, %v3485_v29  ;;  %v3340_v36 = vor.u32 %v3339_v8, %v3336_v57  ;;  %v3357_v25 = vrot.slane %v3355_v40, 6  ;;  %v2465_v21 = vsel %vm6024_vm7, %v2460_v55, %v2464_v46  ;;  %v5612_v23 = vld [vmem:[%s7323_s7] sm:$0xff]  }
 0x374   : > { %v3581_v49 = vsel %vm3579_vm11, %v3572_v39, %v3505_v33  ;;  %v2479_v0 = vsel %vm6024_vm7, %v2474_v42, %v2478_v32  ;;  %5544 = vmatprep.subr.bf16.mxu0 %v5612_v23  ;;  %v7017_v33 = vld [vmem:[%s7322_s6] ss:$0 sm:$0xff] }
 0x375   : > { %3716 = vmatmul.mubr.bf16.vlgmr.msra.gmra.mrb[16].mxu1 %v3581_v49  ;;  %v5354_v13 = vcombine.low %v2465_v21, %v2479_v0  ;;  %v3341_v53 = vsel %vm5983_vm6, %v3332_v28, %v3340_v36  ;;  %v3358_v41 = vor.u32 %v3357_v25, %v3354_v43  ;;  %5545 = vmatpush3.bf16.msra.mxu0 %v5612_v23 }
 0x376   : > { %5398 = vmatprep.mubr.msk.bf16.mxu1 %vm3524_vm2, %v5384_v17 }
 0x377   : > { %v3359_v11 = vsel %vm5983_vm6, %v3350_v3, %v3358_v41 }
 0x378   : > { %v5386_v7 = vcombine.low %v3341_v53, %v3359_v11 }
 0x37a   : > { %v3447_v34 = vpop.permute.xlu0 %3446 }
 0x37c   : > { %v3427_v38 = vpop.permute.xlu1 %3426 }
 0x385   : > { %v3467_v51 = vpop.permute.xlu1 %3466 }
 0x389   : > { %v3507_v63 = vpop.permute.xlu1 %3506 }
 0x38a   : > { %v3407_v62 = vpop.permute.xlu0 %3406 }
 0x38b   : > { %v3540_v9 = vsel %vm1862_vm0, %v3530_v60, %v3407_v62 }
 0x38c   : > { %v3549_v48 = vsel %vm3545_vm3, %v3540_v9, %v3427_v38 }
 0x38d   : > { %v3557_v22 = vsel %vm1875_vm8, %v3549_v48, %v3447_v34 }
 0x38e   : > { %v3389_v1 = vpop.permute.xlu0 %3388  ;;  %v3566_v17 = vsel %vm3562_vm10, %v3557_v22, %v3467_v51 }
 0x38f   : > { %v3449_v14 = vpop.permute.xlu1 %3448  ;;  %v3533_v18 = vsel %vm3524_vm2, %v5353_v20, %v3389_v1 }
 0x398   : > { %v3487_v61 = vpop.permute.xlu0 %3486 }
 0x399   : > { %v3574_v58 = vsel %vm1884_vm4, %v3566_v17, %v3487_v61 }
 0x39a   : > { %v3584_v50 = vsel %vm3579_vm11, %v3574_v58, %v3507_v63 }
 0x39b   : > { %3724 = vmatmul.mubr.bf16.gmra.mrb[20].mxu1 %v3584_v50 }
 0x39c   : > { %5399 = vmatprep.mubr.msk.bf16.mxu1 %vm3524_vm2, %v5385_v47 }
 0x39d   : > { %v3409_v56 = vpop.permute.xlu1 %3408 }
 0x39e   : > { %v3542_v10 = vsel %vm1862_vm0, %v3533_v18, %v3409_v56 }
 0x3a1   : > { %v3391_v16 = vpop.permute.xlu1 %3390 }
 0x3a2   : > { %v3429_v26 = vpop.permute.xlu0 %3428  ;;  %v3536_v30 = vsel %vm3524_vm2, %v5354_v13, %v3391_v16 }
 0x3a3   : > { %v3551_v37 = vsel %vm3545_vm3, %v3542_v10, %v3429_v26 }
 0x3a4   : > { %v3559_v15 = vsel %vm1875_vm8, %v3551_v37, %v3449_v14 }
 0x3aa   : > { %v3469_v54 = vpop.permute.xlu0 %3468 }
 0x3ab   : > { %v3568_v2 = vsel %vm3562_vm10, %v3559_v15, %v3469_v54 }
 0x3ae   : > { %v3509_v27 = vpop.permute.xlu0 %3508 }
 0x3af   : > { %v3489_v44 = vpop.permute.xlu1 %3488 }
 0x3b0   : > { %v3576_v5 = vsel %vm1884_vm4, %v3568_v2, %v3489_v44 }
 0x3b1   : > { %v3587_v4 = vsel %vm3579_vm11, %v3576_v5, %v3509_v27 }
 0x3b2   : > { %3732 = vmatmul.mubr.bf16.gmra.mrb[24].mxu1 %v3587_v4 }
 0x3b3   : > { %5400 = vmatprep.mubr.msk.bf16.mxu1 %vm3524_vm2, %v5386_v7 }
 0x3b5   : > { %v3451_v20 = vpop.permute.xlu0 %3450 }
 0x3b8   : > { %v3431_v52 = vpop.permute.xlu1 %3430 }
 0x3c0   : > { %v3471_v47 = vpop.permute.xlu1 %3470 }
 0x3c4   : > { %v3511_v24 = vpop.permute.xlu1 %3510 }
 0x3c5   : > { %v3411_v59 = vpop.permute.xlu0 %3410 }
 0x3c6   : > { %v3544_v35 = vsel %vm1862_vm0, %v3536_v30, %v3411_v59 }
 0x3c7   : > { %v3553_v6 = vsel %vm3545_vm3, %v3544_v35, %v3431_v52 }
 0x3c8   : > { %v3561_v55 = vsel %vm1875_vm8, %v3553_v6, %v3451_v20 }
 0x3c9   : > { %v3570_v19 = vsel %vm3562_vm10, %v3561_v55, %v3471_v47 }
 0x3cf   : > { %v3491_v57 = vpop.permute.xlu0 %3490 }
 0x3d0   : > { %v3578_v31 = vsel %vm1884_vm4, %v3570_v19, %v3491_v57 }
 0x3d1   : > { %v3590_v45 = vsel %vm3579_vm11, %v3578_v31, %v3511_v24 }
 0x3d2   : > { %3740 = vmatmul.mubr.bf16.gmra.mrb[28].mxu1 %v3590_v45 }
 0x448   : > { %v3717_v28 = vpop.f32.mrb[16].mxu1 }
 0x449   : > { %v3718_v8 = vadd.f32 %v7017_v33, %v3717_v28  ;;  %v3719_v40 = vpop.f32.mrb[17].mxu1 }
 0x44a   : > { %v3720_v29 = vpop.f32.mrb[18].mxu1 }
 0x44b   : > { %v3756_v46 = vmul.f32 1.442695, %v3718_v8  ;;  %v3721_v42 = vadd.f32 %v7017_v33, %v3720_v29  ;;  %v3722_v32 = vpop.f32.mrb[19].mxu1  ;;  %vm3748_vm6 = vcmp.gt.f32.partialorder %v3718_v8, 0.0 }
 0x44d   : > { %5657 = vpow2.f32 %v3756_v46  ;;  %v3758_v43 = vmul.f32 1.442695, %v3721_v42  ;;  %vm3749_vm7 = vcmp.gt.f32.partialorder %v3721_v42, 0.0 }
 0x44f   : > { %5659 = vpow2.f32 %v3758_v43 }
 0x457   : > { %v5658_v39 = vpop.eup %5657 }
 0x458   : > { %v5401_v36 = vadd.f32 -1.0, %v5658_v39 }
 0x459   : > { %v5660_v3 = vpop.eup %5659 }
 0x45a   : > { %v3780_v25 = vmul.f32 1.6732632, %v5401_v36  ;;  %v5402_v49 = vadd.f32 -1.0, %v5660_v3 }
 0x45c   : > { %v3788_v21 = vsel %vm3748_vm6, %v3718_v8, %v3780_v25  ;;  %v3781_v0 = vmul.f32 1.6732632, %v5402_v49 }
 0x45d   : > { %v3796_v53 = vmul.f32 1.050701, %v3788_v21 }
 0x45e   : > { %v3789_v13 = vsel %vm3749_vm7, %v3721_v42, %v3781_v0  ;;  %v5615_v0 = vld [vmem:[%s7325_s9 + $0x4] ss:$8 sps:$4 sm:$0xff]  }
 0x45f   : > { %v3797_v41 = vmul.f32 1.050701, %v3789_v13  ;;  %v5618_v13 = vld [vmem:[%s7325_s9 + $0x14] ss:$8 sps:$4 sm:$0xff]   ;;  %3984 = vmatprep.subr.bf16.mxu0 %v5615_v0 }
 0x461   : > { %v3804_v11 = vpack.c.bf16 %v3797_v41, %v3796_v53  ;;  %v5616_v53 = vld [vmem:[%s7325_s9 + $0x10] ss:$8 sps:$4 sm:$0xff]   ;;  %v5619_v41 = vld [vmem:[%s7325_s9 + $0x20] ss:$8 sps:$4 sm:$0xff]  }
 0x463   : > { %5546 = vmatprep.mubr.msk.bf16.mxu0 %vm3524_vm2, %v3804_v11  ;;  %v5409_v11 = vld [vmem:[%s7324_s8] ss:$0 sm:$0xff] }
 0x46e   : > { %v3725_v7 = vpop.f32.mrb[20].mxu1 }
 0x46f   : > { %v3726_v34 = vadd.f32 %v7017_v33, %v3725_v7  ;;  %v3727_v38 = vpop.f32.mrb[21].mxu1 }
 0x470   : > { %v3728_v62 = vpop.f32.mrb[22].mxu1 }
 0x471   : > { %v3760_v60 = vmul.f32 1.442695, %v3726_v34  ;;  %v3729_v9 = vadd.f32 %v7017_v33, %v3728_v62  ;;  %v3730_v51 = vpop.f32.mrb[23].mxu1  ;;  %vm3750_vm0 = vcmp.gt.f32.partialorder %v3726_v34, 0.0 }
 0x473   : > { %5661 = vpow2.f32 %v3760_v60  ;;  %v3762_v48 = vmul.f32 1.442695, %v3729_v9  ;;  %vm3751_vm4 = vcmp.gt.f32.partialorder %v3729_v9, 0.0 }
 0x475   : > { %5663 = vpow2.f32 %v3762_v48 }
 0x47d   : > { %v5662_v1 = vpop.eup %5661 }
 0x47e   : > { %v5403_v22 = vadd.f32 -1.0, %v5662_v1  ;;  %v5622_v1 = vld [vmem:[%s7325_s9 + $0x30] ss:$8 sps:$4 sm:$0xff]  }
 0x47f   : > { %v5664_v63 = vpop.eup %5663 }
 0x480   : > { %v3782_v17 = vmul.f32 1.6732632, %v5403_v22  ;;  %v5404_v61 = vadd.f32 -1.0, %v5664_v63  ;;  %v5624_v22 = vld [vmem:[%s7325_s9 + $0x34] ss:$8 sps:$4 sm:$0xff]  }
 0x482   : > { %v3790_v58 = vsel %vm3750_vm0, %v3726_v34, %v3782_v17  ;;  %v3783_v50 = vmul.f32 1.6732632, %v5404_v61 }
 0x483   : > { %v3798_v18 = vmul.f32 1.050701, %v3790_v58 }
 0x484   : > { %v3791_v14 = vsel %vm3751_vm4, %v3729_v9, %v3783_v50 }
 0x485   : > { %v3733_v56 = vpop.f32.mrb[24].mxu1  ;;  %v3799_v26 = vmul.f32 1.050701, %v3791_v14 }
 0x486   : > { %v3734_v10 = vadd.f32 %v7017_v33, %v3733_v56  ;;  %v3735_v37 = vpop.f32.mrb[25].mxu1 }
 0x487   : > { %v3736_v16 = vpop.f32.mrb[26].mxu1  ;;  %v3805_v54 = vpack.c.bf16 %v3799_v26, %v3798_v18 }
 0x488   : > { %v3764_v15 = vmul.f32 1.442695, %v3734_v10  ;;  %v3737_v2 = vadd.f32 %v7017_v33, %v3736_v16  ;;  %v3738_v44 = vpop.f32.mrb[27].mxu1  ;;  %vm3752_vm12 = vcmp.gt.f32.partialorder %v3734_v10, 0.0  ;;  %v5739_v16 = vmov 1966171168  }
 0x489   : > { %5547 = vmatmul.mubr.msk.bf16.vlgmr.msra.gmra.mrb[16].mxu0 %vm3524_vm2, %v3805_v54  ;;  %v4034_v54 = vunpack.c.l.s4 %v5739_v16 }
 0x48a   : > { %5665 = vpow2.f32 %v3764_v15  ;;  %v3766_v27 = vmul.f32 1.442695, %v3737_v2  ;;  %vm3753_vm13 = vcmp.gt.f32.partialorder %v3737_v2, 0.0  ;;  %v4036_v15 = vlaneseq }
 0x48c   : > { %5667 = vpow2.f32 %v3766_v27  ;;  %v4037_v44 = vshrl.u32 %v4036_v15, 7 }
 0x494   : > { %v5666_v5 = vpop.eup %5665 }
 0x495   : > { %v5405_v4 = vadd.f32 -1.0, %v5666_v5 }
 0x496   : > { %v5668_v20 = vpop.eup %5667 }
 0x497   : > { %v3784_v52 = vmul.f32 1.6732632, %v5405_v4  ;;  %v5406_v30 = vadd.f32 -1.0, %v5668_v20 }
 0x499   : > { %v3792_v59 = vsel %vm3752_vm12, %v3734_v10, %v3784_v52  ;;  %v3785_v35 = vmul.f32 1.6732632, %v5406_v30 }
 0x49a   : > { %v3800_v47 = vmul.f32 1.050701, %v3792_v59 }
 0x49b   : > { %v3793_v6 = vsel %vm3753_vm13, %v3737_v2, %v3785_v35  ;;  %v4035_v2 = vunpack.c.0.s8 %v4034_v54 }
 0x49c   : > { %v3801_v55 = vmul.f32 1.050701, %v3793_v6 }
 0x49d   : > { %v7060_v5 = vsub.s32 %v4035_v2, %v4037_v44 }
 0x49e   : > { %v3806_v19 = vpack.c.bf16 %v3801_v55, %v3800_v47 }
 0x4a0   : > { %5550 = vmatprep.mubr.msk.bf16.mxu0 %vm3524_vm2, %v3806_v19 }
 0x4a5   : > { %v3741_v24 = vpop.f32.mrb[28].mxu1 }
 0x4a6   : > { %v3742_v57 = vadd.f32 %v7017_v33, %v3741_v24  ;;  %v3743_v31 = vpop.f32.mrb[29].mxu1 }
 0x4a7   : > { %v3744_v45 = vpop.f32.mrb[30].mxu1 }
 0x4a8   : > { %v3768_v23 = vmul.f32 1.442695, %v3742_v57  ;;  %v3745_v28 = vadd.f32 %v7017_v33, %v3744_v45  ;;  %v3746_v8 = vpop.f32.mrb[31].mxu1  ;;  %vm3754_vm14 = vcmp.gt.f32.partialorder %v3742_v57, 0.0  ;;  %v5613_v33 = vld [vmem:[%s7325_s9] ss:$8 sps:$4 sm:$0xff]  }
 0x4a9   : > { %3985 = vmatpush1.bf16.msra.mxu0 %v5613_v33 }
 0x4aa   : > { %5669 = vpow2.f32 %v3768_v23  ;;  %v3770_v40 = vmul.f32 1.442695, %v3745_v28  ;;  %vm3755_vm15 = vcmp.gt.f32.partialorder %v3745_v28, 0.0  ;;  %3986 = vmatprep.subr.bf16.mxu0 %v5618_v13 }
 0x4ac   : > { %5671 = vpow2.f32 %v3770_v40 }
 0x4ad   : > { %3987 = vmatpush1.bf16.msra.mxu0 %v5616_v53 }
 0x4b4   : > { %v5670_v29 = vpop.eup %5669 }
 0x4b5   : > { %v5407_v46 = vadd.f32 -1.0, %v5670_v29 }
 0x4b6   : > { %v5672_v42 = vpop.eup %5671 }
 0x4b7   : > { %v3786_v32 = vmul.f32 1.6732632, %v5407_v46  ;;  %v5408_v43 = vadd.f32 -1.0, %v5672_v42 }
 0x4b9   : > { %v3794_v39 = vsel %vm3754_vm14, %v3742_v57, %v3786_v32  ;;  %v3787_v36 = vmul.f32 1.6732632, %v5408_v43 }
 0x4ba   : > { %v3802_v25 = vmul.f32 1.050701, %v3794_v39 }
 0x4bb   : > { %v3795_v3 = vsel %vm3755_vm15, %v3745_v28, %v3787_v36 }
 0x4bc   : > { %v3803_v49 = vmul.f32 1.050701, %v3795_v3 }
 0x4be   : > { %v3807_v21 = vpack.c.bf16 %v3803_v49, %v3802_v25 }
 0x4c0   : > { %5551 = vmatmul.mubr.msk.bf16.gmra.mrb[20].mxu0 %vm3524_vm2, %v3807_v21 }
 0x4c1   : > { %4016 = vmatprep.mubr.bf16.mxu0 %v5731_v12  ;;  %v5621_v12 = vld [vmem:[%s7325_s9 + $0x24] ss:$8 sps:$4 sm:$0xff]  }
 0x4c2   : > { %3988 = vmatprep.subr.bf16.mxu0 %v5621_v12 }
 0x4c3   : > { %3989 = vmatpush1.bf16.msra.mxu0 %v5619_v41 }
 0x4c4   : > { %3990 = vmatprep.subr.bf16.mxu0 %v5624_v22 }
 0x4c7   : > { %3991 = vmatpush1.bf16.msra.mxu0 %v5622_v1 }
 0x55c   : > { %v5548_v7 = vpop.f32.mrb[16].mxu0 }
 0x55d   : > { %v3869_v34 = vpop.f32.mrb[17].mxu0  ;;  %v3878_v51 = vadd.f32 %v5548_v7, %v5409_v11 }
 0x55e   : > { %v3870_v38 = vadd.f32 %v5409_v11, %v3869_v34  ;;  %v5549_v62 = vpop.f32.mrb[18].mxu0 }
 0x55f   : > { %v3872_v60 = vpop.f32.mrb[19].mxu0  ;;  %v3881_v48 = vadd.f32 %v5549_v62, %v5409_v11 }
 0x560   : > { %3900 = vxpose.xlu0.b32.start [1/8] (short) (narrow) %v3870_v38, 16  ;;  %v3873_v9 = vadd.f32 %v5409_v11, %v3872_v60 }
 0x564   : > { %3901 = vxpose.xlu0.b32.cont [2/8] (short) (narrow) %v3873_v9, 16 }
 0x568   : > { %3902 = vxpose.xlu0.b32.cont [3/8] (short) (narrow) %v3878_v51, 16 }
 0x56c   : > { %3903 = vxpose.xlu0.b32.cont [4/8] (short) (narrow) %v3881_v48, 16 }
 0x593   : > { %v5552_v63 = vpop.f32.mrb[20].mxu0 }
 0x594   : > { %v3885_v17 = vpop.f32.mrb[21].mxu0  ;;  %v3894_v18 = vadd.f32 %v5552_v63, %v5409_v11 }
 0x595   : > { %v3886_v61 = vadd.f32 %v5409_v11, %v3885_v17  ;;  %v5553_v58 = vpop.f32.mrb[22].mxu0 }
 0x596   : > { %v3897_v50 = vadd.f32 %v5553_v58, %v5409_v11  ;;  %v3888_v14 = vpop.f32.mrb[23].mxu0 }
 0x597   : > { %3904 = vxpose.xlu0.b32.cont [5/8] (short) (narrow) %v3886_v61, 16  ;;  %v3889_v56 = vadd.f32 %v5409_v11, %v3888_v14 }
 0x59b   : > { %3905 = vxpose.xlu0.b32.cont [6/8] (short) (narrow) %v3889_v56, 16 }
 0x59f   : > { %3906 = vxpose.xlu0.b32.cont [7/8] (short) (narrow) %v3894_v18, 16 }
 0x5a3   : > { %3907 = vxpose.xlu0.b32.end [8/8] (short) (narrow) %v3897_v50, 16 }
 0x607   : > { %v3916_v26 = vpop.trf.xlu0 }
 0x60b   : > { %v3917_v10 = vpop.trf.xlu0 }
 0x60c   : > { %v3932_v37 = vpack.c.bf16 %v3917_v10, %v3916_v26 }
 0x60e   : > { %5423 = vmatmul.mubr.msk.bf16.vlgmr.msra.gmra.mrb[24].mxu0 %vm1875_vm8, %v3932_v37  ;;  %vm4319_vm8 = vcmask 1044480  }
 0x6e1   : > { %v4018_v27 = vpop.f32.mrb[24].mxu0 }
 0x6e2   : > { %v4020_v4 = vpop.f32.mrb[25].mxu0 }
 0x6e3   : > { %v4031_v20 = vcombine.low %v4018_v27, %v4020_v4  ;;  %v4032_v52 = vcombine.high %v4018_v27, %v4020_v4  ;;  %v4022_v30 = vpop.f32.mrb[26].mxu0 }
 0x6e4   : > { %v4024_v59 = vpop.f32.mrb[27].mxu0 }
 0x6e5   : > { %v4039_v35 = vrot.slane %v4031_v20, %v7060_v5  ;;  %v4046_v6 = vrot.slane %v4032_v52, %v7060_v5  ;;  %v4081_v47 = vcombine.low %v4022_v30, %v4024_v59  ;;  %v4082_v55 = vcombine.high %v4022_v30, %v4024_v59 }
 0x6e7   : > { %v4047_v19 = vcombine.high %v4039_v35, %v4039_v35  ;;  %v4048_v24 = vcombine.high %v4046_v6, %v4046_v6  ;;  %v7065_v57 = vrot.slane %v4046_v6, %v7060_v5  ;;  %v4089_v31 = vrot.slane %v4081_v47, %v7060_v5 }
 0x6e8   : > { %v4096_v45 = vrot.slane %v4082_v55, %v7060_v5  ;;  %v7070_v23 = vrot.slane %v4039_v35, %v7060_v5 }
 0x6e9   : > { %v7073_v28 = vrot.slane %v4047_v19, %v7060_v5  ;;  %v7076_v8 = vrot.slane %v4048_v24, %v7060_v5  ;;  %v7080_v40 = vcombine.high %v7065_v57, %v7065_v57  ;;  %v4167_v29 = vrot.slane %v7065_v57, %v7060_v5 }
 0x6ea   : > { %v4097_v46 = vcombine.high %v4089_v31, %v4089_v31  ;;  %v4098_v42 = vcombine.high %v4096_v45, %v4096_v45  ;;  %v7095_v25 = vrot.slane %v4089_v31, %v7060_v5  ;;  %v7098_v49 = vrot.slane %v4096_v45, %v7060_v5 }
 0x6eb   : > { %v7086_v32 = vcombine.high %v7076_v8, %v7076_v8  ;;  %v4145_v43 = vcombine.low %v7070_v23, %v7073_v28  ;;  %v5424_v39 = vcombine.high %v7070_v23, %v7073_v28  ;;  %v4170_v36 = vcombine.high %v4167_v29, %v4167_v29 }
 0x6ec   : > { %v4201_v3 = vcombine.low %v7076_v8, %v7080_v40  ;;  %v7103_v0 = vrot.slane %v4097_v46, %v7060_v5  ;;  %v7106_v13 = vrot.slane %v4098_v42, %v7060_v5  ;;  %v4191_v53 = vrot.slane %v4167_v29, %v7060_v5 }
 0x6ed   : > { %v4153_v21 = vrot.slane %v4145_v43, %v7060_v5  ;;  %v4160_v33 = vrot.slane %v5424_v39, %v7060_v5  ;;  %v7111_v12 = vcombine.high %v7098_v49, %v7098_v49  ;;  %v4198_v7 = vrot.slane %v4170_v36, %v7060_v5 }
 0x6ee   : > { %v4202_v34 = vcombine.low %v7086_v32, %v7095_v25  ;;  %v4223_v38 = vrot.slane %v7103_v0, %v7060_v5  ;;  %v5425_v62 = vcombine.high %v7095_v25, %v7103_v0  ;;  %v4258_v60 = vcombine.low %v7098_v49, %v7106_v13 }
 0x6ef   : > { %v4168_v41 = vcombine.low %v4153_v21, %v4160_v33  ;;  %v4169_v11 = vcombine.high %v4153_v21, %v4160_v33  ;;  %v4279_v9 = vrot.slane %v7111_v12, %v7060_v5  ;;  %v4209_v1 = vrot.slane %v4201_v3, %v7060_v5 }
 0x6f0   : > { %v4216_v22 = vrot.slane %v4202_v34, %v7060_v5  ;;  %v4226_v63 = vcombine.high %v4223_v38, %v4223_v38  ;;  %v4247_v17 = vrot.slane %v4223_v38, %v7060_v5  ;;  %v4265_v61 = vrot.slane %v5425_v62, %v7060_v5 }
 0x6f1   : > { %v4177_v51 = vrot.slane %v4168_v41, %v7060_v5  ;;  %v4184_v48 = vrot.slane %v4169_v11, %v7060_v5  ;;  %v4272_v58 = vrot.slane %v4258_v60, %v7060_v5  ;;  %v4282_v16 = vcombine.high %v4279_v9, %v4279_v9 }
 0x6f2   : > { %v4224_v56 = vcombine.low %v4209_v1, %v4216_v22  ;;  %v4225_v18 = vcombine.high %v4209_v1, %v4216_v22  ;;  %v4254_v26 = vrot.slane %v4226_v63, %v7060_v5  ;;  %v4303_v35 = vrot.slane %v4279_v9, %v7060_v5 }
 0x6f3   : > { %v4199_v50 = vcombine.low %v4177_v51, %v4191_v53  ;;  %v4200_v14 = vcombine.low %v4184_v48, %v4198_v7  ;;  %v4280_v10 = vcombine.low %v4265_v61, %v4272_v58  ;;  %v4281_v37 = vcombine.high %v4265_v61, %v4272_v58 }
 0x6f4   : > { %v4233_v2 = vrot.slane %v4224_v56, %v7060_v5  ;;  %v4240_v44 = vrot.slane %v4225_v18, %v7060_v5  ;;  %v4310_v6 = vrot.slane %v4282_v16, %v7060_v5  ;;  %v4077_v56 = vcombine.high %v7070_v23, %v7070_v23 }
 0x6f5   : > { %v4320_v54 = vsel %vm4319_vm8, %v4199_v50, -inf  ;;  %v4327_v15 = vsel %vm4319_vm8, %v4200_v14, -inf  ;;  %v4289_v20 = vrot.slane %v4280_v10, %v7060_v5  ;;  %v4296_v52 = vrot.slane %v4281_v37, %v7060_v5 }
 0x6f6   : > { %v4321_v27 = vrot.slane %v4320_v54, 4  ;;  %v4328_v4 = vrot.slane %v4327_v15, 4  ;;  %v4255_v30 = vcombine.low %v4233_v2, %v4247_v17  ;;  %v4256_v59 = vcombine.low %v4240_v44, %v4254_v26 }
 0x6f7   : > { %v4311_v19 = vcombine.low %v4289_v20, %v4303_v35  ;;  %v4312_v24 = vcombine.low %v4296_v52, %v4310_v6  ;;  %v4127_v2 = vcombine.high %v7095_v25, %v7095_v25 }
 0x6f8   : > { %v4322_v47 = vmax.f32 %v4320_v54, %v4321_v27  ;;  %v4329_v55 = vmax.f32 %v4327_v15, %v4328_v4  ;;  %v4334_v31 = vsel %vm4319_vm8, %v4255_v30, -inf  ;;  %v4341_v45 = vsel %vm4319_vm8, %v4256_v59, -inf }
 0x6f9   : > { %v4335_v42 = vrot.slane %v4334_v31, 4  ;;  %v4342_v43 = vrot.slane %v4341_v45, 4  ;;  %v4348_v39 = vsel %vm4319_vm8, %v4311_v19, -inf  ;;  %v4355_v36 = vsel %vm4319_vm8, %v4312_v24, -inf }
 0x6fa   : > { %v4323_v29 = vrot.slane %v4322_v47, 2  ;;  %v4330_v46 = vrot.slane %v4329_v55, 2  ;;  %v4349_v41 = vrot.slane %v4348_v39, 4  ;;  %v4356_v11 = vrot.slane %v4355_v36, 4 }
 0x6fb   : > { %v4336_v33 = vmax.f32 %v4334_v31, %v4335_v42  ;;  %v4343_v53 = vmax.f32 %v4341_v45, %v4342_v43  ;;  %v4079_v15 = vcombine.high %v7073_v28, %v7073_v28  ;;  %v4129_v59 = vcombine.high %v7103_v0, %v7103_v0 }
 0x6fc   : > { %v4324_v3 = vmax.f32 %v4322_v47, %v4323_v29  ;;  %v4331_v21 = vmax.f32 %v4329_v55, %v4330_v46  ;;  %v4350_v60 = vmax.f32 %v4348_v39, %v4349_v41  ;;  %v4357_v9 = vmax.f32 %v4355_v36, %v4356_v11 }
 0x6fd   : > { %v4337_v38 = vrot.slane %v4336_v33, 2  ;;  %v4344_v62 = vrot.slane %v4343_v53, 2 }
 0x6fe   : > { %v4325_v7 = vrot.slane %v4324_v3, 1  ;;  %v4332_v34 = vrot.slane %v4331_v21, 1  ;;  %v4351_v63 = vrot.slane %v4350_v60, 2  ;;  %v4358_v17 = vrot.slane %v4357_v9, 2 }
 0x6ff   : > { %v4338_v1 = vmax.f32 %v4336_v33, %v4337_v38  ;;  %v4345_v22 = vmax.f32 %v4343_v53, %v4344_v62 }
 0x700   : > { %v4326_v51 = vmax.f32 %v4324_v3, %v4325_v7  ;;  %v4333_v48 = vmax.f32 %v4331_v21, %v4332_v34  ;;  %v4352_v18 = vmax.f32 %v4350_v60, %v4351_v63  ;;  %v4359_v26 = vmax.f32 %v4357_v9, %v4358_v17 }
 0x701   : > { %v4339_v50 = vrot.slane %v4338_v1, 1  ;;  %v4346_v14 = vrot.slane %v4345_v22, 1 }
 0x702   : > { %v4368_v61 = vcombine.low %v4326_v51, %v4333_v48  ;;  %v4369_v58 = vcombine.high %v4326_v51, %v4333_v48  ;;  %v4353_v44 = vrot.slane %v4352_v18, 1  ;;  %v4360_v27 = vrot.slane %v4359_v26, 1 }
 0x703   : > { %v4340_v16 = vmax.f32 %v4338_v1, %v4339_v50  ;;  %v4347_v54 = vmax.f32 %v4345_v22, %v4346_v14 }
 0x704   : > { %v4376_v10 = vrot.slane %v4368_v61, %v7060_v5  ;;  %v4383_v37 = vrot.slane %v4369_v58, %v7060_v5  ;;  %v4354_v35 = vmax.f32 %v4352_v18, %v4353_v44  ;;  %v4361_v6 = vmax.f32 %v4359_v26, %v4360_v27 }
 0x705   : > { %v4408_v30 = vcombine.low %v4340_v16, %v4347_v54  ;;  %v4409_v47 = vcombine.high %v4340_v16, %v4347_v54 }
 0x706   : > { %v4384_v4 = vcombine.high %v4376_v10, %v4376_v10  ;;  %v4391_v20 = vrot.slane %v4376_v10, %v7060_v5  ;;  %v4398_v52 = vrot.slane %v4383_v37, %v7060_v5  ;;  %v4448_v46 = vcombine.low %v4354_v35, %v4361_v6 }
 0x707   : > { %v4416_v45 = vrot.slane %v4408_v30, %v7060_v5  ;;  %v4423_v29 = vrot.slane %v4409_v47, %v7060_v5  ;;  %v4449_v42 = vcombine.high %v4354_v35, %v4361_v6 }
 0x708   : > { %v4405_v55 = vrot.slane %v4384_v4, %v7060_v5  ;;  %v4406_v19 = vcombine.high %v4391_v20, %v4391_v20  ;;  %v4503_v24 = vsub.f32 %v7070_v23, %v4391_v20  ;;  %v4507_v31 = vsub.f32 %v7065_v57, %v4398_v52 }
 0x709   : > { %v4424_v33 = vcombine.high %v4416_v45, %v4416_v45  ;;  %v4431_v53 = vrot.slane %v4416_v45, %v7060_v5  ;;  %v4438_v41 = vrot.slane %v4423_v29, %v7060_v5  ;;  %v4456_v38 = vrot.slane %v4448_v46, %v7060_v5 }
 0x70a   : > { %v4407_v43 = vcombine.high %v4405_v55, %v4405_v55  ;;  %v4504_v39 = vsub.f32 %v7073_v28, %v4405_v55  ;;  %v4505_v36 = vsub.f32 %v4077_v56, %v4406_v19  ;;  %v4518_v3 = vmul.f32 1.442695, %v4503_v24 }
 0x70b   : > { %v4526_v21 = vmul.f32 1.442695, %v4507_v31  ;;  %v4445_v7 = vrot.slane %v4424_v33, %v7060_v5  ;;  %v4446_v34 = vcombine.high %v4431_v53, %v4431_v53  ;;  %v4463_v62 = vrot.slane %v4449_v42, %v7060_v5 }
 0x70c   : > { %v4506_v23 = vsub.f32 %v4079_v15, %v4407_v43  ;;  %5673 = vpow2.f32 %v4518_v3  ;;  %v4520_v57 = vmul.f32 1.442695, %v4504_v39  ;;  %v4522_v11 = vmul.f32 1.442695, %v4505_v36 }
 0x70d   : > { %5675 = vpow2.f32 %v4526_v21  ;;  %v4508_v60 = vsub.f32 %v7076_v8, %v4431_v53  ;;  %v4447_v9 = vcombine.high %v4445_v7, %v4445_v7  ;;  %v4464_v51 = vcombine.high %v4456_v38, %v4456_v38 }
 0x70e   : > { %5677 = vpow2.f32 %v4520_v57  ;;  %v4524_v28 = vmul.f32 1.442695, %v4506_v23  ;;  %v4471_v48 = vrot.slane %v4456_v38, %v7060_v5  ;;  %v4478_v1 = vrot.slane %v4463_v62, %v7060_v5 }
 0x70f   : > { %5679 = vpow2.f32 %v4522_v11  ;;  %v4509_v22 = vsub.f32 %v7080_v40, %v4445_v7  ;;  %v4510_v63 = vsub.f32 %v7086_v32, %v4446_v34  ;;  %v4485_v17 = vrot.slane %v4464_v51, %v7060_v5 }
 0x710   : > { %5681 = vpow2.f32 %v4524_v28  ;;  %v4486_v61 = vcombine.high %v4471_v48, %v4471_v48  ;;  %v4511_v58 = vsub.f32 %v7095_v25, %v4447_v9  ;;  %v4512_v50 = vsub.f32 %v7103_v0, %v4438_v41 }
 0x711   : > { %v4513_v8 = vsub.f32 %v4127_v2, %v4471_v48  ;;  %v4517_v14 = vsub.f32 %v7111_v12, %v4478_v1  ;;  %v4528_v56 = vmul.f32 1.442695, %v4508_v60  ;;  %v4530_v18 = vmul.f32 1.442695, %v4509_v22 }
 0x712   : > { %v4487_v26 = vcombine.high %v4485_v17, %v4485_v17  ;;  %v4514_v10 = vsub.f32 %v4129_v59, %v4485_v17  ;;  %v4515_v37 = vsub.f32 %v7098_v49, %v4486_v61  ;;  %v4532_v16 = vmul.f32 1.442695, %v4510_v63 }
 0x713   : > { %5683 = vpow2.f32 %v4528_v56  ;;  %v4534_v40 = vmul.f32 1.442695, %v4511_v58  ;;  %v4536_v32 = vmul.f32 1.442695, %v4512_v50  ;;  %v4538_v15 = vmul.f32 1.442695, %v4513_v8 }
 0x714   : > { %v4516_v54 = vsub.f32 %v7106_v13, %v4487_v26  ;;  %5685 = vpow2.f32 %v4530_v18  ;;  %v4540_v0 = vmul.f32 1.442695, %v4514_v10  ;;  %v4542_v12 = vmul.f32 1.442695, %v4515_v37 }
 0x715   : > { %5687 = vpow2.f32 %v4532_v16  ;;  %v4546_v20 = vmul.f32 1.442695, %v4517_v14 }
 0x716   : > { %v7178_v25 = vpop.eup %5673  ;;  %5689 = vpow2.f32 %v4534_v40  ;;  %v4544_v49 = vmul.f32 1.442695, %v4516_v54 }
 0x717   : > { %v7180_v2 = vpop.eup %5675  ;;  %5691 = vpow2.f32 %v4536_v32 }
 0x718   : > { %v7182_v44 = vpop.eup %5677  ;;  %v4585_v13 = vrot.slane %v7180_v2, %v7060_v5  ;;  %5693 = vpow2.f32 %v4538_v15 }
 0x719   : > { %v7184_v27 = vpop.eup %5679  ;;  %v4563_v4 = vcombine.low %v7178_v25, %v7182_v44  ;;  %5695 = vpow2.f32 %v4540_v0 }
 0x71a   : > { %v7190_v52 = vpop.eup %5681  ;;  %5697 = vpow2.f32 %v4542_v12  ;;  %v4588_v6 = vcombine.high %v4585_v13, %v4585_v13  ;;  %v4609_v43 = vrot.slane %v4585_v13, %v7060_v5 }
 0x71b   : > { %v4564_v30 = vcombine.low %v7184_v27, %v7190_v52  ;;  %5699 = vpow2.f32 %v4544_v49  ;;  %v4571_v59 = vrot.slane %v4563_v4, %v7060_v5 }
 0x71c   : > { %5701 = vpow2.f32 %v4546_v20  ;;  %v4616_v39 = vrot.slane %v4588_v6, %v7060_v5 }
 0x71d   : > { %v4578_v35 = vrot.slane %v4564_v30, %v7060_v5  ;;  %v7196_v47 = vpop.eup %5683 }
 0x71e   : > { %v7198_v55 = vpop.eup %5685 }
 0x71f   : > { %v4586_v19 = vcombine.low %v4571_v59, %v4578_v35  ;;  %v4587_v24 = vcombine.high %v4571_v59, %v4578_v35  ;;  %v7200_v31 = vpop.eup %5687  ;;  %v4619_v45 = vcombine.low %v7196_v47, %v7198_v55 }
 0x720   : > { %v7204_v29 = vpop.eup %5689 }
 0x721   : > { %v4595_v46 = vrot.slane %v4586_v19, %v7060_v5  ;;  %v4602_v42 = vrot.slane %v4587_v24, %v7060_v5  ;;  %v7210_v36 = vpop.eup %5691  ;;  %v4620_v3 = vcombine.low %v7200_v31, %v7204_v29  ;;  %v4627_v57 = vrot.slane %v4619_v45, %v7060_v5 }
 0x722   : > { %v7214_v21 = vpop.eup %5693  ;;  %v4641_v41 = vrot.slane %v7210_v36, %v7060_v5 }
 0x723   : > { %v4617_v33 = vcombine.low %v4595_v46, %v4609_v43  ;;  %v4618_v53 = vcombine.low %v4602_v42, %v4616_v39  ;;  %v7218_v23 = vpop.eup %5695  ;;  %v4634_v11 = vrot.slane %v4620_v3, %v7060_v5 }
 0x724   : > { %v7222_v7 = vpop.eup %5697  ;;  %v4644_v28 = vcombine.high %v4641_v41, %v4641_v41  ;;  %v4665_v22 = vrot.slane %v4641_v41, %v7060_v5  ;;  %v4675_v17 = vcombine.low %v7214_v21, %v7218_v23 }
 0x725   : > { %v4737_v34 = vsel %vm4319_vm8, %v4617_v33, 0.0  ;;  %v4744_v38 = vsel %vm4319_vm8, %v4618_v53, 0.0  ;;  %v7226_v62 = vpop.eup %5699  ;;  %v4642_v51 = vcombine.low %v4627_v57, %v4634_v11  ;;  %v4643_v48 = vcombine.high %v4627_v57, %v4634_v11 }
 0x726   : > { %v4738_v60 = vrot.slane %v4737_v34, 4  ;;  %v4745_v9 = vrot.slane %v4744_v38, 4  ;;  %v7228_v1 = vpop.eup %5701  ;;  %v4672_v63 = vrot.slane %v4644_v28, %v7060_v5  ;;  %v4676_v61 = vcombine.low %v7222_v7, %v7226_v62 }
 0x727   : > { %v4651_v8 = vrot.slane %v4642_v51, %v7060_v5  ;;  %v4658_v14 = vrot.slane %v4643_v48, %v7060_v5  ;;  %v4683_v56 = vrot.slane %v4675_v17, %v7060_v5  ;;  %v4697_v26 = vrot.slane %v7228_v1, %v7060_v5 }
 0x728   : > { %v4739_v58 = vadd.f32 %v4738_v60, %v4737_v34  ;;  %v4746_v50 = vadd.f32 %v4745_v9, %v4744_v38  ;;  %v4690_v18 = vrot.slane %v4676_v61, %v7060_v5 }
 0x729   : > { %v4673_v16 = vcombine.low %v4651_v8, %v4665_v22  ;;  %v4674_v40 = vcombine.low %v4658_v14, %v4672_v63  ;;  %v4700_v15 = vcombine.high %v4697_v26, %v4697_v26  ;;  %v4721_v0 = vrot.slane %v4697_v26, %v7060_v5 }
 0x72a   : > { %v4740_v10 = vrot.slane %v4739_v58, 2  ;;  %v4747_v37 = vrot.slane %v4746_v50, 2  ;;  %v4698_v32 = vcombine.low %v4683_v56, %v4690_v18  ;;  %v4699_v54 = vcombine.high %v4683_v56, %v4690_v18 }
 0x72b   : > { %v4751_v4 = vsel %vm4319_vm8, %v4673_v16, 0.0  ;;  %v4758_v13 = vsel %vm4319_vm8, %v4674_v40, 0.0  ;;  %v4728_v59 = vrot.slane %v4700_v15, %v7060_v5 }
 0x72c   : > { %v4741_v12 = vadd.f32 %v4740_v10, %v4739_v58  ;;  %v4748_v49 = vadd.f32 %v4747_v37, %v4746_v50  ;;  %v4707_v20 = vrot.slane %v4698_v32, %v7060_v5  ;;  %v4714_v30 = vrot.slane %v4699_v54, %v7060_v5 }
 0x72d   : > { %v4752_v35 = vrot.slane %v4751_v4, 4  ;;  %v4759_v24 = vrot.slane %v4758_v13, 4 }
 0x72e   : > { %v4742_v6 = vrot.slane %v4741_v12, 1  ;;  %v4749_v19 = vrot.slane %v4748_v49, 1  ;;  %v4729_v45 = vcombine.low %v4707_v20, %v4721_v0  ;;  %v4730_v46 = vcombine.low %v4714_v30, %v4728_v59 }
 0x72f   : > { %v4753_v42 = vadd.f32 %v4752_v35, %v4751_v4  ;;  %v4760_v3 = vadd.f32 %v4759_v24, %v4758_v13 }
 0x730   : > { %v4743_v43 = vadd.f32 %v4742_v6, %v4741_v12  ;;  %v4750_v39 = vadd.f32 %v4749_v19, %v4748_v49  ;;  %v4765_v53 = vsel %vm4319_vm8, %v4729_v45, 0.0  ;;  %v4772_v41 = vsel %vm4319_vm8, %v4730_v46, 0.0 }
 0x731   : > { %v4754_v33 = vrot.slane %v4753_v42, 2  ;;  %v4761_v57 = vrot.slane %v4760_v3, 2  ;;  %v4766_v11 = vrot.slane %v4765_v53, 4  ;;  %v4773_v34 = vrot.slane %v4772_v41, 4 }
 0x732   : > { %5703 = vrcp.f32 %v4743_v43 }
 0x733   : > { %5705 = vrcp.f32 %v4750_v39  ;;  %v4755_v38 = vadd.f32 %v4754_v33, %v4753_v42  ;;  %v4762_v28 = vadd.f32 %v4761_v57, %v4760_v3  ;;  %v4767_v60 = vadd.f32 %v4766_v11, %v4765_v53 }
 0x734   : > { %v4774_v9 = vadd.f32 %v4773_v34, %v4772_v41 }
 0x735   : > { %v4756_v51 = vrot.slane %v4755_v38, 1  ;;  %v4763_v48 = vrot.slane %v4762_v28, 1  ;;  %v4768_v22 = vrot.slane %v4767_v60, 2 }
 0x736   : > { %v4775_v63 = vrot.slane %v4774_v9, 2 }
 0x737   : > { %v4757_v17 = vadd.f32 %v4756_v51, %v4755_v38  ;;  %v4764_v61 = vadd.f32 %v4763_v48, %v4762_v28  ;;  %v4769_v58 = vadd.f32 %v4768_v22, %v4767_v60 }
 0x738   : > { %v4776_v50 = vadd.f32 %v4775_v63, %v4774_v9 }
 0x739   : > { %5707 = vrcp.f32 %v4757_v17  ;;  %v4770_v8 = vrot.slane %v4769_v58, 1 }
 0x73a   : > { %v4777_v14 = vrot.slane %v4776_v50, 1  ;;  %5709 = vrcp.f32 %v4764_v61 }
 0x73b   : > { %v4771_v18 = vadd.f32 %v4770_v8, %v4769_v58 }
 0x73c   : > { %v5704_v56 = vpop.eup %5703  ;;  %v4778_v26 = vadd.f32 %v4777_v14, %v4776_v50 }
 0x73d   : > { %v5706_v10 = vpop.eup %5705  ;;  %5711 = vrcp.f32 %v4771_v18 }
 0x73e   : > { %v4791_v37 = vcombine.low %v5704_v56, %v5706_v10  ;;  %v4792_v16 = vcombine.high %v5704_v56, %v5706_v10  ;;  %5713 = vrcp.f32 %v4778_v26 }
 0x740   : > { %v4799_v40 = vrot.slane %v4791_v37, %v7060_v5  ;;  %v4806_v32 = vrot.slane %v4792_v16, %v7060_v5 }
 0x742   : > { %v4807_v54 = vcombine.high %v4799_v40, %v4799_v40  ;;  %v4814_v15 = vrot.slane %v4799_v40, %v7060_v5  ;;  %v4821_v0 = vrot.slane %v4806_v32, %v7060_v5 }
 0x743   : > { %v5708_v12 = vpop.eup %5707 }
 0x744   : > { %v5710_v49 = vpop.eup %5709  ;;  %v4828_v4 = vrot.slane %v4807_v54, %v7060_v5  ;;  %v4829_v13 = vcombine.high %v4814_v15, %v4814_v15  ;;  %v4926_v20 = vmul.f32 %v7178_v25, %v4814_v15  ;;  %v4930_v30 = vmul.f32 %v7180_v2, %v4821_v0 }
 0x745   : > { %v4831_v59 = vcombine.low %v5708_v12, %v5710_v49  ;;  %v4832_v35 = vcombine.high %v5708_v12, %v5710_v49 }
 0x746   : > { %v4830_v6 = vcombine.high %v4828_v4, %v4828_v4  ;;  %v4927_v19 = vmul.f32 %v7182_v44, %v4828_v4  ;;  %v4928_v24 = vmul.f32 %v7184_v27, %v4829_v13  ;;  %v4978_v45 = vrot.slane %v4930_v30, %v7060_v5 }
 0x747   : > { %v4839_v46 = vrot.slane %v4831_v59, %v7060_v5  ;;  %v4846_v42 = vrot.slane %v4832_v35, %v7060_v5  ;;  %v5712_v43 = vpop.eup %5711 }
 0x748   : > { %v4929_v39 = vmul.f32 %v7190_v52, %v4830_v6  ;;  %v4956_v3 = vcombine.low %v4926_v20, %v4927_v19  ;;  %v4981_v25 = vcombine.high %v4978_v45, %v4978_v45  ;;  %v5714_v33 = vpop.eup %5713  ;;  %v5002_v57 = vrot.slane %v4978_v45, %v7060_v5 }
 0x749   : > { %v4847_v2 = vcombine.high %v4839_v46, %v4839_v46  ;;  %v4854_v53 = vrot.slane %v4839_v46, %v7060_v5  ;;  %v4861_v44 = vrot.slane %v4846_v42, %v7060_v5  ;;  %v4871_v11 = vcombine.low %v5712_v43, %v5714_v33 }
 0x74a   : > { %v4957_v41 = vcombine.low %v4928_v24, %v4929_v39  ;;  %v4964_v27 = vrot.slane %v4956_v3, %v7060_v5  ;;  %v4872_v28 = vcombine.high %v5712_v43, %v5714_v33  ;;  %v5009_v9 = vrot.slane %v4981_v25, %v7060_v5 }
 0x74b   : > { %v4868_v34 = vrot.slane %v4847_v2, %v7060_v5  ;;  %v4869_v38 = vcombine.high %v4854_v53, %v4854_v53  ;;  %v4931_v52 = vmul.f32 %v7196_v47, %v4854_v53  ;;  %v4879_v51 = vrot.slane %v4871_v11, %v7060_v5 }
 0x74c   : > { %v4971_v60 = vrot.slane %v4957_v41, %v7060_v5  ;;  %v4935_v48 = vmul.f32 %v7210_v36, %v4861_v44  ;;  %v4886_v63 = vrot.slane %v4872_v28, %v7060_v5 }
 0x74d   : > { %v4870_v22 = vcombine.high %v4868_v34, %v4868_v34  ;;  %v4932_v17 = vmul.f32 %v7198_v55, %v4868_v34  ;;  %v4933_v61 = vmul.f32 %v7200_v31, %v4869_v38  ;;  %v4887_v8 = vcombine.high %v4879_v51, %v4879_v51 }
 0x74e   : > { %v4979_v58 = vcombine.low %v4964_v27, %v4971_v60  ;;  %v4980_v50 = vcombine.high %v4964_v27, %v4971_v60  ;;  %v4894_v47 = vrot.slane %v4879_v51, %v7060_v5  ;;  %v4901_v14 = vrot.slane %v4886_v63, %v7060_v5 }
 0x74f   : > { %v4934_v56 = vmul.f32 %v7204_v29, %v4870_v22  ;;  %v5012_v18 = vcombine.low %v4931_v52, %v4932_v17  ;;  %v5034_v36 = vrot.slane %v4935_v48, %v7060_v5  ;;  %v4908_v55 = vrot.slane %v4887_v8, %v7060_v5 }
 0x750   : > { %v4988_v26 = vrot.slane %v4979_v58, %v7060_v5  ;;  %v4995_v10 = vrot.slane %v4980_v50, %v7060_v5  ;;  %v4909_v37 = vcombine.high %v4894_v47, %v4894_v47  ;;  %v4936_v31 = vmul.f32 %v7214_v21, %v4894_v47 }
 0x751   : > { %v4940_v29 = vmul.f32 %v7228_v1, %v4901_v14  ;;  %v5013_v16 = vcombine.low %v4933_v61, %v4934_v56  ;;  %v4910_v54 = vcombine.high %v4908_v55, %v4908_v55  ;;  %v4937_v15 = vmul.f32 %v7218_v23, %v4908_v55 }
 0x752   : > { %v5010_v40 = vcombine.low %v4988_v26, %v5002_v57  ;;  %v5011_v32 = vcombine.low %v4995_v10, %v5009_v9  ;;  %v4938_v0 = vmul.f32 %v7222_v7, %v4909_v37  ;;  %v5020_v12 = vrot.slane %v5012_v18, %v7060_v5 }
 0x753   : > { %v5027_v49 = vrot.slane %v5013_v16, %v7060_v5  ;;  %v5037_v4 = vcombine.high %v5034_v36, %v5034_v36  ;;  %v4939_v13 = vmul.f32 %v7226_v62, %v4910_v54  ;;  %v5068_v21 = vcombine.low %v4936_v31, %v4937_v15 }
 0x754   : > { %5130 = vst [vmem:[%s7287_s21] sm:$0x1f] %v5010_v40  ;;  %5131 = vst [vmem:[%s7287_s21 + $0x8] sm:$0x1f] %v5011_v32  ;;  %v5090_v1 = vrot.slane %v4940_v29, %v7060_v5  ;;  %v5058_v35 = vrot.slane %v5034_v36, %v7060_v5 }
 0x755   : > { %v5035_v20 = vcombine.low %v5020_v12, %v5027_v49  ;;  %v5036_v30 = vcombine.high %v5020_v12, %v5027_v49  ;;  %v5069_v59 = vcombine.low %v4938_v0, %v4939_v13  ;;  %v5065_v6 = vrot.slane %v5037_v4, %v7060_v5 }
 0x756   : > { %v5076_v19 = vrot.slane %v5068_v21, %v7060_v5  ;;  %v5093_v24 = vcombine.high %v5090_v1, %v5090_v1  ;;  %v5114_v25 = vrot.slane %v5090_v1, %v7060_v5 }
 0x757   : > { %v5044_v23 = vrot.slane %v5035_v20, %v7060_v5  ;;  %v5051_v7 = vrot.slane %v5036_v30, %v7060_v5  ;;  %v5083_v62 = vrot.slane %v5069_v59, %v7060_v5 }
 0x758   : > { %v5121_v33 = vrot.slane %v5093_v24, %v7060_v5 }
 0x759   : > { %v5066_v45 = vcombine.low %v5044_v23, %v5058_v35  ;;  %v5067_v46 = vcombine.low %v5051_v7, %v5065_v6  ;;  %v5091_v42 = vcombine.low %v5076_v19, %v5083_v62  ;;  %v5092_v43 = vcombine.high %v5076_v19, %v5083_v62 }
 0x75b   : > { %5132 = vst [vmem:[%s7287_s21 + $0x10] sm:$0x1f] %v5066_v45  ;;  %5133 = vst [vmem:[%s7287_s21 + $0x18] sm:$0x1f] %v5067_v46  ;;  %v5100_v39 = vrot.slane %v5091_v42, %v7060_v5  ;;  %v5107_v3 = vrot.slane %v5092_v43, %v7060_v5 }
 0x75d   : > { %v5122_v2 = vcombine.low %v5100_v39, %v5114_v25  ;;  %v5123_v53 = vcombine.low %v5107_v3, %v5121_v33 }
 0x75f   : > { %5134 = vst [vmem:[%s7287_s21 + $0x20] sm:$0x1f] %v5122_v2  ;;  %5135 = vst [vmem:[%s7287_s21 + $0x28] sm:$0x1f] %v5123_v53 }
 0x760 PF: > { %s20_s13 = sadd.s32 1, %s5729_s13  }
 0x761   : > { %p17_p4 = scmp.ge.s32.totalorder %s20_s13, 4  }
 0x763   :  { %19 = sbr.rel (!%p17_p4) target bundleno = 1 (0x1), region = 93 }

</bundles_post_ra>
